<compile_context>
chip_gen: v7x
topology: tpu7x:2x2x1
jax: 0.10.0
libtpu: 0.0.40
codegen_flags: <defaults>
</compile_context>

<pallas_src>
import functools

import jax
import jax.numpy as jnp
from jax import lax
from jax.experimental import pallas as pl
from jax.experimental.pallas import tpu as pltpu


# ----------------------------- args ---------------------------------------
class Args:
    n_agents = 4
    n_actions = 6
    attn_embed_dim = 32
    attn_n_heads = 4
    rnn_hidden_dim = 32
    gat_encoder_out_size = 32
    double_attn = 0           # attn out dim = attn_embed_dim * (1 + double_attn)
    pooling_type = None       # -> EntityAttentionLayer
    repeat_attn = 0
    second_graph = False


ARGS = Args()


# ----------------------------- helpers ------------------------------------
def _largest_divisor_leq(n, cap):
    for d in range(min(n, cap), 0, -1):
        if n % d == 0:
            return d
    return 1


def _pick_batch_block(B, rows_per_elem, target_rows=256):
    """Batch block size: as many rows per matmul as reasonable, but keep >= 2
    grid steps when B allows it so the 'parallel' axis can use both v7x TCs."""
    if B <= 1:
        return max(B, 1)
    cap = max(1, min(B // 2, max(1, target_rows // max(1, rows_per_elem))))
    return _largest_divisor_leq(B, cap)


def _attn_block(x, pre_mask, post_mask, w_in, w_out, b_out, n_heads):
    """EntityAttentionLayer on a block of batch elements (pure VMEM values).

    x:         (bB, ne, in_dim)
    pre_mask:  (bB, nq, ne)  1.0 -> logit masked (-inf)
    post_mask: (bB, nq, 1)   1.0 -> output row zeroed
    w_in:      (in_dim, 3*embed)  (in_trans, no bias)
    w_out:     (embed, out_dim),  b_out: (1, out_dim)
    """
    bB, ne, in_dim = x.shape
    nq = pre_mask.shape[1]
    embed = w_in.shape[1] // 3
    hd = embed // n_heads
    scale = 1.0 / (float(hd) ** 0.5)

    # QKV projection hoisted: one matmul over all bB*ne rows.
    qkv = jnp.dot(x.reshape(bB * ne, in_dim), w_in,
                  preferred_element_type=jnp.float32).reshape(bB, ne, 3 * embed)

    heads = []
    for h in range(n_heads):
        q_h = qkv[:, :nq, h * hd:(h + 1) * hd]
        k_h = qkv[:, :, embed + h * hd:embed + (h + 1) * hd]
        v_h = qkv[:, :, 2 * embed + h * hd:2 * embed + (h + 1) * hd]
        logits = jnp.einsum("bqd,bkd->bqk", q_h, k_h,
                            preferred_element_type=jnp.float32) * scale
        logits = jnp.where(pre_mask != 0.0, -jnp.inf, logits)
        m = jnp.max(logits, axis=-1, keepdims=True)
        m = jnp.where(m == -jnp.inf, 0.0, m)                   # fully-masked rows
        p = jnp.exp(logits - m)
        denom = jnp.sum(p, axis=-1, keepdims=True)
        w = p / (denom + jnp.where(denom == 0.0, 1.0, 0.0))    # safe: weights -> 0
        heads.append(jnp.einsum("bqk,bkd->bqd", w, v_h,
                                preferred_element_type=jnp.float32))

    # Concatenate heads then a single out_trans matmul (no per-head drains).
    attn = jnp.concatenate(heads, axis=-1).reshape(bB * nq, embed)
    out = jnp.dot(attn, w_out, preferred_element_type=jnp.float32) + b_out
    out = jnp.where(post_mask.reshape(bB * nq, 1) != 0.0, 0.0, out)
    return out.reshape(bB, nq, -1)


# ------------------------ kernel A: fused encoder ---------------------------
def _encoder_kernel(ent_ref, pre_ref, post_ref,
                    w1_ref, b1_ref, win_ref, wout_ref, bout_ref,
                    w2_ref, b2_ref, wih_ref, bih_ref,
                    gi_ref, *, n_heads):
    bB, ne, ed = ent_ref.shape
    nq = pre_ref.shape[1]

    # fc1 + ReLU over all rows of the batch block.
    x1 = jnp.dot(ent_ref[...].reshape(bB * ne, ed), w1_ref[...],
                 preferred_element_type=jnp.float32) + b1_ref[...]
    x1 = jnp.maximum(x1, 0.0).reshape(bB, ne, -1)

    attn = _attn_block(x1, pre_ref[...], post_ref[...],
                       win_ref[...], wout_ref[...], bout_ref[...], n_heads)

    # fc2 + ReLU.
    x3 = jnp.dot(attn.reshape(bB * nq, -1), w2_ref[...],
                 preferred_element_type=jnp.float32) + b2_ref[...]
    x3 = jnp.maximum(x3, 0.0)

    # GRU input gates precomputed here (hoisted out of the sequential time loop).
    gi = jnp.dot(x3, wih_ref[...], preferred_element_type=jnp.float32) + bih_ref[...]
    gi_ref[...] = gi.reshape(bB, nq, -1)


def encoder_attention(entities, pre_mask, agent_mask, params, args, block_b):
    B, ne, ed = entities.shape
    na = args.n_agents
    E = args.attn_embed_dim
    attn_out = params["attn"]["w_out"].shape[1]
    H = args.rnn_hidden_dim
    post = agent_mask.reshape(B, na, 1)
    kernel = functools.partial(_encoder_kernel, n_heads=args.attn_n_heads)
    return pl.pallas_call(
        kernel,
        out_shape=jax.ShapeDtypeStruct((B, na, 3 * H), jnp.float32),
        grid=(B // block_b,),
        in_specs=[
            pl.BlockSpec((block_b, ne, ed), lambda i: (i, 0, 0)),
            pl.BlockSpec((block_b, na, ne), lambda i: (i, 0, 0)),
            pl.BlockSpec((block_b, na, 1), lambda i: (i, 0, 0)),
            pl.BlockSpec((ed, E), lambda i: (0, 0)),
            pl.BlockSpec((1, E), lambda i: (0, 0)),
            pl.BlockSpec((E, 3 * E), lambda i: (0, 0)),
            pl.BlockSpec((E, attn_out), lambda i: (0, 0)),
            pl.BlockSpec((1, attn_out), lambda i: (0, 0)),
            pl.BlockSpec((attn_out, H), lambda i: (0, 0)),
            pl.BlockSpec((1, H), lambda i: (0, 0)),
            pl.BlockSpec((H, 3 * H), lambda i: (0, 0)),
            pl.BlockSpec((1, 3 * H), lambda i: (0, 0)),
        ],
        out_specs=pl.BlockSpec((block_b, na, 3 * H), lambda i: (i, 0, 0)),
        compiler_params=pltpu.CompilerParams(dimension_semantics=("parallel",)),
    )(entities, pre_mask, post,
      params["fc1_w"], params["fc1_b"].reshape(1, E),
      params["attn"]["w_in"], params["attn"]["w_out"],
      params["attn"]["b_out"].reshape(1, attn_out),
      params["fc2_w"], params["fc2_b"].reshape(1, H),
      params["gru"]["w_ih"], params["gru"]["b_ih"].reshape(1, 3 * H))


# ------------------------ kernel B: GRU recurrence --------------------------
def _gru_kernel(gi_ref, h0_ref, whh_ref, bhh_ref, hs_ref, h_carry):
    t = pl.program_id(0)

    @pl.when(t == 0)
    def _():
        h_carry[...] = h0_ref[...]

    bsz, na, threeH = gi_ref.shape
    H = threeH // 3
    gi = gi_ref[...].reshape(bsz * na, threeH)       # input gates (precomputed)
    h = h_carry[...]
    gh = jnp.dot(h, whh_ref[...], preferred_element_type=jnp.float32) + bhh_ref[...]
    r = jax.nn.sigmoid(gi[:, :H] + gh[:, :H])
    z = jax.nn.sigmoid(gi[:, H:2 * H] + gh[:, H:2 * H])
    n = jnp.tanh(gi[:, 2 * H:] + r * gh[:, 2 * H:])
    h_new = (1.0 - z) * n + z * h
    h_carry[...] = h_new
    hs_ref[...] = h_new.reshape(bsz, na, H)


def gru_sequence(gi, h0, p, bs, ts, na, H):
    # gi: (bs, ts, na, 3H); h0: (bs*na, H)  ->  hs: (bs, ts, na, H)
    return pl.pallas_call(
        _gru_kernel,
        out_shape=jax.ShapeDtypeStruct((bs, ts, na, H), jnp.float32),
        grid=(ts,),
        in_specs=[
            pl.BlockSpec((bs, None, na, 3 * H), lambda t: (0, t, 0, 0)),
            pl.BlockSpec((bs * na, H), lambda t: (0, 0)),
            pl.BlockSpec((H, 3 * H), lambda t: (0, 0)),
            pl.BlockSpec((1, 3 * H), lambda t: (0, 0)),
        ],
        out_specs=pl.BlockSpec((bs, None, na, H), lambda t: (0, t, 0, 0)),
        scratch_shapes=[pltpu.VMEM((bs * na, H), jnp.float32)],
        compiler_params=pltpu.CompilerParams(dimension_semantics=("arbitrary",)),
    )(gi, h0, p["w_hh"], p["b_hh"].reshape(1, 3 * H))


# ------------------- kernel C: GAT + scheduler + fc3 ------------------------
def _gat_head_kernel(hs_ref, fom_ref, am_ref, gd_ref,
                     wing_ref, woutg_ref, boutg_ref,
                     w1l_ref, w1r_ref, b1_ref, w2_ref, b2_ref, w3d_ref, b3d_ref,
                     wins_ref, wouts_ref, bouts_ref,
                     wq_ref, bq_ref,
                     q_ref, *, n_heads, apply_elu):
    bB, na, H = hs_ref.shape
    hs = hs_ref[...]
    fom = fom_ref[...]                                   # (bB, na, na)
    am = am_ref[...]                                     # (bB, na, 1)
    gd = gd_ref[...]                                     # gumbel(g1 - g0)

    # --- gat_encoder attention: (bB, na, H) -> (bB, na, g)
    gat = _attn_block(hs, fom, am, wing_ref[...], woutg_ref[...], boutg_ref[...],
                      n_heads)
    g = gat.shape[-1]
    g2 = w1l_ref.shape[1]

    # --- sub_scheduler MLP + hard gumbel adjacency (all in VMEM).
    # pair(i, j) = [gat_i, gat_j];  relu(pair @ W1 + b1)
    #            = relu(gat_i @ W1[:g] + gat_j @ W1[g:] + b1)
    gat_flat = gat.reshape(bB * na, g)
    lft = (jnp.dot(gat_flat, w1l_ref[...], preferred_element_type=jnp.float32)
           + b1_ref[...]).reshape(bB, na, g2)
    rgt = jnp.dot(gat_flat, w1r_ref[...],
                  preferred_element_type=jnp.float32).reshape(bB, na, g2)

    w2 = w2_ref[...]
    b2 = b2_ref[...]
    w3d = w3d_ref[...]                                   # (1, g2): w3[:,1]-w3[:,0]
    b3d = b3d_ref[...]                                   # (1, 1):  b3[1]-b3[0]
    col_ids = lax.broadcasted_iota(jnp.int32, (1, 1, na), 2)
    hard1 = jnp.zeros((bB, na, na), jnp.float32)
    for j in range(na):                                  # na is small and static
        h1 = jnp.maximum(lft + rgt[:, j:j + 1, :], 0.0).reshape(bB * na, g2)
        h2 = jnp.maximum(
            jnp.dot(h1, w2, preferred_element_type=jnp.float32) + b2, 0.0)
        # hard gumbel-softmax over 2 classes == sign of the perturbed logit diff
        d = jnp.sum(h2 * w3d, axis=-1, keepdims=True) + b3d
        d = d.reshape(bB, na, 1) + gd[:, :, j:j + 1]
        hard1 = hard1 + jnp.where(col_ids == j,
                                  (d > 0.0).astype(jnp.float32), 0.0)
    adj = jnp.where(fom != 0.0, 1.0, 1.0 - hard1)        # 1.0 = masked

    # --- sub_processor attention with the scheduled adjacency (+ ELU).
    msg = _attn_block(hs, adj, am, wins_ref[...], wouts_ref[...], bouts_ref[...],
                      n_heads)
    if apply_elu:
        # elu(0) == 0 so applying it after the post-mask zeroing matches PyTorch.
        msg = jnp.where(msg > 0.0, msg, jnp.exp(jnp.minimum(msg, 0.0)) - 1.0)

    # --- fc3 on [hs, msg] and agent masking.
    hsm = jnp.concatenate([hs, msg], axis=-1).reshape(bB * na, 2 * H)
    q = jnp.dot(hsm, wq_ref[...], preferred_element_type=jnp.float32) + bq_ref[...]
    q = jnp.where(am.reshape(bB * na, 1) != 0.0, 0.0, q)
    q_ref[...] = q.reshape(bB, na, -1)


def gat_head(hs, full_obs_mask, agent_mask, gumbel_diff, attn_p, mlp_p, proc_p,
             fc3_w, fc3_b, args, block_b, apply_elu):
    B, na, H = hs.shape
    g = attn_p["w_out"].shape[1]
    (w1, b1), (w2, b2), (w3, b3) = mlp_p
    g2 = w1.shape[1]
    A = fc3_w.shape[1]
    w1l, w1r = w1[:g], w1[g:]
    w3d = (w3[:, 1] - w3[:, 0]).reshape(1, g2)
    b3d = (b3[1] - b3[0]).reshape(1, 1)
    post = agent_mask.reshape(B, na, 1)
    kernel = functools.partial(_gat_head_kernel, n_heads=args.attn_n_heads,
                               apply_elu=apply_elu)
    return pl.pallas_call(
        kernel,
        out_shape=jax.ShapeDtypeStruct((B, na, A), jnp.float32),
        grid=(B // block_b,),
        in_specs=[
            pl.BlockSpec((block_b, na, H), lambda i: (i, 0, 0)),
            pl.BlockSpec((block_b, na, na), lambda i: (i, 0, 0)),
            pl.BlockSpec((block_b, na, 1), lambda i: (i, 0, 0)),
            pl.BlockSpec((block_b, na, na), lambda i: (i, 0, 0)),
            pl.BlockSpec((H, 3 * g), lambda i: (0, 0)),
            pl.BlockSpec((g, g), lambda i: (0, 0)),
            pl.BlockSpec((1, g), lambda i: (0, 0)),
            pl.BlockSpec((g, g2), lambda i: (0, 0)),
            pl.BlockSpec((g, g2), lambda i: (0, 0)),
            pl.BlockSpec((1, g2), lambda i: (0, 0)),
            pl.BlockSpec((g2, g2), lambda i: (0, 0)),
            pl.BlockSpec((1, g2), lambda i: (0, 0)),
            pl.BlockSpec((1, g2), lambda i: (0, 0)),
            pl.BlockSpec((1, 1), lambda i: (0, 0)),
            pl.BlockSpec((H, 3 * H), lambda i: (0, 0)),
            pl.BlockSpec((H, H), lambda i: (0, 0)),
            pl.BlockSpec((1, H), lambda i: (0, 0)),
            pl.BlockSpec((2 * H, A), lambda i: (0, 0)),
            pl.BlockSpec((1, A), lambda i: (0, 0)),
        ],
        out_specs=pl.BlockSpec((block_b, na, A), lambda i: (i, 0, 0)),
        compiler_params=pltpu.CompilerParams(dimension_semantics=("parallel",)),
    )(hs, full_obs_mask, post, gumbel_diff,
      attn_p["w_in"], attn_p["w_out"], attn_p["b_out"].reshape(1, g),
      w1l, w1r, b1.reshape(1, g2), w2, b2.reshape(1, g2), w3d, b3d,
      proc_p["w_in"], proc_p["w_out"], proc_p["b_out"].reshape(1, H),
      fc3_w, fc3_b.reshape(1, A))


# ----------------------------- parameters ---------------------------------
def _init_linear(key, din, dout, bias=True):
    k1, k2 = jax.random.split(key)
    bound = 1.0 / (din ** 0.5)
    w = jax.random.uniform(k1, (din, dout), jnp.float32, -bound, bound)
    b = jax.random.uniform(k2, (dout,), jnp.float32, -bound, bound) if bias else None
    return w, b


def _init_attn(key, in_dim, embed_dim, out_dim):
    k1, k2 = jax.random.split(key)
    w_in, _ = _init_linear(k1, in_dim, 3 * embed_dim, bias=False)   # in_trans (no bias)
    w_out, b_out = _init_linear(k2, embed_dim, out_dim)             # out_trans
    return {"w_in": w_in, "w_out": w_out, "b_out": b_out}


def init_params(key, input_shape, args):
    keys = jax.random.split(key, 16)
    H = args.rnn_hidden_dim
    g = args.gat_encoder_out_size
    attn_out = args.attn_embed_dim * (1 + args.double_attn)
    p = {}
    p["fc1_w"], p["fc1_b"] = _init_linear(keys[0], input_shape, args.attn_embed_dim)
    p["attn"] = _init_attn(keys[1], args.attn_embed_dim, args.attn_embed_dim, attn_out)
    p["fc2_w"], p["fc2_b"] = _init_linear(keys[2], attn_out, H)
    w_ih, b_ih = _init_linear(keys[3], H, 3 * H)
    w_hh, b_hh = _init_linear(keys[4], H, 3 * H)
    p["gru"] = {"w_ih": w_ih, "b_ih": b_ih, "w_hh": w_hh, "b_hh": b_hh}
    p["fc3_w"], p["fc3_b"] = _init_linear(keys[5], 2 * H, args.n_actions)
    p["mlp1"] = [_init_linear(keys[6], 2 * g, g // 2),
                 _init_linear(keys[7], g // 2, g // 2),
                 _init_linear(keys[8], g // 2, 2)]
    p["gat_encoder"] = _init_attn(keys[9], H, g, g)
    p["sub_processor1"] = _init_attn(keys[10], H, H, H)
    if args.second_graph:
        p["mlp2"] = [_init_linear(keys[11], 2 * g, g // 2),
                     _init_linear(keys[12], g // 2, g // 2),
                     _init_linear(keys[13], g // 2, 2)]
        p["sub_processor2"] = _init_attn(keys[14], H, H, H)
    return p


# ----------------------------- forward glue ---------------------------------
def forward(params, entities, obs_mask, entity_mask, hidden_state, gumbel_key, args):
    bs, ts, ne, ed = entities.shape
    na = args.n_agents
    H = args.rnn_hidden_dim
    B = bs * ts

    entities = entities.reshape(B, ne, ed)
    obs_mask = obs_mask.reshape(B, ne, ne)
    entity_mask = entity_mask.reshape(B, ne)
    agent_mask = entity_mask[:, :na]

    block_b = _pick_batch_block(B, ne)

    # Fused fc1 -> attention -> fc2 -> W_ih projection (kernel A).
    # NOTE: the PyTorch repeat_attn loop immediately overwrites its result with
    # attn_outs, so the repeated attention is dead compute and is skipped here.
    gi = encoder_attention(entities, obs_mask[:, :na, :], agent_mask, params,
                           args, block_b)                       # (B, na, 3H)

    # GRU over time (kernel B); only h @ W_hh stays inside the sequential loop.
    h0 = hidden_state.reshape(bs * na, H)
    hs4 = gru_sequence(gi.reshape(bs, ts, na, 3 * H), h0, params["gru"],
                       bs, ts, na, H)                           # (bs, ts, na, H)
    hs = hs4.reshape(B, na, H)

    # Fused GAT head (kernel C): gat_encoder -> scheduler -> processor -> fc3.
    full_obs_mask = 1.0 - (1.0 - agent_mask[:, None, :]) * (1.0 - agent_mask[:, :, None])

    def gumbel_diff(key):
        # TODO(synk): torch generates gumbel noise with its own RNG inside
        # F.gumbel_softmax; here it is drawn with jax.random and passed in.
        u = jax.random.uniform(key, (B, na, na, 2), jnp.float32,
                               minval=1e-10, maxval=1.0)
        gmb = -jnp.log(-jnp.log(u))
        return gmb[..., 1] - gmb[..., 0]

    if args.second_graph:
        # With second_graph the PyTorch forward overwrites msg with the
        # sub_processor2 output (no ELU), so only the second scheduler /
        # processor contributes to q.
        q = gat_head(hs, full_obs_mask, agent_mask,
                     gumbel_diff(jax.random.fold_in(gumbel_key, 1)),
                     params["gat_encoder"], params["mlp2"],
                     params["sub_processor2"], params["fc3_w"], params["fc3_b"],
                     args, block_b, apply_elu=False)
    else:
        q = gat_head(hs, full_obs_mask, agent_mask, gumbel_diff(gumbel_key),
                     params["gat_encoder"], params["mlp1"],
                     params["sub_processor1"], params["fc3_w"], params["fc3_b"],
                     args, block_b, apply_elu=True)

    q = q.reshape(bs, ts, na, -1)
    return q, hs


# ----------------------------- main ----------------------------------------
if __name__ == "__main__":
    args = ARGS
    bs, ts, ne, ed = 2, 3, 8, 16

    key = jax.random.PRNGKey(0)
    k_params, k_ent, k_obs, k_em, k_gumbel = jax.random.split(key, 5)

    params = init_params(k_params, ed, args)
    entities = jax.random.normal(k_ent, (bs, ts, ne, ed), jnp.float32)
    obs_mask = (jax.random.uniform(k_obs, (bs, ts, ne, ne)) < 0.3).astype(jnp.float32)
    obs_mask = obs_mask * (1.0 - jnp.eye(ne)[None, None])   # entities see themselves
    entity_mask = (jax.random.uniform(k_em, (bs, ts, ne)) < 0.2).astype(jnp.float32)
    hidden_state = jnp.zeros((bs, args.n_agents, args.rnn_hidden_dim), jnp.float32)

    fwd = jax.jit(functools.partial(forward, args=args))
    q, hs = fwd(params, entities, obs_mask, entity_mask, hidden_state, k_gumbel)
    jax.block_until_ready((q, hs))

    assert q.shape == (bs, ts, args.n_agents, args.n_actions)
    assert hs.shape == (bs * ts, args.n_agents, args.rnn_hidden_dim)
    assert bool(jnp.all(jnp.isfinite(q))) and bool(jnp.all(jnp.isfinite(hs)))
    print("KERNEL_OK")
</pallas_src>

<mosaic_0001>
module attributes {stable_mosaic.version = 11 : i64} {
  func.func @_encoder_kernel(%arg0: i32, %arg1: memref<3x8x16xf32, #tpu.memory_space<vmem>>, %arg2: memref<3x4x8xf32, #tpu.memory_space<vmem>>, %arg3: memref<3x4x1xf32, #tpu.memory_space<vmem>>, %arg4: memref<16x32xf32, #tpu.memory_space<vmem>>, %arg5: memref<1x32xf32, #tpu.memory_space<vmem>>, %arg6: memref<32x96xf32, #tpu.memory_space<vmem>>, %arg7: memref<32x32xf32, #tpu.memory_space<vmem>>, %arg8: memref<1x32xf32, #tpu.memory_space<vmem>>, %arg9: memref<32x32xf32, #tpu.memory_space<vmem>>, %arg10: memref<1x32xf32, #tpu.memory_space<vmem>>, %arg11: memref<32x96xf32, #tpu.memory_space<vmem>>, %arg12: memref<1x96xf32, #tpu.memory_space<vmem>>, %arg13: memref<3x4x96xf32, #tpu.memory_space<vmem>>) attributes {dimension_semantics = [#tpu.dimension_semantics<parallel>], iteration_bounds = array<i64: 2>, scalar_prefetch = 0 : i64, scratch_operands = 0 : i64, tpu.core_type = #tpu.core_type<tc>, window_params = [{transform_indices = @transform_0, window_bounds = array<i64: 3, 8, 16>}, {transform_indices = @transform_1, window_bounds = array<i64: 3, 4, 8>}, {transform_indices = @transform_2, window_bounds = array<i64: 3, 4, 1>}, {pipeline_mode = #tpu.pipeline_mode<synchronous>, transform_indices = @transform_3, window_bounds = array<i64: 16, 32>}, {pipeline_mode = #tpu.pipeline_mode<synchronous>, transform_indices = @transform_4, window_bounds = array<i64: 1, 32>}, {pipeline_mode = #tpu.pipeline_mode<synchronous>, transform_indices = @transform_5, window_bounds = array<i64: 32, 96>}, {pipeline_mode = #tpu.pipeline_mode<synchronous>, transform_indices = @transform_6, window_bounds = array<i64: 32, 32>}, {pipeline_mode = #tpu.pipeline_mode<synchronous>, transform_indices = @transform_7, window_bounds = array<i64: 1, 32>}, {pipeline_mode = #tpu.pipeline_mode<synchronous>, transform_indices = @transform_8, window_bounds = array<i64: 32, 32>}, {pipeline_mode = #tpu.pipeline_mode<synchronous>, transform_indices = @transform_9, window_bounds = array<i64: 1, 32>}, {pipeline_mode = #tpu.pipeline_mode<synchronous>, transform_indices = @transform_10, window_bounds = array<i64: 32, 96>}, {pipeline_mode = #tpu.pipeline_mode<synchronous>, transform_indices = @transform_11, window_bounds = array<i64: 1, 96>}, {transform_indices = @transform_12, window_bounds = array<i64: 3, 4, 96>}]} {
    %c0 = arith.constant 0 : index
    %c0_0 = arith.constant 0 : index
    %c0_1 = arith.constant 0 : index
    %0 = vector.load %arg1[%c0, %c0_0, %c0_1] : memref<3x8x16xf32, #tpu.memory_space<vmem>>, vector<3x8x16xf32>
    %1 = vector.shape_cast %0 : vector<3x8x16xf32> to vector<24x16xf32>
    %c0_2 = arith.constant 0 : index
    %c0_3 = arith.constant 0 : index
    %2 = vector.load %arg4[%c0_2, %c0_3] : memref<16x32xf32, #tpu.memory_space<vmem>>, vector<16x32xf32>
    %cst = arith.constant dense<0.000000e+00> : vector<24x32xf32>
    %3 = tpu.matmul %1, %2, %cst {dimension_numbers = #tpu.dot_dimension_numbers<[1], [0], [0], [1], [0, 0, 1, 1], [], []>} : vector<24x16xf32>, vector<16x32xf32>, vector<24x32xf32> -> vector<24x32xf32>
    %c0_4 = arith.constant 0 : index
    %c0_5 = arith.constant 0 : index
    %4 = vector.load %arg5[%c0_4, %c0_5] : memref<1x32xf32, #tpu.memory_space<vmem>>, vector<1x32xf32>
    %5 = vector.broadcast %4 : vector<1x32xf32> to vector<24x32xf32>
    %6 = arith.addf %3, %5 : vector<24x32xf32>
    %cst_6 = arith.constant 0.000000e+00 : f32
    %7 = vector.broadcast %cst_6 : f32 to vector<24x32xf32>
    %8 = arith.maximumf %6, %7 : vector<24x32xf32>
    %9 = vector.shape_cast %8 : vector<24x32xf32> to vector<3x8x32xf32>
    %c0_7 = arith.constant 0 : index
    %c0_8 = arith.constant 0 : index
    %c0_9 = arith.constant 0 : index
    %10 = vector.load %arg2[%c0_7, %c0_8, %c0_9] : memref<3x4x8xf32, #tpu.memory_space<vmem>>, vector<3x4x8xf32>
    %c0_10 = arith.constant 0 : index
    %c0_11 = arith.constant 0 : index
    %c0_12 = arith.constant 0 : index
    %11 = vector.load %arg3[%c0_10, %c0_11, %c0_12] : memref<3x4x1xf32, #tpu.memory_space<vmem>>, vector<3x4x1xf32>
    %c0_13 = arith.constant 0 : index
    %c0_14 = arith.constant 0 : index
    %12 = vector.load %arg6[%c0_13, %c0_14] : memref<32x96xf32, #tpu.memory_space<vmem>>, vector<32x96xf32>
    %c0_15 = arith.constant 0 : index
    %c0_16 = arith.constant 0 : index
    %13 = vector.load %arg7[%c0_15, %c0_16] : memref<32x32xf32, #tpu.memory_space<vmem>>, vector<32x32xf32>
    %c0_17 = arith.constant 0 : index
    %c0_18 = arith.constant 0 : index
    %14 = vector.load %arg8[%c0_17, %c0_18] : memref<1x32xf32, #tpu.memory_space<vmem>>, vector<1x32xf32>
    %15 = vector.shape_cast %9 : vector<3x8x32xf32> to vector<24x32xf32>
    %cst_19 = arith.constant dense<0.000000e+00> : vector<24x96xf32>
    %16 = tpu.matmul %15, %12, %cst_19 {dimension_numbers = #tpu.dot_dimension_numbers<[1], [0], [0], [1], [0, 0, 1, 1], [], []>} : vector<24x32xf32>, vector<32x96xf32>, vector<24x96xf32> -> vector<24x96xf32>
    %17 = vector.shape_cast %16 : vector<24x96xf32> to vector<3x8x96xf32>
    %18 = vector.extract_strided_slice %17 {offsets = [0, 0, 0], sizes = [3, 4, 8], strides = [1, 1, 1]} : vector<3x8x96xf32> to vector<3x4x8xf32>
    %19 = vector.extract_strided_slice %17 {offsets = [0, 0, 32], sizes = [3, 8, 8], strides = [1, 1, 1]} : vector<3x8x96xf32> to vector<3x8x8xf32>
    %20 = vector.extract_strided_slice %17 {offsets = [0, 0, 64], sizes = [3, 8, 8], strides = [1, 1, 1]} : vector<3x8x96xf32> to vector<3x8x8xf32>
    "tpu.trace_start"() <{level = 10 : i32, message = "bqd,bkd->bqk"}> : () -> ()
    %cst_20 = arith.constant dense<0.000000e+00> : vector<3x4x8xf32>
    %21 = tpu.matmul %18, %19, %cst_20 {dimension_numbers = #tpu.dot_dimension_numbers<[2], [2], [1], [1], [0, 0, 0, 1, 1, 1], [0], [0]>} : vector<3x4x8xf32>, vector<3x8x8xf32>, vector<3x4x8xf32> -> vector<3x4x8xf32>
    "tpu.trace_stop"() : () -> ()
    %cst_21 = arith.constant 0.353553385 : f32
    %22 = vector.broadcast %cst_21 : f32 to vector<3x4x8xf32>
    %23 = arith.mulf %21, %22 : vector<3x4x8xf32>
    %cst_22 = arith.constant 0.000000e+00 : f32
    %24 = vector.broadcast %cst_22 : f32 to vector<3x4x8xf32>
    %25 = arith.cmpf one, %10, %24 : vector<3x4x8xf32>
    %cst_23 = arith.constant 0xFF800000 : f32
    %26 = vector.broadcast %cst_23 : f32 to vector<3x4x8xf32>
    %27 = arith.select %25, %26, %23 : vector<3x4x8xi1>, vector<3x4x8xf32>
    %cst_24 = arith.constant dense<0xFF800000> : vector<3x4xf32>
    %28 = vector.multi_reduction <maximumf>, %27, %cst_24 [2] : vector<3x4x8xf32> to vector<3x4xf32>
    %29 = vector.shape_cast %28 : vector<3x4xf32> to vector<3x4x1xf32>
    %cst_25 = arith.constant 0xFF800000 : f32
    %30 = vector.broadcast %cst_25 : f32 to vector<3x4x1xf32>
    %31 = arith.cmpf oeq, %29, %30 : vector<3x4x1xf32>
    %cst_26 = arith.constant 0.000000e+00 : f32
    %32 = vector.broadcast %cst_26 : f32 to vector<3x4x1xf32>
    %33 = arith.select %31, %32, %29 : vector<3x4x1xi1>, vector<3x4x1xf32>
    %34 = vector.broadcast %33 : vector<3x4x1xf32> to vector<3x4x8xf32>
    %35 = arith.subf %27, %34 : vector<3x4x8xf32>
    %36 = math.exp %35 : vector<3x4x8xf32>
    %cst_27 = arith.constant dense<0.000000e+00> : vector<3x4xf32>
    %37 = vector.multi_reduction <add>, %36, %cst_27 [2] : vector<3x4x8xf32> to vector<3x4xf32>
    %38 = vector.shape_cast %37 : vector<3x4xf32> to vector<3x4x1xf32>
    %cst_28 = arith.constant 0.000000e+00 : f32
    %39 = vector.broadcast %cst_28 : f32 to vector<3x4x1xf32>
    %40 = arith.cmpf oeq, %38, %39 : vector<3x4x1xf32>
    %cst_29 = arith.constant 1.000000e+00 : f32
    %cst_30 = arith.constant 0.000000e+00 : f32
    %41 = vector.broadcast %cst_29 : f32 to vector<3x4x1xf32>
    %42 = vector.broadcast %cst_30 : f32 to vector<3x4x1xf32>
    %43 = arith.select %40, %41, %42 : vector<3x4x1xi1>, vector<3x4x1xf32>
    %44 = arith.addf %38, %43 : vector<3x4x1xf32>
    %45 = vector.broadcast %44 : vector<3x4x1xf32> to vector<3x4x8xf32>
    %46 = arith.divf %36, %45 : vector<3x4x8xf32>
    "tpu.trace_start"() <{level = 10 : i32, message = "bqk,bkd->bqd"}> : () -> ()
    %cst_31 = arith.constant dense<0.000000e+00> : vector<3x4x8xf32>
    %47 = tpu.matmul %46, %20, %cst_31 {dimension_numbers = #tpu.dot_dimension_numbers<[2], [1], [1], [2], [0, 0, 0, 1, 1, 2], [0], [0]>} : vector<3x4x8xf32>, vector<3x8x8xf32>, vector<3x4x8xf32> -> vector<3x4x8xf32>
    "tpu.trace_stop"() : () -> ()
    %48 = vector.extract_strided_slice %17 {offsets = [0, 0, 8], sizes = [3, 4, 8], strides = [1, 1, 1]} : vector<3x8x96xf32> to vector<3x4x8xf32>
    %49 = vector.extract_strided_slice %17 {offsets = [0, 0, 40], sizes = [3, 8, 8], strides = [1, 1, 1]} : vector<3x8x96xf32> to vector<3x8x8xf32>
    %50 = vector.extract_strided_slice %17 {offsets = [0, 0, 72], sizes = [3, 8, 8], strides = [1, 1, 1]} : vector<3x8x96xf32> to vector<3x8x8xf32>
    "tpu.trace_start"() <{level = 10 : i32, message = "bqd,bkd->bqk"}> : () -> ()
    %cst_32 = arith.constant dense<0.000000e+00> : vector<3x4x8xf32>
    %51 = tpu.matmul %48, %49, %cst_32 {dimension_numbers = #tpu.dot_dimension_numbers<[2], [2], [1], [1], [0, 0, 0, 1, 1, 1], [0], [0]>} : vector<3x4x8xf32>, vector<3x8x8xf32>, vector<3x4x8xf32> -> vector<3x4x8xf32>
    "tpu.trace_stop"() : () -> ()
    %cst_33 = arith.constant 0.353553385 : f32
    %52 = vector.broadcast %cst_33 : f32 to vector<3x4x8xf32>
    %53 = arith.mulf %51, %52 : vector<3x4x8xf32>
    %cst_34 = arith.constant 0.000000e+00 : f32
    %54 = vector.broadcast %cst_34 : f32 to vector<3x4x8xf32>
    %55 = arith.cmpf one, %10, %54 : vector<3x4x8xf32>
    %cst_35 = arith.constant 0xFF800000 : f32
    %56 = vector.broadcast %cst_35 : f32 to vector<3x4x8xf32>
    %57 = arith.select %55, %56, %53 : vector<3x4x8xi1>, vector<3x4x8xf32>
    %cst_36 = arith.constant dense<0xFF800000> : vector<3x4xf32>
    %58 = vector.multi_reduction <maximumf>, %57, %cst_36 [2] : vector<3x4x8xf32> to vector<3x4xf32>
    %59 = vector.shape_cast %58 : vector<3x4xf32> to vector<3x4x1xf32>
    %cst_37 = arith.constant 0xFF800000 : f32
    %60 = vector.broadcast %cst_37 : f32 to vector<3x4x1xf32>
    %61 = arith.cmpf oeq, %59, %60 : vector<3x4x1xf32>
    %cst_38 = arith.constant 0.000000e+00 : f32
    %62 = vector.broadcast %cst_38 : f32 to vector<3x4x1xf32>
    %63 = arith.select %61, %62, %59 : vector<3x4x1xi1>, vector<3x4x1xf32>
    %64 = vector.broadcast %63 : vector<3x4x1xf32> to vector<3x4x8xf32>
    %65 = arith.subf %57, %64 : vector<3x4x8xf32>
    %66 = math.exp %65 : vector<3x4x8xf32>
    %cst_39 = arith.constant dense<0.000000e+00> : vector<3x4xf32>
    %67 = vector.multi_reduction <add>, %66, %cst_39 [2] : vector<3x4x8xf32> to vector<3x4xf32>
    %68 = vector.shape_cast %67 : vector<3x4xf32> to vector<3x4x1xf32>
    %cst_40 = arith.constant 0.000000e+00 : f32
    %69 = vector.broadcast %cst_40 : f32 to vector<3x4x1xf32>
    %70 = arith.cmpf oeq, %68, %69 : vector<3x4x1xf32>
    %cst_41 = arith.constant 1.000000e+00 : f32
    %cst_42 = arith.constant 0.000000e+00 : f32
    %71 = vector.broadcast %cst_41 : f32 to vector<3x4x1xf32>
    %72 = vector.broadcast %cst_42 : f32 to vector<3x4x1xf32>
    %73 = arith.select %70, %71, %72 : vector<3x4x1xi1>, vector<3x4x1xf32>
    %74 = arith.addf %68, %73 : vector<3x4x1xf32>
    %75 = vector.broadcast %74 : vector<3x4x1xf32> to vector<3x4x8xf32>
    %76 = arith.divf %66, %75 : vector<3x4x8xf32>
    "tpu.trace_start"() <{level = 10 : i32, message = "bqk,bkd->bqd"}> : () -> ()
    %cst_43 = arith.constant dense<0.000000e+00> : vector<3x4x8xf32>
    %77 = tpu.matmul %76, %50, %cst_43 {dimension_numbers = #tpu.dot_dimension_numbers<[2], [1], [1], [2], [0, 0, 0, 1, 1, 2], [0], [0]>} : vector<3x4x8xf32>, vector<3x8x8xf32>, vector<3x4x8xf32> -> vector<3x4x8xf32>
    "tpu.trace_stop"() : () -> ()
    %78 = vector.extract_strided_slice %17 {offsets = [0, 0, 16], sizes = [3, 4, 8], strides = [1, 1, 1]} : vector<3x8x96xf32> to vector<3x4x8xf32>
    %79 = vector.extract_strided_slice %17 {offsets = [0, 0, 48], sizes = [3, 8, 8], strides = [1, 1, 1]} : vector<3x8x96xf32> to vector<3x8x8xf32>
    %80 = vector.extract_strided_slice %17 {offsets = [0, 0, 80], sizes = [3, 8, 8], strides = [1, 1, 1]} : vector<3x8x96xf32> to vector<3x8x8xf32>
    "tpu.trace_start"() <{level = 10 : i32, message = "bqd,bkd->bqk"}> : () -> ()
    %cst_44 = arith.constant dense<0.000000e+00> : vector<3x4x8xf32>
    %81 = tpu.matmul %78, %79, %cst_44 {dimension_numbers = #tpu.dot_dimension_numbers<[2], [2], [1], [1], [0, 0, 0, 1, 1, 1], [0], [0]>} : vector<3x4x8xf32>, vector<3x8x8xf32>, vector<3x4x8xf32> -> vector<3x4x8xf32>
    "tpu.trace_stop"() : () -> ()
    %cst_45 = arith.constant 0.353553385 : f32
    %82 = vector.broadcast %cst_45 : f32 to vector<3x4x8xf32>
    %83 = arith.mulf %81, %82 : vector<3x4x8xf32>
    %cst_46 = arith.constant 0.000000e+00 : f32
    %84 = vector.broadcast %cst_46 : f32 to vector<3x4x8xf32>
    %85 = arith.cmpf one, %10, %84 : vector<3x4x8xf32>
    %cst_47 = arith.constant 0xFF800000 : f32
    %86 = vector.broadcast %cst_47 : f32 to vector<3x4x8xf32>
    %87 = arith.select %85, %86, %83 : vector<3x4x8xi1>, vector<3x4x8xf32>
    %cst_48 = arith.constant dense<0xFF800000> : vector<3x4xf32>
    %88 = vector.multi_reduction <maximumf>, %87, %cst_48 [2] : vector<3x4x8xf32> to vector<3x4xf32>
    %89 = vector.shape_cast %88 : vector<3x4xf32> to vector<3x4x1xf32>
    %cst_49 = arith.constant 0xFF800000 : f32
    %90 = vector.broadcast %cst_49 : f32 to vector<3x4x1xf32>
    %91 = arith.cmpf oeq, %89, %90 : vector<3x4x1xf32>
    %cst_50 = arith.constant 0.000000e+00 : f32
    %92 = vector.broadcast %cst_50 : f32 to vector<3x4x1xf32>
    %93 = arith.select %91, %92, %89 : vector<3x4x1xi1>, vector<3x4x1xf32>
    %94 = vector.broadcast %93 : vector<3x4x1xf32> to vector<3x4x8xf32>
    %95 = arith.subf %87, %94 : vector<3x4x8xf32>
    %96 = math.exp %95 : vector<3x4x8xf32>
    %cst_51 = arith.constant dense<0.000000e+00> : vector<3x4xf32>
    %97 = vector.multi_reduction <add>, %96, %cst_51 [2] : vector<3x4x8xf32> to vector<3x4xf32>
    %98 = vector.shape_cast %97 : vector<3x4xf32> to vector<3x4x1xf32>
    %cst_52 = arith.constant 0.000000e+00 : f32
    %99 = vector.broadcast %cst_52 : f32 to vector<3x4x1xf32>
    %100 = arith.cmpf oeq, %98, %99 : vector<3x4x1xf32>
    %cst_53 = arith.constant 1.000000e+00 : f32
    %cst_54 = arith.constant 0.000000e+00 : f32
    %101 = vector.broadcast %cst_53 : f32 to vector<3x4x1xf32>
    %102 = vector.broadcast %cst_54 : f32 to vector<3x4x1xf32>
    %103 = arith.select %100, %101, %102 : vector<3x4x1xi1>, vector<3x4x1xf32>
    %104 = arith.addf %98, %103 : vector<3x4x1xf32>
    %105 = vector.broadcast %104 : vector<3x4x1xf32> to vector<3x4x8xf32>
    %106 = arith.divf %96, %105 : vector<3x4x8xf32>
    "tpu.trace_start"() <{level = 10 : i32, message = "bqk,bkd->bqd"}> : () -> ()
    %cst_55 = arith.constant dense<0.000000e+00> : vector<3x4x8xf32>
    %107 = tpu.matmul %106, %80, %cst_55 {dimension_numbers = #tpu.dot_dimension_numbers<[2], [1], [1], [2], [0, 0, 0, 1, 1, 2], [0], [0]>} : vector<3x4x8xf32>, vector<3x8x8xf32>, vector<3x4x8xf32> -> vector<3x4x8xf32>
    "tpu.trace_stop"() : () -> ()
    %108 = vector.extract_strided_slice %17 {offsets = [0, 0, 24], sizes = [3, 4, 8], strides = [1, 1, 1]} : vector<3x8x96xf32> to vector<3x4x8xf32>
    %109 = vector.extract_strided_slice %17 {offsets = [0, 0, 56], sizes = [3, 8, 8], strides = [1, 1, 1]} : vector<3x8x96xf32> to vector<3x8x8xf32>
    %110 = vector.extract_strided_slice %17 {offsets = [0, 0, 88], sizes = [3, 8, 8], strides = [1, 1, 1]} : vector<3x8x96xf32> to vector<3x8x8xf32>
    "tpu.trace_start"() <{level = 10 : i32, message = "bqd,bkd->bqk"}> : () -> ()
    %cst_56 = arith.constant dense<0.000000e+00> : vector<3x4x8xf32>
    %111 = tpu.matmul %108, %109, %cst_56 {dimension_numbers = #tpu.dot_dimension_numbers<[2], [2], [1], [1], [0, 0, 0, 1, 1, 1], [0], [0]>} : vector<3x4x8xf32>, vector<3x8x8xf32>, vector<3x4x8xf32> -> vector<3x4x8xf32>
    "tpu.trace_stop"() : () -> ()
    %cst_57 = arith.constant 0.353553385 : f32
    %112 = vector.broadcast %cst_57 : f32 to vector<3x4x8xf32>
    %113 = arith.mulf %111, %112 : vector<3x4x8xf32>
    %cst_58 = arith.constant 0.000000e+00 : f32
    %114 = vector.broadcast %cst_58 : f32 to vector<3x4x8xf32>
    %115 = arith.cmpf one, %10, %114 : vector<3x4x8xf32>
    %cst_59 = arith.constant 0xFF800000 : f32
    %116 = vector.broadcast %cst_59 : f32 to vector<3x4x8xf32>
    %117 = arith.select %115, %116, %113 : vector<3x4x8xi1>, vector<3x4x8xf32>
    %cst_60 = arith.constant dense<0xFF800000> : vector<3x4xf32>
    %118 = vector.multi_reduction <maximumf>, %117, %cst_60 [2] : vector<3x4x8xf32> to vector<3x4xf32>
    %119 = vector.shape_cast %118 : vector<3x4xf32> to vector<3x4x1xf32>
    %cst_61 = arith.constant 0xFF800000 : f32
    %120 = vector.broadcast %cst_61 : f32 to vector<3x4x1xf32>
    %121 = arith.cmpf oeq, %119, %120 : vector<3x4x1xf32>
    %cst_62 = arith.constant 0.000000e+00 : f32
    %122 = vector.broadcast %cst_62 : f32 to vector<3x4x1xf32>
    %123 = arith.select %121, %122, %119 : vector<3x4x1xi1>, vector<3x4x1xf32>
    %124 = vector.broadcast %123 : vector<3x4x1xf32> to vector<3x4x8xf32>
    %125 = arith.subf %117, %124 : vector<3x4x8xf32>
    %126 = math.exp %125 : vector<3x4x8xf32>
    %cst_63 = arith.constant dense<0.000000e+00> : vector<3x4xf32>
    %127 = vector.multi_reduction <add>, %126, %cst_63 [2] : vector<3x4x8xf32> to vector<3x4xf32>
    %128 = vector.shape_cast %127 : vector<3x4xf32> to vector<3x4x1xf32>
    %cst_64 = arith.constant 0.000000e+00 : f32
    %129 = vector.broadcast %cst_64 : f32 to vector<3x4x1xf32>
    %130 = arith.cmpf oeq, %128, %129 : vector<3x4x1xf32>
    %cst_65 = arith.constant 1.000000e+00 : f32
    %cst_66 = arith.constant 0.000000e+00 : f32
    %131 = vector.broadcast %cst_65 : f32 to vector<3x4x1xf32>
    %132 = vector.broadcast %cst_66 : f32 to vector<3x4x1xf32>
    %133 = arith.select %130, %131, %132 : vector<3x4x1xi1>, vector<3x4x1xf32>
    %134 = arith.addf %128, %133 : vector<3x4x1xf32>
    %135 = vector.broadcast %134 : vector<3x4x1xf32> to vector<3x4x8xf32>
    %136 = arith.divf %126, %135 : vector<3x4x8xf32>
    "tpu.trace_start"() <{level = 10 : i32, message = "bqk,bkd->bqd"}> : () -> ()
    %cst_67 = arith.constant dense<0.000000e+00> : vector<3x4x8xf32>
    %137 = tpu.matmul %136, %110, %cst_67 {dimension_numbers = #tpu.dot_dimension_numbers<[2], [1], [1], [2], [0, 0, 0, 1, 1, 2], [0], [0]>} : vector<3x4x8xf32>, vector<3x8x8xf32>, vector<3x4x8xf32> -> vector<3x4x8xf32>
    "tpu.trace_stop"() : () -> ()
    %138 = tpu.concatenate %47, %77, %107, %137 in 2 : vector<3x4x8xf32>, vector<3x4x8xf32>, vector<3x4x8xf32>, vector<3x4x8xf32> -> vector<3x4x32xf32>
    %139 = vector.shape_cast %138 : vector<3x4x32xf32> to vector<12x32xf32>
    %cst_68 = arith.constant dense<0.000000e+00> : vector<12x32xf32>
    %140 = tpu.matmul %139, %13, %cst_68 {dimension_numbers = #tpu.dot_dimension_numbers<[1], [0], [0], [1], [0, 0, 1, 1], [], []>} : vector<12x32xf32>, vector<32x32xf32>, vector<12x32xf32> -> vector<12x32xf32>
    %141 = vector.broadcast %14 : vector<1x32xf32> to vector<12x32xf32>
    %142 = arith.addf %140, %141 : vector<12x32xf32>
    %143 = vector.shape_cast %11 : vector<3x4x1xf32> to vector<12x1xf32>
    %cst_69 = arith.constant 0.000000e+00 : f32
    %144 = vector.broadcast %cst_69 : f32 to vector<12x1xf32>
    %145 = arith.cmpf one, %143, %144 : vector<12x1xf32>
    %cst_70 = arith.constant 0.000000e+00 : f32
    %146 = vector.shape_cast %145 : vector<12x1xi1> to vector<12x1xi1>
    %147 = vector.broadcast %146 : vector<12x1xi1> to vector<12x32xi1>
    %148 = vector.broadcast %cst_70 : f32 to vector<12x32xf32>
    %149 = arith.select %147, %148, %142 : vector<12x32xi1>, vector<12x32xf32>
    %150 = vector.shape_cast %149 : vector<12x32xf32> to vector<3x4x32xf32>
    %151 = vector.shape_cast %150 : vector<3x4x32xf32> to vector<12x32xf32>
    %c0_71 = arith.constant 0 : index
    %c0_72 = arith.constant 0 : index
    %152 = vector.load %arg9[%c0_71, %c0_72] : memref<32x32xf32, #tpu.memory_space<vmem>>, vector<32x32xf32>
    %cst_73 = arith.constant dense<0.000000e+00> : vector<12x32xf32>
    %153 = tpu.matmul %151, %152, %cst_73 {dimension_numbers = #tpu.dot_dimension_numbers<[1], [0], [0], [1], [0, 0, 1, 1], [], []>} : vector<12x32xf32>, vector<32x32xf32>, vector<12x32xf32> -> vector<12x32xf32>
    %c0_74 = arith.constant 0 : index
    %c0_75 = arith.constant 0 : index
    %154 = vector.load %arg10[%c0_74, %c0_75] : memref<1x32xf32, #tpu.memory_space<vmem>>, vector<1x32xf32>
    %155 = vector.broadcast %154 : vector<1x32xf32> to vector<12x32xf32>
    %156 = arith.addf %153, %155 : vector<12x32xf32>
    %cst_76 = arith.constant 0.000000e+00 : f32
    %157 = vector.broadcast %cst_76 : f32 to vector<12x32xf32>
    %158 = arith.maximumf %156, %157 : vector<12x32xf32>
    %c0_77 = arith.constant 0 : index
    %c0_78 = arith.constant 0 : index
    %159 = vector.load %arg11[%c0_77, %c0_78] : memref<32x96xf32, #tpu.memory_space<vmem>>, vector<32x96xf32>
    %cst_79 = arith.constant dense<0.000000e+00> : vector<12x96xf32>
    %160 = tpu.matmul %158, %159, %cst_79 {dimension_numbers = #tpu.dot_dimension_numbers<[1], [0], [0], [1], [0, 0, 1, 1], [], []>} : vector<12x32xf32>, vector<32x96xf32>, vector<12x96xf32> -> vector<12x96xf32>
    %c0_80 = arith.constant 0 : index
    %c0_81 = arith.constant 0 : index
    %161 = vector.load %arg12[%c0_80, %c0_81] : memref<1x96xf32, #tpu.memory_space<vmem>>, vector<1x96xf32>
    %162 = vector.broadcast %161 : vector<1x96xf32> to vector<12x96xf32>
    %163 = arith.addf %160, %162 : vector<12x96xf32>
    %164 = vector.shape_cast %163 : vector<12x96xf32> to vector<3x4x96xf32>
    %c0_82 = arith.constant 0 : index
    %c0_83 = arith.constant 0 : index
    %c0_84 = arith.constant 0 : index
    %165 = vector.load %arg13[%c0_82, %c0_83, %c0_84] : memref<3x4x96xf32, #tpu.memory_space<vmem>>, vector<3x4x96xf32>
    tpu.vector_store %arg13[%c0_82, %c0_83, %c0_84], %164 {strides = array<i32>} : memref<3x4x96xf32, #tpu.memory_space<vmem>>, vector<3x4x96xf32>,
    return
  }
  func.func @transform_0(%arg0: i32) -> (i32, i32, i32) {
    %c0_i32 = arith.constant 0 : i32
    %c0_i32_0 = arith.constant 0 : i32
    %c0_i32_1 = arith.constant 0 : i32
    return %arg0, %c0_i32, %c0_i32_0 : i32, i32, i32
  }
  func.func @transform_1(%arg0: i32) -> (i32, i32, i32) {
    %c0_i32 = arith.constant 0 : i32
    %c0_i32_0 = arith.constant 0 : i32
    %c0_i32_1 = arith.constant 0 : i32
    return %arg0, %c0_i32, %c0_i32_0 : i32, i32, i32
  }
  func.func @transform_2(%arg0: i32) -> (i32, i32, i32) {
    %c0_i32 = arith.constant 0 : i32
    %c0_i32_0 = arith.constant 0 : i32
    %c0_i32_1 = arith.constant 0 : i32
    return %arg0, %c0_i32, %c0_i32_0 : i32, i32, i32
  }
  func.func @transform_3(%arg0: i32) -> (i32, i32) {
    %c0_i32 = arith.constant 0 : i32
    %c0_i32_0 = arith.constant 0 : i32
    %c0_i32_1 = arith.constant 0 : i32
    return %c0_i32, %c0_i32_0 : i32, i32
  }
  func.func @transform_4(%arg0: i32) -> (i32, i32) {
    %c0_i32 = arith.constant 0 : i32
    %c0_i32_0 = arith.constant 0 : i32
    %c0_i32_1 = arith.constant 0 : i32
    return %c0_i32, %c0_i32_0 : i32, i32
  }
  func.func @transform_5(%arg0: i32) -> (i32, i32) {
    %c0_i32 = arith.constant 0 : i32
    %c0_i32_0 = arith.constant 0 : i32
    %c0_i32_1 = arith.constant 0 : i32
    return %c0_i32, %c0_i32_0 : i32, i32
  }
  func.func @transform_6(%arg0: i32) -> (i32, i32) {
    %c0_i32 = arith.constant 0 : i32
    %c0_i32_0 = arith.constant 0 : i32
    %c0_i32_1 = arith.constant 0 : i32
    return %c0_i32, %c0_i32_0 : i32, i32
  }
  func.func @transform_7(%arg0: i32) -> (i32, i32) {
    %c0_i32 = arith.constant 0 : i32
    %c0_i32_0 = arith.constant 0 : i32
    %c0_i32_1 = arith.constant 0 : i32
    return %c0_i32, %c0_i32_0 : i32, i32
  }
  func.func @transform_8(%arg0: i32) -> (i32, i32) {
    %c0_i32 = arith.constant 0 : i32
    %c0_i32_0 = arith.constant 0 : i32
    %c0_i32_1 = arith.constant 0 : i32
    return %c0_i32, %c0_i32_0 : i32, i32
  }
  func.func @transform_9(%arg0: i32) -> (i32, i32) {
    %c0_i32 = arith.constant 0 : i32
    %c0_i32_0 = arith.constant 0 : i32
    %c0_i32_1 = arith.constant 0 : i32
    return %c0_i32, %c0_i32_0 : i32, i32
  }
  func.func @transform_10(%arg0: i32) -> (i32, i32) {
    %c0_i32 = arith.constant 0 : i32
    %c0_i32_0 = arith.constant 0 : i32
    %c0_i32_1 = arith.constant 0 : i32
    return %c0_i32, %c0_i32_0 : i32, i32
  }
  func.func @transform_11(%arg0: i32) -> (i32, i32) {
    %c0_i32 = arith.constant 0 : i32
    %c0_i32_0 = arith.constant 0 : i32
    %c0_i32_1 = arith.constant 0 : i32
    return %c0_i32, %c0_i32_0 : i32, i32
  }
  func.func @transform_12(%arg0: i32) -> (i32, i32, i32) {
    %c0_i32 = arith.constant 0 : i32
    %c0_i32_0 = arith.constant 0 : i32
    %c0_i32_1 = arith.constant 0 : i32
    return %arg0, %c0_i32, %c0_i32_0 : i32, i32, i32
  }
}

module attributes {stable_mosaic.version = 11 : i64} {
  func.func @_gru_kernel(%arg0: i32, %arg1: memref<2x1x4x96xf32, #tpu.memory_space<vmem>>, %arg2: memref<8x32xf32, #tpu.memory_space<vmem>>, %arg3: memref<32x96xf32, #tpu.memory_space<vmem>>, %arg4: memref<1x96xf32, #tpu.memory_space<vmem>>, %arg5: memref<2x1x4x32xf32, #tpu.memory_space<vmem>>, %arg6: memref<8x32xf32, #tpu.memory_space<vmem>>) attributes {dimension_semantics = [#tpu.dimension_semantics<arbitrary>], iteration_bounds = array<i64: 3>, scalar_prefetch = 0 : i64, scratch_operands = 1 : i64, tpu.core_type = #tpu.core_type<tc>, window_params = [{transform_indices = @transform_0, window_bounds = array<i64: 2, 1, 4, 96>}, {pipeline_mode = #tpu.pipeline_mode<synchronous>, transform_indices = @transform_1, window_bounds = array<i64: 8, 32>}, {pipeline_mode = #tpu.pipeline_mode<synchronous>, transform_indices = @transform_2, window_bounds = array<i64: 32, 96>}, {pipeline_mode = #tpu.pipeline_mode<synchronous>, transform_indices = @transform_3, window_bounds = array<i64: 1, 96>}, {transform_indices = @transform_4, window_bounds = array<i64: 2, 1, 4, 32>}]} {
    %c0_i32 = arith.constant 0 : i32
    %0 = arith.cmpi eq, %arg0, %c0_i32 : i32
    %1 = arith.extui %0 : i1 to i32
    %c0_i32_0 = arith.constant 0 : i32
    %2 = arith.cmpi ne, %1, %c0_i32_0 : i32
    scf.if %2 {
      %c0_19 = arith.constant 0 : index
      %c0_20 = arith.constant 0 : index
      %43 = vector.load %arg2[%c0_19, %c0_20] : memref<8x32xf32, #tpu.memory_space<vmem>>, vector<8x32xf32>
      %c0_21 = arith.constant 0 : index
      %c0_22 = arith.constant 0 : index
      %44 = vector.load %arg6[%c0_21, %c0_22] : memref<8x32xf32, #tpu.memory_space<vmem>>, vector<8x32xf32>
      tpu.vector_store %arg6[%c0_21, %c0_22], %43 {strides = array<i32>} : memref<8x32xf32, #tpu.memory_space<vmem>>, vector<8x32xf32>,
    } else {
    }
    %c0 = arith.constant 0 : index
    %c0_1 = arith.constant 0 : index
    %c0_2 = arith.constant 0 : index
    %c0_3 = arith.constant 0 : index
    %3 = vector.load %arg1[%c0, %c0_1, %c0_2, %c0_3] : memref<2x1x4x96xf32, #tpu.memory_space<vmem>>, vector<2x1x4x96xf32>
    %4 = vector.shape_cast %3 : vector<2x1x4x96xf32> to vector<2x4x96xf32>
    %5 = vector.shape_cast %4 : vector<2x4x96xf32> to vector<8x96xf32>
    %c0_4 = arith.constant 0 : index
    %c0_5 = arith.constant 0 : index
    %6 = vector.load %arg6[%c0_4, %c0_5] : memref<8x32xf32, #tpu.memory_space<vmem>>, vector<8x32xf32>
    %c0_6 = arith.constant 0 : index
    %c0_7 = arith.constant 0 : index
    %7 = vector.load %arg3[%c0_6, %c0_7] : memref<32x96xf32, #tpu.memory_space<vmem>>, vector<32x96xf32>
    %cst = arith.constant dense<0.000000e+00> : vector<8x96xf32>
    %8 = tpu.matmul %6, %7, %cst {dimension_numbers = #tpu.dot_dimension_numbers<[1], [0], [0], [1], [0, 0, 1, 1], [], []>} : vector<8x32xf32>, vector<32x96xf32>, vector<8x96xf32> -> vector<8x96xf32>
    %c0_8 = arith.constant 0 : index
    %c0_9 = arith.constant 0 : index
    %9 = vector.load %arg4[%c0_8, %c0_9] : memref<1x96xf32, #tpu.memory_space<vmem>>, vector<1x96xf32>
    %10 = vector.broadcast %9 : vector<1x96xf32> to vector<8x96xf32>
    %11 = arith.addf %8, %10 : vector<8x96xf32>
    %12 = vector.extract_strided_slice %5 {offsets = [0, 0], sizes = [8, 32], strides = [1, 1]} : vector<8x96xf32> to vector<8x32xf32>
    %13 = vector.extract_strided_slice %11 {offsets = [0, 0], sizes = [8, 32], strides = [1, 1]} : vector<8x96xf32> to vector<8x32xf32>
    %14 = arith.addf %12, %13 : vector<8x32xf32>
    %15 = arith.negf %14 : vector<8x32xf32>
    %16 = math.exp %15 : vector<8x32xf32>
    %cst_10 = arith.constant 1.000000e+00 : f32
    %17 = vector.broadcast %cst_10 : f32 to vector<8x32xf32>
    %18 = arith.addf %17, %16 : vector<8x32xf32>
    %19 = arith.divf %17, %18 : vector<8x32xf32>
    %20 = vector.extract_strided_slice %5 {offsets = [0, 32], sizes = [8, 32], strides = [1, 1]} : vector<8x96xf32> to vector<8x32xf32>
    %21 = vector.extract_strided_slice %11 {offsets = [0, 32], sizes = [8, 32], strides = [1, 1]} : vector<8x96xf32> to vector<8x32xf32>
    %22 = arith.addf %20, %21 : vector<8x32xf32>
    %23 = arith.negf %22 : vector<8x32xf32>
    %24 = math.exp %23 : vector<8x32xf32>
    %cst_11 = arith.constant 1.000000e+00 : f32
    %25 = vector.broadcast %cst_11 : f32 to vector<8x32xf32>
    %26 = arith.addf %25, %24 : vector<8x32xf32>
    %27 = arith.divf %25, %26 : vector<8x32xf32>
    %28 = vector.extract_strided_slice %5 {offsets = [0, 64], sizes = [8, 32], strides = [1, 1]} : vector<8x96xf32> to vector<8x32xf32>
    %29 = vector.extract_strided_slice %11 {offsets = [0, 64], sizes = [8, 32], strides = [1, 1]} : vector<8x96xf32> to vector<8x32xf32>
    %30 = arith.mulf %19, %29 : vector<8x32xf32>
    %31 = arith.addf %28, %30 : vector<8x32xf32>
    %32 = math.tanh %31 : vector<8x32xf32>
    %cst_12 = arith.constant 1.000000e+00 : f32
    %33 = vector.broadcast %cst_12 : f32 to vector<8x32xf32>
    %34 = arith.subf %33, %27 : vector<8x32xf32>
    %35 = arith.mulf %34, %32 : vector<8x32xf32>
    %36 = arith.mulf %27, %6 : vector<8x32xf32>
    %37 = arith.addf %35, %36 : vector<8x32xf32>
    %c0_13 = arith.constant 0 : index
    %c0_14 = arith.constant 0 : index
    %38 = vector.load %arg6[%c0_13, %c0_14] : memref<8x32xf32, #tpu.memory_space<vmem>>, vector<8x32xf32>
    tpu.vector_store %arg6[%c0_13, %c0_14], %37 {strides = array<i32>} : memref<8x32xf32, #tpu.memory_space<vmem>>, vector<8x32xf32>,
    %39 = vector.shape_cast %37 : vector<8x32xf32> to vector<2x4x32xf32>
    %c0_15 = arith.constant 0 : index
    %c0_16 = arith.constant 0 : index
    %c0_17 = arith.constant 0 : index
    %c0_18 = arith.constant 0 : index
    %40 = vector.load %arg5[%c0_15, %c0_16, %c0_17, %c0_18] : memref<2x1x4x32xf32, #tpu.memory_space<vmem>>, vector<2x1x4x32xf32>
    %41 = vector.shape_cast %40 : vector<2x1x4x32xf32> to vector<2x4x32xf32>
    %42 = vector.shape_cast %39 : vector<2x4x32xf32> to vector<2x1x4x32xf32>
    tpu.vector_store %arg5[%c0_15, %c0_16, %c0_17, %c0_18], %42 {strides = array<i32>} : memref<2x1x4x32xf32, #tpu.memory_space<vmem>>, vector<2x1x4x32xf32>,
    return
  }
  func.func @transform_0(%arg0: i32) -> (i32, i32, i32, i32) {
    %c0_i32 = arith.constant 0 : i32
    %c0_i32_0 = arith.constant 0 : i32
    %c0_i32_1 = arith.constant 0 : i32
    %c0_i32_2 = arith.constant 0 : i32
    return %c0_i32, %arg0, %c0_i32_0, %c0_i32_1 : i32, i32, i32, i32
  }
  func.func @transform_1(%arg0: i32) -> (i32, i32) {
    %c0_i32 = arith.constant 0 : i32
    %c0_i32_0 = arith.constant 0 : i32
    %c0_i32_1 = arith.constant 0 : i32
    return %c0_i32, %c0_i32_0 : i32, i32
  }
  func.func @transform_2(%arg0: i32) -> (i32, i32) {
    %c0_i32 = arith.constant 0 : i32
    %c0_i32_0 = arith.constant 0 : i32
    %c0_i32_1 = arith.constant 0 : i32
    return %c0_i32, %c0_i32_0 : i32, i32
  }
  func.func @transform_3(%arg0: i32) -> (i32, i32) {
    %c0_i32 = arith.constant 0 : i32
    %c0_i32_0 = arith.constant 0 : i32
    %c0_i32_1 = arith.constant 0 : i32
    return %c0_i32, %c0_i32_0 : i32, i32
  }
  func.func @transform_4(%arg0: i32) -> (i32, i32, i32, i32) {
    %c0_i32 = arith.constant 0 : i32
    %c0_i32_0 = arith.constant 0 : i32
    %c0_i32_1 = arith.constant 0 : i32
    %c0_i32_2 = arith.constant 0 : i32
    return %c0_i32, %arg0, %c0_i32_0, %c0_i32_1 : i32, i32, i32, i32
  }
}

module attributes {stable_mosaic.version = 11 : i64} {
  func.func @_gat_head_kernel(%arg0: i32, %arg1: memref<3x4x32xf32, #tpu.memory_space<vmem>>, %arg2: memref<3x4x4xf32, #tpu.memory_space<vmem>>, %arg3: memref<3x4x1xf32, #tpu.memory_space<vmem>>, %arg4: memref<3x4x4xf32, #tpu.memory_space<vmem>>, %arg5: memref<32x96xf32, #tpu.memory_space<vmem>>, %arg6: memref<32x32xf32, #tpu.memory_space<vmem>>, %arg7: memref<1x32xf32, #tpu.memory_space<vmem>>, %arg8: memref<32x16xf32, #tpu.memory_space<vmem>>, %arg9: memref<32x16xf32, #tpu.memory_space<vmem>>, %arg10: memref<1x16xf32, #tpu.memory_space<vmem>>, %arg11: memref<16x16xf32, #tpu.memory_space<vmem>>, %arg12: memref<1x16xf32, #tpu.memory_space<vmem>>, %arg13: memref<1x16xf32, #tpu.memory_space<vmem>>, %arg14: memref<1x1xf32, #tpu.memory_space<vmem>>, %arg15: memref<32x96xf32, #tpu.memory_space<vmem>>, %arg16: memref<32x32xf32, #tpu.memory_space<vmem>>, %arg17: memref<1x32xf32, #tpu.memory_space<vmem>>, %arg18: memref<64x6xf32, #tpu.memory_space<vmem>>, %arg19: memref<1x6xf32, #tpu.memory_space<vmem>>, %arg20: memref<3x4x6xf32, #tpu.memory_space<vmem>>) attributes {dimension_semantics = [#tpu.dimension_semantics<parallel>], iteration_bounds = array<i64: 2>, scalar_prefetch = 0 : i64, scratch_operands = 0 : i64, tpu.core_type = #tpu.core_type<tc>, window_params = [{transform_indices = @transform_0, window_bounds = array<i64: 3, 4, 32>}, {transform_indices = @transform_1, window_bounds = array<i64: 3, 4, 4>}, {transform_indices = @transform_2, window_bounds = array<i64: 3, 4, 1>}, {transform_indices = @transform_3, window_bounds = array<i64: 3, 4, 4>}, {pipeline_mode = #tpu.pipeline_mode<synchronous>, transform_indices = @transform_4, window_bounds = array<i64: 32, 96>}, {pipeline_mode = #tpu.pipeline_mode<synchronous>, transform_indices = @transform_5, window_bounds = array<i64: 32, 32>}, {pipeline_mode = #tpu.pipeline_mode<synchronous>, transform_indices = @transform_6, window_bounds = array<i64: 1, 32>}, {pipeline_mode = #tpu.pipeline_mode<synchronous>, transform_indices = @transform_7, window_bounds = array<i64: 32, 16>}, {pipeline_mode = #tpu.pipeline_mode<synchronous>, transform_indices = @transform_8, window_bounds = array<i64: 32, 16>}, {pipeline_mode = #tpu.pipeline_mode<synchronous>, transform_indices = @transform_9, window_bounds = array<i64: 1, 16>}, {pipeline_mode = #tpu.pipeline_mode<synchronous>, transform_indices = @transform_10, window_bounds = array<i64: 16, 16>}, {pipeline_mode = #tpu.pipeline_mode<synchronous>, transform_indices = @transform_11, window_bounds = array<i64: 1, 16>}, {pipeline_mode = #tpu.pipeline_mode<synchronous>, transform_indices = @transform_12, window_bounds = array<i64: 1, 16>}, {pipeline_mode = #tpu.pipeline_mode<synchronous>, transform_indices = @transform_13, window_bounds = array<i64: 1, 1>}, {pipeline_mode = #tpu.pipeline_mode<synchronous>, transform_indices = @transform_14, window_bounds = array<i64: 32, 96>}, {pipeline_mode = #tpu.pipeline_mode<synchronous>, transform_indices = @transform_15, window_bounds = array<i64: 32, 32>}, {pipeline_mode = #tpu.pipeline_mode<synchronous>, transform_indices = @transform_16, window_bounds = array<i64: 1, 32>}, {pipeline_mode = #tpu.pipeline_mode<synchronous>, transform_indices = @transform_17, window_bounds = array<i64: 64, 6>}, {pipeline_mode = #tpu.pipeline_mode<synchronous>, transform_indices = @transform_18, window_bounds = array<i64: 1, 6>}, {transform_indices = @transform_19, window_bounds = array<i64: 3, 4, 6>}]} {
    %c0 = arith.constant 0 : index
    %c0_0 = arith.constant 0 : index
    %c0_1 = arith.constant 0 : index
    %0 = vector.load %arg1[%c0, %c0_0, %c0_1] : memref<3x4x32xf32, #tpu.memory_space<vmem>>, vector<3x4x32xf32>
    %c0_2 = arith.constant 0 : index
    %c0_3 = arith.constant 0 : index
    %c0_4 = arith.constant 0 : index
    %1 = vector.load %arg2[%c0_2, %c0_3, %c0_4] : memref<3x4x4xf32, #tpu.memory_space<vmem>>, vector<3x4x4xf32>
    %c0_5 = arith.constant 0 : index
    %c0_6 = arith.constant 0 : index
    %c0_7 = arith.constant 0 : index
    %2 = vector.load %arg3[%c0_5, %c0_6, %c0_7] : memref<3x4x1xf32, #tpu.memory_space<vmem>>, vector<3x4x1xf32>
    %c0_8 = arith.constant 0 : index
    %c0_9 = arith.constant 0 : index
    %c0_10 = arith.constant 0 : index
    %3 = vector.load %arg4[%c0_8, %c0_9, %c0_10] : memref<3x4x4xf32, #tpu.memory_space<vmem>>, vector<3x4x4xf32>
    %c0_11 = arith.constant 0 : index
    %c0_12 = arith.constant 0 : index
    %4 = vector.load %arg5[%c0_11, %c0_12] : memref<32x96xf32, #tpu.memory_space<vmem>>, vector<32x96xf32>
    %c0_13 = arith.constant 0 : index
    %c0_14 = arith.constant 0 : index
    %5 = vector.load %arg6[%c0_13, %c0_14] : memref<32x32xf32, #tpu.memory_space<vmem>>, vector<32x32xf32>
    %c0_15 = arith.constant 0 : index
    %c0_16 = arith.constant 0 : index
    %6 = vector.load %arg7[%c0_15, %c0_16] : memref<1x32xf32, #tpu.memory_space<vmem>>, vector<1x32xf32>
    %7 = vector.shape_cast %0 : vector<3x4x32xf32> to vector<12x32xf32>
    %cst = arith.constant dense<0.000000e+00> : vector<12x96xf32>
    %8 = tpu.matmul %7, %4, %cst {dimension_numbers = #tpu.dot_dimension_numbers<[1], [0], [0], [1], [0, 0, 1, 1], [], []>} : vector<12x32xf32>, vector<32x96xf32>, vector<12x96xf32> -> vector<12x96xf32>
    %9 = vector.shape_cast %8 : vector<12x96xf32> to vector<3x4x96xf32>
    %10 = vector.extract_strided_slice %9 {offsets = [0, 0, 0], sizes = [3, 4, 8], strides = [1, 1, 1]} : vector<3x4x96xf32> to vector<3x4x8xf32>
    %11 = vector.extract_strided_slice %9 {offsets = [0, 0, 32], sizes = [3, 4, 8], strides = [1, 1, 1]} : vector<3x4x96xf32> to vector<3x4x8xf32>
    %12 = vector.extract_strided_slice %9 {offsets = [0, 0, 64], sizes = [3, 4, 8], strides = [1, 1, 1]} : vector<3x4x96xf32> to vector<3x4x8xf32>
    "tpu.trace_start"() <{level = 10 : i32, message = "bqd,bkd->bqk"}> : () -> ()
    %cst_17 = arith.constant dense<0.000000e+00> : vector<3x4x4xf32>
    %13 = tpu.matmul %10, %11, %cst_17 {dimension_numbers = #tpu.dot_dimension_numbers<[2], [2], [1], [1], [0, 0, 0, 1, 1, 1], [0], [0]>} : vector<3x4x8xf32>, vector<3x4x8xf32>, vector<3x4x4xf32> -> vector<3x4x4xf32>
    "tpu.trace_stop"() : () -> ()
    %cst_18 = arith.constant 0.353553385 : f32
    %14 = vector.broadcast %cst_18 : f32 to vector<3x4x4xf32>
    %15 = arith.mulf %13, %14 : vector<3x4x4xf32>
    %cst_19 = arith.constant 0.000000e+00 : f32
    %16 = vector.broadcast %cst_19 : f32 to vector<3x4x4xf32>
    %17 = arith.cmpf one, %1, %16 : vector<3x4x4xf32>
    %cst_20 = arith.constant 0xFF800000 : f32
    %18 = vector.broadcast %cst_20 : f32 to vector<3x4x4xf32>
    %19 = arith.select %17, %18, %15 : vector<3x4x4xi1>, vector<3x4x4xf32>
    %cst_21 = arith.constant dense<0xFF800000> : vector<3x4xf32>
    %20 = vector.multi_reduction <maximumf>, %19, %cst_21 [2] : vector<3x4x4xf32> to vector<3x4xf32>
    %21 = vector.shape_cast %20 : vector<3x4xf32> to vector<3x4x1xf32>
    %cst_22 = arith.constant 0xFF800000 : f32
    %22 = vector.broadcast %cst_22 : f32 to vector<3x4x1xf32>
    %23 = arith.cmpf oeq, %21, %22 : vector<3x4x1xf32>
    %cst_23 = arith.constant 0.000000e+00 : f32
    %24 = vector.broadcast %cst_23 : f32 to vector<3x4x1xf32>
    %25 = arith.select %23, %24, %21 : vector<3x4x1xi1>, vector<3x4x1xf32>
    %26 = vector.broadcast %25 : vector<3x4x1xf32> to vector<3x4x4xf32>
    %27 = arith.subf %19, %26 : vector<3x4x4xf32>
    %28 = math.exp %27 : vector<3x4x4xf32>
    %cst_24 = arith.constant dense<0.000000e+00> : vector<3x4xf32>
    %29 = vector.multi_reduction <add>, %28, %cst_24 [2] : vector<3x4x4xf32> to vector<3x4xf32>
    %30 = vector.shape_cast %29 : vector<3x4xf32> to vector<3x4x1xf32>
    %cst_25 = arith.constant 0.000000e+00 : f32
    %31 = vector.broadcast %cst_25 : f32 to vector<3x4x1xf32>
    %32 = arith.cmpf oeq, %30, %31 : vector<3x4x1xf32>
    %cst_26 = arith.constant 1.000000e+00 : f32
    %cst_27 = arith.constant 0.000000e+00 : f32
    %33 = vector.broadcast %cst_26 : f32 to vector<3x4x1xf32>
    %34 = vector.broadcast %cst_27 : f32 to vector<3x4x1xf32>
    %35 = arith.select %32, %33, %34 : vector<3x4x1xi1>, vector<3x4x1xf32>
    %36 = arith.addf %30, %35 : vector<3x4x1xf32>
    %37 = vector.broadcast %36 : vector<3x4x1xf32> to vector<3x4x4xf32>
    %38 = arith.divf %28, %37 : vector<3x4x4xf32>
    "tpu.trace_start"() <{level = 10 : i32, message = "bqk,bkd->bqd"}> : () -> ()
    %cst_28 = arith.constant dense<0.000000e+00> : vector<3x4x8xf32>
    %39 = tpu.matmul %38, %12, %cst_28 {dimension_numbers = #tpu.dot_dimension_numbers<[2], [1], [1], [2], [0, 0, 0, 1, 1, 2], [0], [0]>} : vector<3x4x4xf32>, vector<3x4x8xf32>, vector<3x4x8xf32> -> vector<3x4x8xf32>
    "tpu.trace_stop"() : () -> ()
    %40 = vector.extract_strided_slice %9 {offsets = [0, 0, 8], sizes = [3, 4, 8], strides = [1, 1, 1]} : vector<3x4x96xf32> to vector<3x4x8xf32>
    %41 = vector.extract_strided_slice %9 {offsets = [0, 0, 40], sizes = [3, 4, 8], strides = [1, 1, 1]} : vector<3x4x96xf32> to vector<3x4x8xf32>
    %42 = vector.extract_strided_slice %9 {offsets = [0, 0, 72], sizes = [3, 4, 8], strides = [1, 1, 1]} : vector<3x4x96xf32> to vector<3x4x8xf32>
    "tpu.trace_start"() <{level = 10 : i32, message = "bqd,bkd->bqk"}> : () -> ()
    %cst_29 = arith.constant dense<0.000000e+00> : vector<3x4x4xf32>
    %43 = tpu.matmul %40, %41, %cst_29 {dimension_numbers = #tpu.dot_dimension_numbers<[2], [2], [1], [1], [0, 0, 0, 1, 1, 1], [0], [0]>} : vector<3x4x8xf32>, vector<3x4x8xf32>, vector<3x4x4xf32> -> vector<3x4x4xf32>
    "tpu.trace_stop"() : () -> ()
    %cst_30 = arith.constant 0.353553385 : f32
    %44 = vector.broadcast %cst_30 : f32 to vector<3x4x4xf32>
    %45 = arith.mulf %43, %44 : vector<3x4x4xf32>
    %cst_31 = arith.constant 0.000000e+00 : f32
    %46 = vector.broadcast %cst_31 : f32 to vector<3x4x4xf32>
    %47 = arith.cmpf one, %1, %46 : vector<3x4x4xf32>
    %cst_32 = arith.constant 0xFF800000 : f32
    %48 = vector.broadcast %cst_32 : f32 to vector<3x4x4xf32>
    %49 = arith.select %47, %48, %45 : vector<3x4x4xi1>, vector<3x4x4xf32>
    %cst_33 = arith.constant dense<0xFF800000> : vector<3x4xf32>
    %50 = vector.multi_reduction <maximumf>, %49, %cst_33 [2] : vector<3x4x4xf32> to vector<3x4xf32>
    %51 = vector.shape_cast %50 : vector<3x4xf32> to vector<3x4x1xf32>
    %cst_34 = arith.constant 0xFF800000 : f32
    %52 = vector.broadcast %cst_34 : f32 to vector<3x4x1xf32>
    %53 = arith.cmpf oeq, %51, %52 : vector<3x4x1xf32>
    %cst_35 = arith.constant 0.000000e+00 : f32
    %54 = vector.broadcast %cst_35 : f32 to vector<3x4x1xf32>
    %55 = arith.select %53, %54, %51 : vector<3x4x1xi1>, vector<3x4x1xf32>
    %56 = vector.broadcast %55 : vector<3x4x1xf32> to vector<3x4x4xf32>
    %57 = arith.subf %49, %56 : vector<3x4x4xf32>
    %58 = math.exp %57 : vector<3x4x4xf32>
    %cst_36 = arith.constant dense<0.000000e+00> : vector<3x4xf32>
    %59 = vector.multi_reduction <add>, %58, %cst_36 [2] : vector<3x4x4xf32> to vector<3x4xf32>
    %60 = vector.shape_cast %59 : vector<3x4xf32> to vector<3x4x1xf32>
    %cst_37 = arith.constant 0.000000e+00 : f32
    %61 = vector.broadcast %cst_37 : f32 to vector<3x4x1xf32>
    %62 = arith.cmpf oeq, %60, %61 : vector<3x4x1xf32>
    %cst_38 = arith.constant 1.000000e+00 : f32
    %cst_39 = arith.constant 0.000000e+00 : f32
    %63 = vector.broadcast %cst_38 : f32 to vector<3x4x1xf32>
    %64 = vector.broadcast %cst_39 : f32 to vector<3x4x1xf32>
    %65 = arith.select %62, %63, %64 : vector<3x4x1xi1>, vector<3x4x1xf32>
    %66 = arith.addf %60, %65 : vector<3x4x1xf32>
    %67 = vector.broadcast %66 : vector<3x4x1xf32> to vector<3x4x4xf32>
    %68 = arith.divf %58, %67 : vector<3x4x4xf32>
    "tpu.trace_start"() <{level = 10 : i32, message = "bqk,bkd->bqd"}> : () -> ()
    %cst_40 = arith.constant dense<0.000000e+00> : vector<3x4x8xf32>
    %69 = tpu.matmul %68, %42, %cst_40 {dimension_numbers = #tpu.dot_dimension_numbers<[2], [1], [1], [2], [0, 0, 0, 1, 1, 2], [0], [0]>} : vector<3x4x4xf32>, vector<3x4x8xf32>, vector<3x4x8xf32> -> vector<3x4x8xf32>
    "tpu.trace_stop"() : () -> ()
    %70 = vector.extract_strided_slice %9 {offsets = [0, 0, 16], sizes = [3, 4, 8], strides = [1, 1, 1]} : vector<3x4x96xf32> to vector<3x4x8xf32>
    %71 = vector.extract_strided_slice %9 {offsets = [0, 0, 48], sizes = [3, 4, 8], strides = [1, 1, 1]} : vector<3x4x96xf32> to vector<3x4x8xf32>
    %72 = vector.extract_strided_slice %9 {offsets = [0, 0, 80], sizes = [3, 4, 8], strides = [1, 1, 1]} : vector<3x4x96xf32> to vector<3x4x8xf32>
    "tpu.trace_start"() <{level = 10 : i32, message = "bqd,bkd->bqk"}> : () -> ()
    %cst_41 = arith.constant dense<0.000000e+00> : vector<3x4x4xf32>
    %73 = tpu.matmul %70, %71, %cst_41 {dimension_numbers = #tpu.dot_dimension_numbers<[2], [2], [1], [1], [0, 0, 0, 1, 1, 1], [0], [0]>} : vector<3x4x8xf32>, vector<3x4x8xf32>, vector<3x4x4xf32> -> vector<3x4x4xf32>
    "tpu.trace_stop"() : () -> ()
    %cst_42 = arith.constant 0.353553385 : f32
    %74 = vector.broadcast %cst_42 : f32 to vector<3x4x4xf32>
    %75 = arith.mulf %73, %74 : vector<3x4x4xf32>
    %cst_43 = arith.constant 0.000000e+00 : f32
    %76 = vector.broadcast %cst_43 : f32 to vector<3x4x4xf32>
    %77 = arith.cmpf one, %1, %76 : vector<3x4x4xf32>
    %cst_44 = arith.constant 0xFF800000 : f32
    %78 = vector.broadcast %cst_44 : f32 to vector<3x4x4xf32>
    %79 = arith.select %77, %78, %75 : vector<3x4x4xi1>, vector<3x4x4xf32>
    %cst_45 = arith.constant dense<0xFF800000> : vector<3x4xf32>
    %80 = vector.multi_reduction <maximumf>, %79, %cst_45 [2] : vector<3x4x4xf32> to vector<3x4xf32>
    %81 = vector.shape_cast %80 : vector<3x4xf32> to vector<3x4x1xf32>
    %cst_46 = arith.constant 0xFF800000 : f32
    %82 = vector.broadcast %cst_46 : f32 to vector<3x4x1xf32>
    %83 = arith.cmpf oeq, %81, %82 : vector<3x4x1xf32>
    %cst_47 = arith.constant 0.000000e+00 : f32
    %84 = vector.broadcast %cst_47 : f32 to vector<3x4x1xf32>
    %85 = arith.select %83, %84, %81 : vector<3x4x1xi1>, vector<3x4x1xf32>
    %86 = vector.broadcast %85 : vector<3x4x1xf32> to vector<3x4x4xf32>
    %87 = arith.subf %79, %86 : vector<3x4x4xf32>
    %88 = math.exp %87 : vector<3x4x4xf32>
    %cst_48 = arith.constant dense<0.000000e+00> : vector<3x4xf32>
    %89 = vector.multi_reduction <add>, %88, %cst_48 [2] : vector<3x4x4xf32> to vector<3x4xf32>
    %90 = vector.shape_cast %89 : vector<3x4xf32> to vector<3x4x1xf32>
    %cst_49 = arith.constant 0.000000e+00 : f32
    %91 = vector.broadcast %cst_49 : f32 to vector<3x4x1xf32>
    %92 = arith.cmpf oeq, %90, %91 : vector<3x4x1xf32>
    %cst_50 = arith.constant 1.000000e+00 : f32
    %cst_51 = arith.constant 0.000000e+00 : f32
    %93 = vector.broadcast %cst_50 : f32 to vector<3x4x1xf32>
    %94 = vector.broadcast %cst_51 : f32 to vector<3x4x1xf32>
    %95 = arith.select %92, %93, %94 : vector<3x4x1xi1>, vector<3x4x1xf32>
    %96 = arith.addf %90, %95 : vector<3x4x1xf32>
    %97 = vector.broadcast %96 : vector<3x4x1xf32> to vector<3x4x4xf32>
    %98 = arith.divf %88, %97 : vector<3x4x4xf32>
    "tpu.trace_start"() <{level = 10 : i32, message = "bqk,bkd->bqd"}> : () -> ()
    %cst_52 = arith.constant dense<0.000000e+00> : vector<3x4x8xf32>
    %99 = tpu.matmul %98, %72, %cst_52 {dimension_numbers = #tpu.dot_dimension_numbers<[2], [1], [1], [2], [0, 0, 0, 1, 1, 2], [0], [0]>} : vector<3x4x4xf32>, vector<3x4x8xf32>, vector<3x4x8xf32> -> vector<3x4x8xf32>
    "tpu.trace_stop"() : () -> ()
    %100 = vector.extract_strided_slice %9 {offsets = [0, 0, 24], sizes = [3, 4, 8], strides = [1, 1, 1]} : vector<3x4x96xf32> to vector<3x4x8xf32>
    %101 = vector.extract_strided_slice %9 {offsets = [0, 0, 56], sizes = [3, 4, 8], strides = [1, 1, 1]} : vector<3x4x96xf32> to vector<3x4x8xf32>
    %102 = vector.extract_strided_slice %9 {offsets = [0, 0, 88], sizes = [3, 4, 8], strides = [1, 1, 1]} : vector<3x4x96xf32> to vector<3x4x8xf32>
    "tpu.trace_start"() <{level = 10 : i32, message = "bqd,bkd->bqk"}> : () -> ()
    %cst_53 = arith.constant dense<0.000000e+00> : vector<3x4x4xf32>
    %103 = tpu.matmul %100, %101, %cst_53 {dimension_numbers = #tpu.dot_dimension_numbers<[2], [2], [1], [1], [0, 0, 0, 1, 1, 1], [0], [0]>} : vector<3x4x8xf32>, vector<3x4x8xf32>, vector<3x4x4xf32> -> vector<3x4x4xf32>
    "tpu.trace_stop"() : () -> ()
    %cst_54 = arith.constant 0.353553385 : f32
    %104 = vector.broadcast %cst_54 : f32 to vector<3x4x4xf32>
    %105 = arith.mulf %103, %104 : vector<3x4x4xf32>
    %cst_55 = arith.constant 0.000000e+00 : f32
    %106 = vector.broadcast %cst_55 : f32 to vector<3x4x4xf32>
    %107 = arith.cmpf one, %1, %106 : vector<3x4x4xf32>
    %cst_56 = arith.constant 0xFF800000 : f32
    %108 = vector.broadcast %cst_56 : f32 to vector<3x4x4xf32>
    %109 = arith.select %107, %108, %105 : vector<3x4x4xi1>, vector<3x4x4xf32>
    %cst_57 = arith.constant dense<0xFF800000> : vector<3x4xf32>
    %110 = vector.multi_reduction <maximumf>, %109, %cst_57 [2] : vector<3x4x4xf32> to vector<3x4xf32>
    %111 = vector.shape_cast %110 : vector<3x4xf32> to vector<3x4x1xf32>
    %cst_58 = arith.constant 0xFF800000 : f32
    %112 = vector.broadcast %cst_58 : f32 to vector<3x4x1xf32>
    %113 = arith.cmpf oeq, %111, %112 : vector<3x4x1xf32>
    %cst_59 = arith.constant 0.000000e+00 : f32
    %114 = vector.broadcast %cst_59 : f32 to vector<3x4x1xf32>
    %115 = arith.select %113, %114, %111 : vector<3x4x1xi1>, vector<3x4x1xf32>
    %116 = vector.broadcast %115 : vector<3x4x1xf32> to vector<3x4x4xf32>
    %117 = arith.subf %109, %116 : vector<3x4x4xf32>
    %118 = math.exp %117 : vector<3x4x4xf32>
    %cst_60 = arith.constant dense<0.000000e+00> : vector<3x4xf32>
    %119 = vector.multi_reduction <add>, %118, %cst_60 [2] : vector<3x4x4xf32> to vector<3x4xf32>
    %120 = vector.shape_cast %119 : vector<3x4xf32> to vector<3x4x1xf32>
    %cst_61 = arith.constant 0.000000e+00 : f32
    %121 = vector.broadcast %cst_61 : f32 to vector<3x4x1xf32>
    %122 = arith.cmpf oeq, %120, %121 : vector<3x4x1xf32>
    %cst_62 = arith.constant 1.000000e+00 : f32
    %cst_63 = arith.constant 0.000000e+00 : f32
    %123 = vector.broadcast %cst_62 : f32 to vector<3x4x1xf32>
    %124 = vector.broadcast %cst_63 : f32 to vector<3x4x1xf32>
    %125 = arith.select %122, %123, %124 : vector<3x4x1xi1>, vector<3x4x1xf32>
    %126 = arith.addf %120, %125 : vector<3x4x1xf32>
    %127 = vector.broadcast %126 : vector<3x4x1xf32> to vector<3x4x4xf32>
    %128 = arith.divf %118, %127 : vector<3x4x4xf32>
    "tpu.trace_start"() <{level = 10 : i32, message = "bqk,bkd->bqd"}> : () -> ()
    %cst_64 = arith.constant dense<0.000000e+00> : vector<3x4x8xf32>
    %129 = tpu.matmul %128, %102, %cst_64 {dimension_numbers = #tpu.dot_dimension_numbers<[2], [1], [1], [2], [0, 0, 0, 1, 1, 2], [0], [0]>} : vector<3x4x4xf32>, vector<3x4x8xf32>, vector<3x4x8xf32> -> vector<3x4x8xf32>
    "tpu.trace_stop"() : () -> ()
    %130 = tpu.concatenate %39, %69, %99, %129 in 2 : vector<3x4x8xf32>, vector<3x4x8xf32>, vector<3x4x8xf32>, vector<3x4x8xf32> -> vector<3x4x32xf32>
    %131 = vector.shape_cast %130 : vector<3x4x32xf32> to vector<12x32xf32>
    %cst_65 = arith.constant dense<0.000000e+00> : vector<12x32xf32>
    %132 = tpu.matmul %131, %5, %cst_65 {dimension_numbers = #tpu.dot_dimension_numbers<[1], [0], [0], [1], [0, 0, 1, 1], [], []>} : vector<12x32xf32>, vector<32x32xf32>, vector<12x32xf32> -> vector<12x32xf32>
    %133 = vector.broadcast %6 : vector<1x32xf32> to vector<12x32xf32>
    %134 = arith.addf %132, %133 : vector<12x32xf32>
    %135 = vector.shape_cast %2 : vector<3x4x1xf32> to vector<12x1xf32>
    %cst_66 = arith.constant 0.000000e+00 : f32
    %136 = vector.broadcast %cst_66 : f32 to vector<12x1xf32>
    %137 = arith.cmpf one, %135, %136 : vector<12x1xf32>
    %cst_67 = arith.constant 0.000000e+00 : f32
    %138 = vector.shape_cast %137 : vector<12x1xi1> to vector<12x1xi1>
    %139 = vector.broadcast %138 : vector<12x1xi1> to vector<12x32xi1>
    %140 = vector.broadcast %cst_67 : f32 to vector<12x32xf32>
    %141 = arith.select %139, %140, %134 : vector<12x32xi1>, vector<12x32xf32>
    %142 = vector.shape_cast %141 : vector<12x32xf32> to vector<3x4x32xf32>
    %143 = vector.shape_cast %142 : vector<3x4x32xf32> to vector<12x32xf32>
    %c0_68 = arith.constant 0 : index
    %c0_69 = arith.constant 0 : index
    %144 = vector.load %arg8[%c0_68, %c0_69] : memref<32x16xf32, #tpu.memory_space<vmem>>, vector<32x16xf32>
    %cst_70 = arith.constant dense<0.000000e+00> : vector<12x16xf32>
    %145 = tpu.matmul %143, %144, %cst_70 {dimension_numbers = #tpu.dot_dimension_numbers<[1], [0], [0], [1], [0, 0, 1, 1], [], []>} : vector<12x32xf32>, vector<32x16xf32>, vector<12x16xf32> -> vector<12x16xf32>
    %c0_71 = arith.constant 0 : index
    %c0_72 = arith.constant 0 : index
    %146 = vector.load %arg10[%c0_71, %c0_72] : memref<1x16xf32, #tpu.memory_space<vmem>>, vector<1x16xf32>
    %147 = vector.broadcast %146 : vector<1x16xf32> to vector<12x16xf32>
    %148 = arith.addf %145, %147 : vector<12x16xf32>
    %149 = vector.shape_cast %148 : vector<12x16xf32> to vector<3x4x16xf32>
    %c0_73 = arith.constant 0 : index
    %c0_74 = arith.constant 0 : index
    %150 = vector.load %arg9[%c0_73, %c0_74] : memref<32x16xf32, #tpu.memory_space<vmem>>, vector<32x16xf32>
    %cst_75 = arith.constant dense<0.000000e+00> : vector<12x16xf32>
    %151 = tpu.matmul %143, %150, %cst_75 {dimension_numbers = #tpu.dot_dimension_numbers<[1], [0], [0], [1], [0, 0, 1, 1], [], []>} : vector<12x32xf32>, vector<32x16xf32>, vector<12x16xf32> -> vector<12x16xf32>
    %152 = vector.shape_cast %151 : vector<12x16xf32> to vector<3x4x16xf32>
    %c0_76 = arith.constant 0 : index
    %c0_77 = arith.constant 0 : index
    %153 = vector.load %arg11[%c0_76, %c0_77] : memref<16x16xf32, #tpu.memory_space<vmem>>, vector<16x16xf32>
    %c0_78 = arith.constant 0 : index
    %c0_79 = arith.constant 0 : index
    %154 = vector.load %arg12[%c0_78, %c0_79] : memref<1x16xf32, #tpu.memory_space<vmem>>, vector<1x16xf32>
    %c0_80 = arith.constant 0 : index
    %c0_81 = arith.constant 0 : index
    %155 = vector.load %arg13[%c0_80, %c0_81] : memref<1x16xf32, #tpu.memory_space<vmem>>, vector<1x16xf32>
    %c0_82 = arith.constant 0 : index
    %c0_83 = arith.constant 0 : index
    %156 = vector.load %arg14[%c0_82, %c0_83] : memref<1x1xf32, #tpu.memory_space<vmem>>, vector<1x1xf32>
    %157 = tpu.iota {dimensions = array<i32: 2>} : vector<1x1x4xi32>
    %cst_84 = arith.constant 0.000000e+00 : f32
    %158 = vector.broadcast %cst_84 : f32 to vector<3x4x4xf32>
    %159 = vector.extract_strided_slice %152 {offsets = [0, 0, 0], sizes = [3, 1, 16], strides = [1, 1, 1]} : vector<3x4x16xf32> to vector<3x1x16xf32>
    %160 = vector.broadcast %159 : vector<3x1x16xf32> to vector<3x4x16xf32>
    %161 = arith.addf %149, %160 : vector<3x4x16xf32>
    %cst_85 = arith.constant 0.000000e+00 : f32
    %162 = vector.broadcast %cst_85 : f32 to vector<3x4x16xf32>
    %163 = arith.maximumf %161, %162 : vector<3x4x16xf32>
    %164 = vector.shape_cast %163 : vector<3x4x16xf32> to vector<12x16xf32>
    %cst_86 = arith.constant dense<0.000000e+00> : vector<12x16xf32>
    %165 = tpu.matmul %164, %153, %cst_86 {dimension_numbers = #tpu.dot_dimension_numbers<[1], [0], [0], [1], [0, 0, 1, 1], [], []>} : vector<12x16xf32>, vector<16x16xf32>, vector<12x16xf32> -> vector<12x16xf32>
    %166 = vector.broadcast %154 : vector<1x16xf32> to vector<12x16xf32>
    %167 = arith.addf %165, %166 : vector<12x16xf32>
    %cst_87 = arith.constant 0.000000e+00 : f32
    %168 = vector.broadcast %cst_87 : f32 to vector<12x16xf32>
    %169 = arith.maximumf %167, %168 : vector<12x16xf32>
    %170 = vector.broadcast %155 : vector<1x16xf32> to vector<12x16xf32>
    %171 = arith.mulf %169, %170 : vector<12x16xf32>
    %cst_88 = arith.constant dense<0.000000e+00> : vector<12xf32>
    %172 = vector.multi_reduction <add>, %171, %cst_88 [1] : vector<12x16xf32> to vector<12xf32>
    %173 = vector.shape_cast %172 : vector<12xf32> to vector<12x1xf32>
    %174 = vector.broadcast %156 : vector<1x1xf32> to vector<12x1xf32>
    %175 = arith.addf %173, %174 : vector<12x1xf32>
    %176 = vector.shape_cast %175 : vector<12x1xf32> to vector<3x4x1xf32>
    %177 = vector.extract_strided_slice %3 {offsets = [0, 0, 0], sizes = [3, 4, 1], strides = [1, 1, 1]} : vector<3x4x4xf32> to vector<3x4x1xf32>
    %178 = arith.addf %176, %177 : vector<3x4x1xf32>
    %c0_i32 = arith.constant 0 : i32
    %179 = vector.broadcast %c0_i32 : i32 to vector<1x1x4xi32>
    %180 = arith.cmpi eq, %157, %179 : vector<1x1x4xi32>
    %cst_89 = arith.constant 0.000000e+00 : f32
    %181 = vector.broadcast %cst_89 : f32 to vector<3x4x1xf32>
    %182 = arith.cmpf ogt, %178, %181 : vector<3x4x1xf32>
    %183 = arith.extui %182 : vector<3x4x1xi1> to vector<3x4x1xi32>
    %184 = arith.sitofp %183 : vector<3x4x1xi32> to vector<3x4x1xf32>
    %cst_90 = arith.constant 0.000000e+00 : f32
    %185 = vector.shape_cast %180 : vector<1x1x4xi1> to vector<1x1x4xi1>
    %186 = vector.broadcast %185 : vector<1x1x4xi1> to vector<3x4x4xi1>
    %187 = vector.shape_cast %184 : vector<3x4x1xf32> to vector<3x4x1xf32>
    %188 = vector.broadcast %187 : vector<3x4x1xf32> to vector<3x4x4xf32>
    %189 = vector.broadcast %cst_90 : f32 to vector<3x4x4xf32>
    %190 = arith.select %186, %188, %189 : vector<3x4x4xi1>, vector<3x4x4xf32>
    %191 = arith.addf %158, %190 : vector<3x4x4xf32>
    %192 = vector.extract_strided_slice %152 {offsets = [0, 1, 0], sizes = [3, 1, 16], strides = [1, 1, 1]} : vector<3x4x16xf32> to vector<3x1x16xf32>
    %193 = vector.broadcast %192 : vector<3x1x16xf32> to vector<3x4x16xf32>
    %194 = arith.addf %149, %193 : vector<3x4x16xf32>
    %cst_91 = arith.constant 0.000000e+00 : f32
    %195 = vector.broadcast %cst_91 : f32 to vector<3x4x16xf32>
    %196 = arith.maximumf %194, %195 : vector<3x4x16xf32>
    %197 = vector.shape_cast %196 : vector<3x4x16xf32> to vector<12x16xf32>
    %cst_92 = arith.constant dense<0.000000e+00> : vector<12x16xf32>
    %198 = tpu.matmul %197, %153, %cst_92 {dimension_numbers = #tpu.dot_dimension_numbers<[1], [0], [0], [1], [0, 0, 1, 1], [], []>} : vector<12x16xf32>, vector<16x16xf32>, vector<12x16xf32> -> vector<12x16xf32>
    %199 = vector.broadcast %154 : vector<1x16xf32> to vector<12x16xf32>
    %200 = arith.addf %198, %199 : vector<12x16xf32>
    %cst_93 = arith.constant 0.000000e+00 : f32
    %201 = vector.broadcast %cst_93 : f32 to vector<12x16xf32>
    %202 = arith.maximumf %200, %201 : vector<12x16xf32>
    %203 = vector.broadcast %155 : vector<1x16xf32> to vector<12x16xf32>
    %204 = arith.mulf %202, %203 : vector<12x16xf32>
    %cst_94 = arith.constant dense<0.000000e+00> : vector<12xf32>
    %205 = vector.multi_reduction <add>, %204, %cst_94 [1] : vector<12x16xf32> to vector<12xf32>
    %206 = vector.shape_cast %205 : vector<12xf32> to vector<12x1xf32>
    %207 = vector.broadcast %156 : vector<1x1xf32> to vector<12x1xf32>
    %208 = arith.addf %206, %207 : vector<12x1xf32>
    %209 = vector.shape_cast %208 : vector<12x1xf32> to vector<3x4x1xf32>
    %210 = vector.extract_strided_slice %3 {offsets = [0, 0, 1], sizes = [3, 4, 1], strides = [1, 1, 1]} : vector<3x4x4xf32> to vector<3x4x1xf32>
    %211 = arith.addf %209, %210 : vector<3x4x1xf32>
    %c1_i32 = arith.constant 1 : i32
    %212 = vector.broadcast %c1_i32 : i32 to vector<1x1x4xi32>
    %213 = arith.cmpi eq, %157, %212 : vector<1x1x4xi32>
    %cst_95 = arith.constant 0.000000e+00 : f32
    %214 = vector.broadcast %cst_95 : f32 to vector<3x4x1xf32>
    %215 = arith.cmpf ogt, %211, %214 : vector<3x4x1xf32>
    %216 = arith.extui %215 : vector<3x4x1xi1> to vector<3x4x1xi32>
    %217 = arith.sitofp %216 : vector<3x4x1xi32> to vector<3x4x1xf32>
    %cst_96 = arith.constant 0.000000e+00 : f32
    %218 = vector.shape_cast %213 : vector<1x1x4xi1> to vector<1x1x4xi1>
    %219 = vector.broadcast %218 : vector<1x1x4xi1> to vector<3x4x4xi1>
    %220 = vector.shape_cast %217 : vector<3x4x1xf32> to vector<3x4x1xf32>
    %221 = vector.broadcast %220 : vector<3x4x1xf32> to vector<3x4x4xf32>
    %222 = vector.broadcast %cst_96 : f32 to vector<3x4x4xf32>
    %223 = arith.select %219, %221, %222 : vector<3x4x4xi1>, vector<3x4x4xf32>
    %224 = arith.addf %191, %223 : vector<3x4x4xf32>
    %225 = vector.extract_strided_slice %152 {offsets = [0, 2, 0], sizes = [3, 1, 16], strides = [1, 1, 1]} : vector<3x4x16xf32> to vector<3x1x16xf32>
    %226 = vector.broadcast %225 : vector<3x1x16xf32> to vector<3x4x16xf32>
    %227 = arith.addf %149, %226 : vector<3x4x16xf32>
    %cst_97 = arith.constant 0.000000e+00 : f32
    %228 = vector.broadcast %cst_97 : f32 to vector<3x4x16xf32>
    %229 = arith.maximumf %227, %228 : vector<3x4x16xf32>
    %230 = vector.shape_cast %229 : vector<3x4x16xf32> to vector<12x16xf32>
    %cst_98 = arith.constant dense<0.000000e+00> : vector<12x16xf32>
    %231 = tpu.matmul %230, %153, %cst_98 {dimension_numbers = #tpu.dot_dimension_numbers<[1], [0], [0], [1], [0, 0, 1, 1], [], []>} : vector<12x16xf32>, vector<16x16xf32>, vector<12x16xf32> -> vector<12x16xf32>
    %232 = vector.broadcast %154 : vector<1x16xf32> to vector<12x16xf32>
    %233 = arith.addf %231, %232 : vector<12x16xf32>
    %cst_99 = arith.constant 0.000000e+00 : f32
    %234 = vector.broadcast %cst_99 : f32 to vector<12x16xf32>
    %235 = arith.maximumf %233, %234 : vector<12x16xf32>
    %236 = vector.broadcast %155 : vector<1x16xf32> to vector<12x16xf32>
    %237 = arith.mulf %235, %236 : vector<12x16xf32>
    %cst_100 = arith.constant dense<0.000000e+00> : vector<12xf32>
    %238 = vector.multi_reduction <add>, %237, %cst_100 [1] : vector<12x16xf32> to vector<12xf32>
    %239 = vector.shape_cast %238 : vector<12xf32> to vector<12x1xf32>
    %240 = vector.broadcast %156 : vector<1x1xf32> to vector<12x1xf32>
    %241 = arith.addf %239, %240 : vector<12x1xf32>
    %242 = vector.shape_cast %241 : vector<12x1xf32> to vector<3x4x1xf32>
    %243 = vector.extract_strided_slice %3 {offsets = [0, 0, 2], sizes = [3, 4, 1], strides = [1, 1, 1]} : vector<3x4x4xf32> to vector<3x4x1xf32>
    %244 = arith.addf %242, %243 : vector<3x4x1xf32>
    %c2_i32 = arith.constant 2 : i32
    %245 = vector.broadcast %c2_i32 : i32 to vector<1x1x4xi32>
    %246 = arith.cmpi eq, %157, %245 : vector<1x1x4xi32>
    %cst_101 = arith.constant 0.000000e+00 : f32
    %247 = vector.broadcast %cst_101 : f32 to vector<3x4x1xf32>
    %248 = arith.cmpf ogt, %244, %247 : vector<3x4x1xf32>
    %249 = arith.extui %248 : vector<3x4x1xi1> to vector<3x4x1xi32>
    %250 = arith.sitofp %249 : vector<3x4x1xi32> to vector<3x4x1xf32>
    %cst_102 = arith.constant 0.000000e+00 : f32
    %251 = vector.shape_cast %246 : vector<1x1x4xi1> to vector<1x1x4xi1>
    %252 = vector.broadcast %251 : vector<1x1x4xi1> to vector<3x4x4xi1>
    %253 = vector.shape_cast %250 : vector<3x4x1xf32> to vector<3x4x1xf32>
    %254 = vector.broadcast %253 : vector<3x4x1xf32> to vector<3x4x4xf32>
    %255 = vector.broadcast %cst_102 : f32 to vector<3x4x4xf32>
    %256 = arith.select %252, %254, %255 : vector<3x4x4xi1>, vector<3x4x4xf32>
    %257 = arith.addf %224, %256 : vector<3x4x4xf32>
    %258 = vector.extract_strided_slice %152 {offsets = [0, 3, 0], sizes = [3, 1, 16], strides = [1, 1, 1]} : vector<3x4x16xf32> to vector<3x1x16xf32>
    %259 = vector.broadcast %258 : vector<3x1x16xf32> to vector<3x4x16xf32>
    %260 = arith.addf %149, %259 : vector<3x4x16xf32>
    %cst_103 = arith.constant 0.000000e+00 : f32
    %261 = vector.broadcast %cst_103 : f32 to vector<3x4x16xf32>
    %262 = arith.maximumf %260, %261 : vector<3x4x16xf32>
    %263 = vector.shape_cast %262 : vector<3x4x16xf32> to vector<12x16xf32>
    %cst_104 = arith.constant dense<0.000000e+00> : vector<12x16xf32>
    %264 = tpu.matmul %263, %153, %cst_104 {dimension_numbers = #tpu.dot_dimension_numbers<[1], [0], [0], [1], [0, 0, 1, 1], [], []>} : vector<12x16xf32>, vector<16x16xf32>, vector<12x16xf32> -> vector<12x16xf32>
    %265 = vector.broadcast %154 : vector<1x16xf32> to vector<12x16xf32>
    %266 = arith.addf %264, %265 : vector<12x16xf32>
    %cst_105 = arith.constant 0.000000e+00 : f32
    %267 = vector.broadcast %cst_105 : f32 to vector<12x16xf32>
    %268 = arith.maximumf %266, %267 : vector<12x16xf32>
    %269 = vector.broadcast %155 : vector<1x16xf32> to vector<12x16xf32>
    %270 = arith.mulf %268, %269 : vector<12x16xf32>
    %cst_106 = arith.constant dense<0.000000e+00> : vector<12xf32>
    %271 = vector.multi_reduction <add>, %270, %cst_106 [1] : vector<12x16xf32> to vector<12xf32>
    %272 = vector.shape_cast %271 : vector<12xf32> to vector<12x1xf32>
    %273 = vector.broadcast %156 : vector<1x1xf32> to vector<12x1xf32>
    %274 = arith.addf %272, %273 : vector<12x1xf32>
    %275 = vector.shape_cast %274 : vector<12x1xf32> to vector<3x4x1xf32>
    %276 = vector.extract_strided_slice %3 {offsets = [0, 0, 3], sizes = [3, 4, 1], strides = [1, 1, 1]} : vector<3x4x4xf32> to vector<3x4x1xf32>
    %277 = arith.addf %275, %276 : vector<3x4x1xf32>
    %c3_i32 = arith.constant 3 : i32
    %278 = vector.broadcast %c3_i32 : i32 to vector<1x1x4xi32>
    %279 = arith.cmpi eq, %157, %278 : vector<1x1x4xi32>
    %cst_107 = arith.constant 0.000000e+00 : f32
    %280 = vector.broadcast %cst_107 : f32 to vector<3x4x1xf32>
    %281 = arith.cmpf ogt, %277, %280 : vector<3x4x1xf32>
    %282 = arith.extui %281 : vector<3x4x1xi1> to vector<3x4x1xi32>
    %283 = arith.sitofp %282 : vector<3x4x1xi32> to vector<3x4x1xf32>
    %cst_108 = arith.constant 0.000000e+00 : f32
    %284 = vector.shape_cast %279 : vector<1x1x4xi1> to vector<1x1x4xi1>
    %285 = vector.broadcast %284 : vector<1x1x4xi1> to vector<3x4x4xi1>
    %286 = vector.shape_cast %283 : vector<3x4x1xf32> to vector<3x4x1xf32>
    %287 = vector.broadcast %286 : vector<3x4x1xf32> to vector<3x4x4xf32>
    %288 = vector.broadcast %cst_108 : f32 to vector<3x4x4xf32>
    %289 = arith.select %285, %287, %288 : vector<3x4x4xi1>, vector<3x4x4xf32>
    %290 = arith.addf %257, %289 : vector<3x4x4xf32>
    %cst_109 = arith.constant 0.000000e+00 : f32
    %291 = vector.broadcast %cst_109 : f32 to vector<3x4x4xf32>
    %292 = arith.cmpf one, %1, %291 : vector<3x4x4xf32>
    %cst_110 = arith.constant 1.000000e+00 : f32
    %293 = vector.broadcast %cst_110 : f32 to vector<3x4x4xf32>
    %294 = arith.subf %293, %290 : vector<3x4x4xf32>
    %cst_111 = arith.constant 1.000000e+00 : f32
    %295 = vector.broadcast %cst_111 : f32 to vector<3x4x4xf32>
    %296 = arith.select %292, %295, %294 : vector<3x4x4xi1>, vector<3x4x4xf32>
    %c0_112 = arith.constant 0 : index
    %c0_113 = arith.constant 0 : index
    %297 = vector.load %arg15[%c0_112, %c0_113] : memref<32x96xf32, #tpu.memory_space<vmem>>, vector<32x96xf32>
    %c0_114 = arith.constant 0 : index
    %c0_115 = arith.constant 0 : index
    %298 = vector.load %arg16[%c0_114, %c0_115] : memref<32x32xf32, #tpu.memory_space<vmem>>, vector<32x32xf32>
    %c0_116 = arith.constant 0 : index
    %c0_117 = arith.constant 0 : index
    %299 = vector.load %arg17[%c0_116, %c0_117] : memref<1x32xf32, #tpu.memory_space<vmem>>, vector<1x32xf32>
    %300 = vector.shape_cast %0 : vector<3x4x32xf32> to vector<12x32xf32>
    %cst_118 = arith.constant dense<0.000000e+00> : vector<12x96xf32>
    %301 = tpu.matmul %300, %297, %cst_118 {dimension_numbers = #tpu.dot_dimension_numbers<[1], [0], [0], [1], [0, 0, 1, 1], [], []>} : vector<12x32xf32>, vector<32x96xf32>, vector<12x96xf32> -> vector<12x96xf32>
    %302 = vector.shape_cast %301 : vector<12x96xf32> to vector<3x4x96xf32>
    %303 = vector.extract_strided_slice %302 {offsets = [0, 0, 0], sizes = [3, 4, 8], strides = [1, 1, 1]} : vector<3x4x96xf32> to vector<3x4x8xf32>
    %304 = vector.extract_strided_slice %302 {offsets = [0, 0, 32], sizes = [3, 4, 8], strides = [1, 1, 1]} : vector<3x4x96xf32> to vector<3x4x8xf32>
    %305 = vector.extract_strided_slice %302 {offsets = [0, 0, 64], sizes = [3, 4, 8], strides = [1, 1, 1]} : vector<3x4x96xf32> to vector<3x4x8xf32>
    "tpu.trace_start"() <{level = 10 : i32, message = "bqd,bkd->bqk"}> : () -> ()
    %cst_119 = arith.constant dense<0.000000e+00> : vector<3x4x4xf32>
    %306 = tpu.matmul %303, %304, %cst_119 {dimension_numbers = #tpu.dot_dimension_numbers<[2], [2], [1], [1], [0, 0, 0, 1, 1, 1], [0], [0]>} : vector<3x4x8xf32>, vector<3x4x8xf32>, vector<3x4x4xf32> -> vector<3x4x4xf32>
    "tpu.trace_stop"() : () -> ()
    %cst_120 = arith.constant 0.353553385 : f32
    %307 = vector.broadcast %cst_120 : f32 to vector<3x4x4xf32>
    %308 = arith.mulf %306, %307 : vector<3x4x4xf32>
    %cst_121 = arith.constant 0.000000e+00 : f32
    %309 = vector.broadcast %cst_121 : f32 to vector<3x4x4xf32>
    %310 = arith.cmpf one, %296, %309 : vector<3x4x4xf32>
    %cst_122 = arith.constant 0xFF800000 : f32
    %311 = vector.broadcast %cst_122 : f32 to vector<3x4x4xf32>
    %312 = arith.select %310, %311, %308 : vector<3x4x4xi1>, vector<3x4x4xf32>
    %cst_123 = arith.constant dense<0xFF800000> : vector<3x4xf32>
    %313 = vector.multi_reduction <maximumf>, %312, %cst_123 [2] : vector<3x4x4xf32> to vector<3x4xf32>
    %314 = vector.shape_cast %313 : vector<3x4xf32> to vector<3x4x1xf32>
    %cst_124 = arith.constant 0xFF800000 : f32
    %315 = vector.broadcast %cst_124 : f32 to vector<3x4x1xf32>
    %316 = arith.cmpf oeq, %314, %315 : vector<3x4x1xf32>
    %cst_125 = arith.constant 0.000000e+00 : f32
    %317 = vector.broadcast %cst_125 : f32 to vector<3x4x1xf32>
    %318 = arith.select %316, %317, %314 : vector<3x4x1xi1>, vector<3x4x1xf32>
    %319 = vector.broadcast %318 : vector<3x4x1xf32> to vector<3x4x4xf32>
    %320 = arith.subf %312, %319 : vector<3x4x4xf32>
    %321 = math.exp %320 : vector<3x4x4xf32>
    %cst_126 = arith.constant dense<0.000000e+00> : vector<3x4xf32>
    %322 = vector.multi_reduction <add>, %321, %cst_126 [2] : vector<3x4x4xf32> to vector<3x4xf32>
    %323 = vector.shape_cast %322 : vector<3x4xf32> to vector<3x4x1xf32>
    %cst_127 = arith.constant 0.000000e+00 : f32
    %324 = vector.broadcast %cst_127 : f32 to vector<3x4x1xf32>
    %325 = arith.cmpf oeq, %323, %324 : vector<3x4x1xf32>
    %cst_128 = arith.constant 1.000000e+00 : f32
    %cst_129 = arith.constant 0.000000e+00 : f32
    %326 = vector.broadcast %cst_128 : f32 to vector<3x4x1xf32>
    %327 = vector.broadcast %cst_129 : f32 to vector<3x4x1xf32>
    %328 = arith.select %325, %326, %327 : vector<3x4x1xi1>, vector<3x4x1xf32>
    %329 = arith.addf %323, %328 : vector<3x4x1xf32>
    %330 = vector.broadcast %329 : vector<3x4x1xf32> to vector<3x4x4xf32>
    %331 = arith.divf %321, %330 : vector<3x4x4xf32>
    "tpu.trace_start"() <{level = 10 : i32, message = "bqk,bkd->bqd"}> : () -> ()
    %cst_130 = arith.constant dense<0.000000e+00> : vector<3x4x8xf32>
    %332 = tpu.matmul %331, %305, %cst_130 {dimension_numbers = #tpu.dot_dimension_numbers<[2], [1], [1], [2], [0, 0, 0, 1, 1, 2], [0], [0]>} : vector<3x4x4xf32>, vector<3x4x8xf32>, vector<3x4x8xf32> -> vector<3x4x8xf32>
    "tpu.trace_stop"() : () -> ()
    %333 = vector.extract_strided_slice %302 {offsets = [0, 0, 8], sizes = [3, 4, 8], strides = [1, 1, 1]} : vector<3x4x96xf32> to vector<3x4x8xf32>
    %334 = vector.extract_strided_slice %302 {offsets = [0, 0, 40], sizes = [3, 4, 8], strides = [1, 1, 1]} : vector<3x4x96xf32> to vector<3x4x8xf32>
    %335 = vector.extract_strided_slice %302 {offsets = [0, 0, 72], sizes = [3, 4, 8], strides = [1, 1, 1]} : vector<3x4x96xf32> to vector<3x4x8xf32>
    "tpu.trace_start"() <{level = 10 : i32, message = "bqd,bkd->bqk"}> : () -> ()
    %cst_131 = arith.constant dense<0.000000e+00> : vector<3x4x4xf32>
    %336 = tpu.matmul %333, %334, %cst_131 {dimension_numbers = #tpu.dot_dimension_numbers<[2], [2], [1], [1], [0, 0, 0, 1, 1, 1], [0], [0]>} : vector<3x4x8xf32>, vector<3x4x8xf32>, vector<3x4x4xf32> -> vector<3x4x4xf32>
    "tpu.trace_stop"() : () -> ()
    %cst_132 = arith.constant 0.353553385 : f32
    %337 = vector.broadcast %cst_132 : f32 to vector<3x4x4xf32>
    %338 = arith.mulf %336, %337 : vector<3x4x4xf32>
    %cst_133 = arith.constant 0.000000e+00 : f32
    %339 = vector.broadcast %cst_133 : f32 to vector<3x4x4xf32>
    %340 = arith.cmpf one, %296, %339 : vector<3x4x4xf32>
    %cst_134 = arith.constant 0xFF800000 : f32
    %341 = vector.broadcast %cst_134 : f32 to vector<3x4x4xf32>
    %342 = arith.select %340, %341, %338 : vector<3x4x4xi1>, vector<3x4x4xf32>
    %cst_135 = arith.constant dense<0xFF800000> : vector<3x4xf32>
    %343 = vector.multi_reduction <maximumf>, %342, %cst_135 [2] : vector<3x4x4xf32> to vector<3x4xf32>
    %344 = vector.shape_cast %343 : vector<3x4xf32> to vector<3x4x1xf32>
    %cst_136 = arith.constant 0xFF800000 : f32
    %345 = vector.broadcast %cst_136 : f32 to vector<3x4x1xf32>
    %346 = arith.cmpf oeq, %344, %345 : vector<3x4x1xf32>
    %cst_137 = arith.constant 0.000000e+00 : f32
    %347 = vector.broadcast %cst_137 : f32 to vector<3x4x1xf32>
    %348 = arith.select %346, %347, %344 : vector<3x4x1xi1>, vector<3x4x1xf32>
    %349 = vector.broadcast %348 : vector<3x4x1xf32> to vector<3x4x4xf32>
    %350 = arith.subf %342, %349 : vector<3x4x4xf32>
    %351 = math.exp %350 : vector<3x4x4xf32>
    %cst_138 = arith.constant dense<0.000000e+00> : vector<3x4xf32>
    %352 = vector.multi_reduction <add>, %351, %cst_138 [2] : vector<3x4x4xf32> to vector<3x4xf32>
    %353 = vector.shape_cast %352 : vector<3x4xf32> to vector<3x4x1xf32>
    %cst_139 = arith.constant 0.000000e+00 : f32
    %354 = vector.broadcast %cst_139 : f32 to vector<3x4x1xf32>
    %355 = arith.cmpf oeq, %353, %354 : vector<3x4x1xf32>
    %cst_140 = arith.constant 1.000000e+00 : f32
    %cst_141 = arith.constant 0.000000e+00 : f32
    %356 = vector.broadcast %cst_140 : f32 to vector<3x4x1xf32>
    %357 = vector.broadcast %cst_141 : f32 to vector<3x4x1xf32>
    %358 = arith.select %355, %356, %357 : vector<3x4x1xi1>, vector<3x4x1xf32>
    %359 = arith.addf %353, %358 : vector<3x4x1xf32>
    %360 = vector.broadcast %359 : vector<3x4x1xf32> to vector<3x4x4xf32>
    %361 = arith.divf %351, %360 : vector<3x4x4xf32>
    "tpu.trace_start"() <{level = 10 : i32, message = "bqk,bkd->bqd"}> : () -> ()
    %cst_142 = arith.constant dense<0.000000e+00> : vector<3x4x8xf32>
    %362 = tpu.matmul %361, %335, %cst_142 {dimension_numbers = #tpu.dot_dimension_numbers<[2], [1], [1], [2], [0, 0, 0, 1, 1, 2], [0], [0]>} : vector<3x4x4xf32>, vector<3x4x8xf32>, vector<3x4x8xf32> -> vector<3x4x8xf32>
    "tpu.trace_stop"() : () -> ()
    %363 = vector.extract_strided_slice %302 {offsets = [0, 0, 16], sizes = [3, 4, 8], strides = [1, 1, 1]} : vector<3x4x96xf32> to vector<3x4x8xf32>
    %364 = vector.extract_strided_slice %302 {offsets = [0, 0, 48], sizes = [3, 4, 8], strides = [1, 1, 1]} : vector<3x4x96xf32> to vector<3x4x8xf32>
    %365 = vector.extract_strided_slice %302 {offsets = [0, 0, 80], sizes = [3, 4, 8], strides = [1, 1, 1]} : vector<3x4x96xf32> to vector<3x4x8xf32>
    "tpu.trace_start"() <{level = 10 : i32, message = "bqd,bkd->bqk"}> : () -> ()
    %cst_143 = arith.constant dense<0.000000e+00> : vector<3x4x4xf32>
    %366 = tpu.matmul %363, %364, %cst_143 {dimension_numbers = #tpu.dot_dimension_numbers<[2], [2], [1], [1], [0, 0, 0, 1, 1, 1], [0], [0]>} : vector<3x4x8xf32>, vector<3x4x8xf32>, vector<3x4x4xf32> -> vector<3x4x4xf32>
    "tpu.trace_stop"() : () -> ()
    %cst_144 = arith.constant 0.353553385 : f32
    %367 = vector.broadcast %cst_144 : f32 to vector<3x4x4xf32>
    %368 = arith.mulf %366, %367 : vector<3x4x4xf32>
    %cst_145 = arith.constant 0.000000e+00 : f32
    %369 = vector.broadcast %cst_145 : f32 to vector<3x4x4xf32>
    %370 = arith.cmpf one, %296, %369 : vector<3x4x4xf32>
    %cst_146 = arith.constant 0xFF800000 : f32
    %371 = vector.broadcast %cst_146 : f32 to vector<3x4x4xf32>
    %372 = arith.select %370, %371, %368 : vector<3x4x4xi1>, vector<3x4x4xf32>
    %cst_147 = arith.constant dense<0xFF800000> : vector<3x4xf32>
    %373 = vector.multi_reduction <maximumf>, %372, %cst_147 [2] : vector<3x4x4xf32> to vector<3x4xf32>
    %374 = vector.shape_cast %373 : vector<3x4xf32> to vector<3x4x1xf32>
    %cst_148 = arith.constant 0xFF800000 : f32
    %375 = vector.broadcast %cst_148 : f32 to vector<3x4x1xf32>
    %376 = arith.cmpf oeq, %374, %375 : vector<3x4x1xf32>
    %cst_149 = arith.constant 0.000000e+00 : f32
    %377 = vector.broadcast %cst_149 : f32 to vector<3x4x1xf32>
    %378 = arith.select %376, %377, %374 : vector<3x4x1xi1>, vector<3x4x1xf32>
    %379 = vector.broadcast %378 : vector<3x4x1xf32> to vector<3x4x4xf32>
    %380 = arith.subf %372, %379 : vector<3x4x4xf32>
    %381 = math.exp %380 : vector<3x4x4xf32>
    %cst_150 = arith.constant dense<0.000000e+00> : vector<3x4xf32>
    %382 = vector.multi_reduction <add>, %381, %cst_150 [2] : vector<3x4x4xf32> to vector<3x4xf32>
    %383 = vector.shape_cast %382 : vector<3x4xf32> to vector<3x4x1xf32>
    %cst_151 = arith.constant 0.000000e+00 : f32
    %384 = vector.broadcast %cst_151 : f32 to vector<3x4x1xf32>
    %385 = arith.cmpf oeq, %383, %384 : vector<3x4x1xf32>
    %cst_152 = arith.constant 1.000000e+00 : f32
    %cst_153 = arith.constant 0.000000e+00 : f32
    %386 = vector.broadcast %cst_152 : f32 to vector<3x4x1xf32>
    %387 = vector.broadcast %cst_153 : f32 to vector<3x4x1xf32>
    %388 = arith.select %385, %386, %387 : vector<3x4x1xi1>, vector<3x4x1xf32>
    %389 = arith.addf %383, %388 : vector<3x4x1xf32>
    %390 = vector.broadcast %389 : vector<3x4x1xf32> to vector<3x4x4xf32>
    %391 = arith.divf %381, %390 : vector<3x4x4xf32>
    "tpu.trace_start"() <{level = 10 : i32, message = "bqk,bkd->bqd"}> : () -> ()
    %cst_154 = arith.constant dense<0.000000e+00> : vector<3x4x8xf32>
    %392 = tpu.matmul %391, %365, %cst_154 {dimension_numbers = #tpu.dot_dimension_numbers<[2], [1], [1], [2], [0, 0, 0, 1, 1, 2], [0], [0]>} : vector<3x4x4xf32>, vector<3x4x8xf32>, vector<3x4x8xf32> -> vector<3x4x8xf32>
    "tpu.trace_stop"() : () -> ()
    %393 = vector.extract_strided_slice %302 {offsets = [0, 0, 24], sizes = [3, 4, 8], strides = [1, 1, 1]} : vector<3x4x96xf32> to vector<3x4x8xf32>
    %394 = vector.extract_strided_slice %302 {offsets = [0, 0, 56], sizes = [3, 4, 8], strides = [1, 1, 1]} : vector<3x4x96xf32> to vector<3x4x8xf32>
    %395 = vector.extract_strided_slice %302 {offsets = [0, 0, 88], sizes = [3, 4, 8], strides = [1, 1, 1]} : vector<3x4x96xf32> to vector<3x4x8xf32>
    "tpu.trace_start"() <{level = 10 : i32, message = "bqd,bkd->bqk"}> : () -> ()
    %cst_155 = arith.constant dense<0.000000e+00> : vector<3x4x4xf32>
    %396 = tpu.matmul %393, %394, %cst_155 {dimension_numbers = #tpu.dot_dimension_numbers<[2], [2], [1], [1], [0, 0, 0, 1, 1, 1], [0], [0]>} : vector<3x4x8xf32>, vector<3x4x8xf32>, vector<3x4x4xf32> -> vector<3x4x4xf32>
    "tpu.trace_stop"() : () -> ()
    %cst_156 = arith.constant 0.353553385 : f32
    %397 = vector.broadcast %cst_156 : f32 to vector<3x4x4xf32>
    %398 = arith.mulf %396, %397 : vector<3x4x4xf32>
    %cst_157 = arith.constant 0.000000e+00 : f32
    %399 = vector.broadcast %cst_157 : f32 to vector<3x4x4xf32>
    %400 = arith.cmpf one, %296, %399 : vector<3x4x4xf32>
    %cst_158 = arith.constant 0xFF800000 : f32
    %401 = vector.broadcast %cst_158 : f32 to vector<3x4x4xf32>
    %402 = arith.select %400, %401, %398 : vector<3x4x4xi1>, vector<3x4x4xf32>
    %cst_159 = arith.constant dense<0xFF800000> : vector<3x4xf32>
    %403 = vector.multi_reduction <maximumf>, %402, %cst_159 [2] : vector<3x4x4xf32> to vector<3x4xf32>
    %404 = vector.shape_cast %403 : vector<3x4xf32> to vector<3x4x1xf32>
    %cst_160 = arith.constant 0xFF800000 : f32
    %405 = vector.broadcast %cst_160 : f32 to vector<3x4x1xf32>
    %406 = arith.cmpf oeq, %404, %405 : vector<3x4x1xf32>
    %cst_161 = arith.constant 0.000000e+00 : f32
    %407 = vector.broadcast %cst_161 : f32 to vector<3x4x1xf32>
    %408 = arith.select %406, %407, %404 : vector<3x4x1xi1>, vector<3x4x1xf32>
    %409 = vector.broadcast %408 : vector<3x4x1xf32> to vector<3x4x4xf32>
    %410 = arith.subf %402, %409 : vector<3x4x4xf32>
    %411 = math.exp %410 : vector<3x4x4xf32>
    %cst_162 = arith.constant dense<0.000000e+00> : vector<3x4xf32>
    %412 = vector.multi_reduction <add>, %411, %cst_162 [2] : vector<3x4x4xf32> to vector<3x4xf32>
    %413 = vector.shape_cast %412 : vector<3x4xf32> to vector<3x4x1xf32>
    %cst_163 = arith.constant 0.000000e+00 : f32
    %414 = vector.broadcast %cst_163 : f32 to vector<3x4x1xf32>
    %415 = arith.cmpf oeq, %413, %414 : vector<3x4x1xf32>
    %cst_164 = arith.constant 1.000000e+00 : f32
    %cst_165 = arith.constant 0.000000e+00 : f32
    %416 = vector.broadcast %cst_164 : f32 to vector<3x4x1xf32>
    %417 = vector.broadcast %cst_165 : f32 to vector<3x4x1xf32>
    %418 = arith.select %415, %416, %417 : vector<3x4x1xi1>, vector<3x4x1xf32>
    %419 = arith.addf %413, %418 : vector<3x4x1xf32>
    %420 = vector.broadcast %419 : vector<3x4x1xf32> to vector<3x4x4xf32>
    %421 = arith.divf %411, %420 : vector<3x4x4xf32>
    "tpu.trace_start"() <{level = 10 : i32, message = "bqk,bkd->bqd"}> : () -> ()
    %cst_166 = arith.constant dense<0.000000e+00> : vector<3x4x8xf32>
    %422 = tpu.matmul %421, %395, %cst_166 {dimension_numbers = #tpu.dot_dimension_numbers<[2], [1], [1], [2], [0, 0, 0, 1, 1, 2], [0], [0]>} : vector<3x4x4xf32>, vector<3x4x8xf32>, vector<3x4x8xf32> -> vector<3x4x8xf32>
    "tpu.trace_stop"() : () -> ()
    %423 = tpu.concatenate %332, %362, %392, %422 in 2 : vector<3x4x8xf32>, vector<3x4x8xf32>, vector<3x4x8xf32>, vector<3x4x8xf32> -> vector<3x4x32xf32>
    %424 = vector.shape_cast %423 : vector<3x4x32xf32> to vector<12x32xf32>
    %cst_167 = arith.constant dense<0.000000e+00> : vector<12x32xf32>
    %425 = tpu.matmul %424, %298, %cst_167 {dimension_numbers = #tpu.dot_dimension_numbers<[1], [0], [0], [1], [0, 0, 1, 1], [], []>} : vector<12x32xf32>, vector<32x32xf32>, vector<12x32xf32> -> vector<12x32xf32>
    %426 = vector.broadcast %299 : vector<1x32xf32> to vector<12x32xf32>
    %427 = arith.addf %425, %426 : vector<12x32xf32>
    %428 = vector.shape_cast %2 : vector<3x4x1xf32> to vector<12x1xf32>
    %cst_168 = arith.constant 0.000000e+00 : f32
    %429 = vector.broadcast %cst_168 : f32 to vector<12x1xf32>
    %430 = arith.cmpf one, %428, %429 : vector<12x1xf32>
    %cst_169 = arith.constant 0.000000e+00 : f32
    %431 = vector.shape_cast %430 : vector<12x1xi1> to vector<12x1xi1>
    %432 = vector.broadcast %431 : vector<12x1xi1> to vector<12x32xi1>
    %433 = vector.broadcast %cst_169 : f32 to vector<12x32xf32>
    %434 = arith.select %432, %433, %427 : vector<12x32xi1>, vector<12x32xf32>
    %435 = vector.shape_cast %434 : vector<12x32xf32> to vector<3x4x32xf32>
    %cst_170 = arith.constant 0.000000e+00 : f32
    %436 = vector.broadcast %cst_170 : f32 to vector<3x4x32xf32>
    %437 = arith.cmpf ogt, %435, %436 : vector<3x4x32xf32>
    %cst_171 = arith.constant 0.000000e+00 : f32
    %438 = vector.broadcast %cst_171 : f32 to vector<3x4x32xf32>
    %439 = arith.minimumf %435, %438 : vector<3x4x32xf32>
    %440 = math.exp %439 : vector<3x4x32xf32>
    %cst_172 = arith.constant 1.000000e+00 : f32
    %441 = vector.broadcast %cst_172 : f32 to vector<3x4x32xf32>
    %442 = arith.subf %440, %441 : vector<3x4x32xf32>
    %443 = arith.select %437, %435, %442 : vector<3x4x32xi1>, vector<3x4x32xf32>
    %444 = tpu.concatenate %0, %443 in 2 : vector<3x4x32xf32>, vector<3x4x32xf32> -> vector<3x4x64xf32>
    %445 = vector.shape_cast %444 : vector<3x4x64xf32> to vector<12x64xf32>
    %c0_173 = arith.constant 0 : index
    %c0_174 = arith.constant 0 : index
    %446 = vector.load %arg18[%c0_173, %c0_174] : memref<64x6xf32, #tpu.memory_space<vmem>>, vector<64x6xf32>
    %cst_175 = arith.constant dense<0.000000e+00> : vector<12x6xf32>
    %447 = tpu.matmul %445, %446, %cst_175 {dimension_numbers = #tpu.dot_dimension_numbers<[1], [0], [0], [1], [0, 0, 1, 1], [], []>} : vector<12x64xf32>, vector<64x6xf32>, vector<12x6xf32> -> vector<12x6xf32>
    %c0_176 = arith.constant 0 : index
    %c0_177 = arith.constant 0 : index
    %448 = vector.load %arg19[%c0_176, %c0_177] : memref<1x6xf32, #tpu.memory_space<vmem>>, vector<1x6xf32>
    %449 = vector.broadcast %448 : vector<1x6xf32> to vector<12x6xf32>
    %450 = arith.addf %447, %449 : vector<12x6xf32>
    %451 = vector.shape_cast %2 : vector<3x4x1xf32> to vector<12x1xf32>
    %cst_178 = arith.constant 0.000000e+00 : f32
    %452 = vector.broadcast %cst_178 : f32 to vector<12x1xf32>
    %453 = arith.cmpf one, %451, %452 : vector<12x1xf32>
    %cst_179 = arith.constant 0.000000e+00 : f32
    %454 = vector.shape_cast %453 : vector<12x1xi1> to vector<12x1xi1>
    %455 = vector.broadcast %454 : vector<12x1xi1> to vector<12x6xi1>
    %456 = vector.broadcast %cst_179 : f32 to vector<12x6xf32>
    %457 = arith.select %455, %456, %450 : vector<12x6xi1>, vector<12x6xf32>
    %458 = vector.shape_cast %457 : vector<12x6xf32> to vector<3x4x6xf32>
    %c0_180 = arith.constant 0 : index
    %c0_181 = arith.constant 0 : index
    %c0_182 = arith.constant 0 : index
    %459 = vector.load %arg20[%c0_180, %c0_181, %c0_182] : memref<3x4x6xf32, #tpu.memory_space<vmem>>, vector<3x4x6xf32>
    tpu.vector_store %arg20[%c0_180, %c0_181, %c0_182], %458 {strides = array<i32>} : memref<3x4x6xf32, #tpu.memory_space<vmem>>, vector<3x4x6xf32>,
    return
  }
  func.func @transform_0(%arg0: i32) -> (i32, i32, i32) {
    %c0_i32 = arith.constant 0 : i32
    %c0_i32_0 = arith.constant 0 : i32
    %c0_i32_1 = arith.constant 0 : i32
    return %arg0, %c0_i32, %c0_i32_0 : i32, i32, i32
  }
  func.func @transform_1(%arg0: i32) -> (i32, i32, i32) {
    %c0_i32 = arith.constant 0 : i32
    %c0_i32_0 = arith.constant 0 : i32
    %c0_i32_1 = arith.constant 0 : i32
    return %arg0, %c0_i32, %c0_i32_0 : i32, i32, i32
  }
  func.func @transform_2(%arg0: i32) -> (i32, i32, i32) {
    %c0_i32 = arith.constant 0 : i32
    %c0_i32_0 = arith.constant 0 : i32
    %c0_i32_1 = arith.constant 0 : i32
    return %arg0, %c0_i32, %c0_i32_0 : i32, i32, i32
  }
  func.func @transform_3(%arg0: i32) -> (i32, i32, i32) {
    %c0_i32 = arith.constant 0 : i32
    %c0_i32_0 = arith.constant 0 : i32
    %c0_i32_1 = arith.constant 0 : i32
    return %arg0, %c0_i32, %c0_i32_0 : i32, i32, i32
  }
  func.func @transform_4(%arg0: i32) -> (i32, i32) {
    %c0_i32 = arith.constant 0 : i32
    %c0_i32_0 = arith.constant 0 : i32
    %c0_i32_1 = arith.constant 0 : i32
    return %c0_i32, %c0_i32_0 : i32, i32
  }
  func.func @transform_5(%arg0: i32) -> (i32, i32) {
    %c0_i32 = arith.constant 0 : i32
    %c0_i32_0 = arith.constant 0 : i32
    %c0_i32_1 = arith.constant 0 : i32
    return %c0_i32, %c0_i32_0 : i32, i32
  }
  func.func @transform_6(%arg0: i32) -> (i32, i32) {
    %c0_i32 = arith.constant 0 : i32
    %c0_i32_0 = arith.constant 0 : i32
    %c0_i32_1 = arith.constant 0 : i32
    return %c0_i32, %c0_i32_0 : i32, i32
  }
  func.func @transform_7(%arg0: i32) -> (i32, i32) {
    %c0_i32 = arith.constant 0 : i32
    %c0_i32_0 = arith.constant 0 : i32
    %c0_i32_1 = arith.constant 0 : i32
    return %c0_i32, %c0_i32_0 : i32, i32
  }
  func.func @transform_8(%arg0: i32) -> (i32, i32) {
    %c0_i32 = arith.constant 0 : i32
    %c0_i32_0 = arith.constant 0 : i32
    %c0_i32_1 = arith.constant 0 : i32
    return %c0_i32, %c0_i32_0 : i32, i32
  }
  func.func @transform_9(%arg0: i32) -> (i32, i32) {
    %c0_i32 = arith.constant 0 : i32
    %c0_i32_0 = arith.constant 0 : i32
    %c0_i32_1 = arith.constant 0 : i32
    return %c0_i32, %c0_i32_0 : i32, i32
  }
  func.func @transform_10(%arg0: i32) -> (i32, i32) {
    %c0_i32 = arith.constant 0 : i32
    %c0_i32_0 = arith.constant 0 : i32
    %c0_i32_1 = arith.constant 0 : i32
    return %c0_i32, %c0_i32_0 : i32, i32
  }
  func.func @transform_11(%arg0: i32) -> (i32, i32) {
    %c0_i32 = arith.constant 0 : i32
    %c0_i32_0 = arith.constant 0 : i32
    %c0_i32_1 = arith.constant 0 : i32
    return %c0_i32, %c0_i32_0 : i32, i32
  }
  func.func @transform_12(%arg0: i32) -> (i32, i32) {
    %c0_i32 = arith.constant 0 : i32
    %c0_i32_0 = arith.constant 0 : i32
    %c0_i32_1 = arith.constant 0 : i32
    return %c0_i32, %c0_i32_0 : i32, i32
  }
  func.func @transform_13(%arg0: i32) -> (i32, i32) {
    %c0_i32 = arith.constant 0 : i32
    %c0_i32_0 = arith.constant 0 : i32
    %c0_i32_1 = arith.constant 0 : i32
    return %c0_i32, %c0_i32_0 : i32, i32
  }
  func.func @transform_14(%arg0: i32) -> (i32, i32) {
    %c0_i32 = arith.constant 0 : i32
    %c0_i32_0 = arith.constant 0 : i32
    %c0_i32_1 = arith.constant 0 : i32
    return %c0_i32, %c0_i32_0 : i32, i32
  }
  func.func @transform_15(%arg0: i32) -> (i32, i32) {
    %c0_i32 = arith.constant 0 : i32
    %c0_i32_0 = arith.constant 0 : i32
    %c0_i32_1 = arith.constant 0 : i32
    return %c0_i32, %c0_i32_0 : i32, i32
  }
  func.func @transform_16(%arg0: i32) -> (i32, i32) {
    %c0_i32 = arith.constant 0 : i32
    %c0_i32_0 = arith.constant 0 : i32
    %c0_i32_1 = arith.constant 0 : i32
    return %c0_i32, %c0_i32_0 : i32, i32
  }
  func.func @transform_17(%arg0: i32) -> (i32, i32) {
    %c0_i32 = arith.constant 0 : i32
    %c0_i32_0 = arith.constant 0 : i32
    %c0_i32_1 = arith.constant 0 : i32
    return %c0_i32, %c0_i32_0 : i32, i32
  }
  func.func @transform_18(%arg0: i32) -> (i32, i32) {
    %c0_i32 = arith.constant 0 : i32
    %c0_i32_0 = arith.constant 0 : i32
    %c0_i32_1 = arith.constant 0 : i32
    return %c0_i32, %c0_i32_0 : i32, i32
  }
  func.func @transform_19(%arg0: i32) -> (i32, i32, i32) {
    %c0_i32 = arith.constant 0 : i32
    %c0_i32_0 = arith.constant 0 : i32
    %c0_i32_1 = arith.constant 0 : i32
    return %arg0, %c0_i32, %c0_i32_0 : i32, i32, i32
  }
}

</mosaic_0001>

<bundles_post_ra>
// kernel: forward.4
= control target key start
LH: loop header
LB: loop body
LE: loop exit
PB: predicated region body
PF: predicated region fallthrough
CT: control target
= control target key end

     0   :  { %s654_s15 = smov 0   ;;  %s656_s16 = smov 0   ;;  %s739_s0 = inlined_call_operand.vmem [shape: f32[2,3,4,96], index: 0, kind: input, shape index: {}]   ;;  %s740_s1 = inlined_call_operand.vmem [shape: f32[8,32], index: 1, kind: input, shape index: {}]   ;;  %s741_s2 = inlined_call_operand.vmem [shape: f32[32,96], index: 2, kind: input, shape index: {}]   ;;  %s742_s3 = inlined_call_operand.vmem [shape: f32[1,96], index: 3, kind: input, shape index: {}]   ;;  %s743_s4 = inlined_call_operand.vmem [shape: f32[2,3,4,32], index: 4, kind: output, shape index: {}]  }
   0x1   :  { %s658_s17 = smov 0  }
   0x2 LB: > { %s667_s18 = sadd.s32 4294967295, %s621_s17   ;;  %s669_s19 = sadd.s32 1, %s621_s17   ;;  %s621_s17 = sphi %s658_s17, %s747_s17   ;;  %s617_s16 = sphi %s656_s16, %s746_s16   ;;  %s613_s15 = sphi %s654_s15, %s745_s15  }
   0x3   : > { %s18_s20 = ssub.s32 %s621_s17, %s669_s19  ;;  %s21_s21 = sadd.s32 1, %s617_s16 }
   0x4   : > { %p19_p0 = scmp.eq.s32.totalorder %s18_s20, 0  ;;  %p28_p1 = scmp.ne.s32.totalorder %s617_s16, %s613_s15 }
   0x5   : > { %p29_p2 = scmp.eq.s32.totalorder %s621_s17, 0  ;;  %p121_p3 = scmp.eq.s32.totalorder %s667_s18, 2 }
   0x6   : > { %s677_s22 = scalar_select %p19_p0, %s617_s16, %s21_s21  }
   0x7   : > { %p30_p4 = por %p29_p2, %p28_p1  ;;  %p679_p5 = por %p121_p3, %p28_p1 }
   0x8   : > { %p519_p6 = scmp.ge.s32.totalorder %s621_s17, 3 }
   0xa   : > { %152 = sbr.rel (%p519_p6) target bundleno = 24 (0x18), region = 28 }
  0x11   : > { %155 = sbr.rel (!%p30_p4) target bundleno = 24 (0x18), region = 32  ;;  %s157_s24 = sand.u32 (%p30_p4), 1, %s617_s16  }
  0x12   : > { %s521_s25 = sshll.u32 (%p30_p4), %s621_s17, 2  ;;  %s520_s26 = sshll.u32 (%p30_p4), %s157_s24, 3 }
  0x13   : > { %s161_s29 = scalar_lea.vmem (%p30_p4), %s739_s0, %s521_s25  ;;  %s159_s30 = scalar_lea.vmem (%p30_p4), [#allocation3], %s520_s26 }
  0x14   : > { %v177_v0 = vld [vmem:[%s161_s29] sm:$0xf] (%p30_p4)  ;;  %v179_v1 = vld [vmem:[%s161_s29 + $0xc] sm:$0xf] (%p30_p4) }
  0x15   : > { %178 = vst [vmem:[%s159_s30] sm:$0xf] (%p30_p4), %v177_v0  ;;  %180 = vst [vmem:[%s159_s30 + $0x4] sm:$0xf] (%p30_p4), %v179_v1 }
  0x18 PF: > { %p522_p7 = scmp.ge.s32.totalorder %s621_s17, 1  ;;  %p206_p8 = scmp.lt.s32.totalorder %s621_s17, 4 }
  0x1a   : > { %p207_p9 = pnand %p522_p7, %p206_p8 }
  0x1b   : > { %s213_s5 = sand.u32 (!%p207_p9), 1, %s613_s15   ;;  %p525_p10 = scmp.ne.s32.totalorder (!%p207_p9), %s667_s18, 0 }
  0x1c   : > { %210 = sbr.rel (%p207_p9) target bundleno = 768 (0x300), region = 73  ;;  %s688_s6 = sshll.u32 (!%p207_p9), %s213_s5, 3 }
  0x1d   : > { %s215_s7 = scalar_lea.vmem (!%p207_p9), [#allocation3], %s688_s6  ;;  %s692_s8 = scalar_lea.vmem (!%p207_p9), [#allocation4], %s688_s6 }
  0x23   : > { %240 = sbr.rel (%p525_p10) target bundleno = 42 (0x2a), region = 81  ;;  %v241_v2 = vld [vmem:[%s740_s1] sm:$0xff] (!%p525_p10)  ;;  %vm242_vm0 = vcmask (!%p525_p10), 261120  }
  0x24   : > { %243 = vst.msk [vmem:[#allocation2] sm:$0xff] (!%p525_p10), %vm242_vm0, %v241_v2 }
  0x2a PF: > { %v247_v3 = vld [vmem:[%s741_s2] sm:$0xff]  ;;  %v248_v4 = vld [vmem:[%s741_s2 + $0x8] sm:$0xff]  ;;  %v249_v5 = vld [vmem:[%s741_s2 + $0x10] sm:$0xff]  ;;  %v623_v6 = vmov 0.0|0.0   ;;  %vm624_vm1 = vmmov 0   ;;  %v625_v9 = vmov 0.0  }
  0x2b   : > { %550 = vmatprep.subr.bf16.mxu0 %v623_v6  ;;  %v551_v7 = vpack.c.bf16 %v248_v4, %v247_v3  ;;  %v250_v8 = vld [vmem:[%s741_s2 + $0x18] sm:$0xff]  ;;  %547 = vmatprep.mubr.msk.f32.mxu0 %vm624_vm1, %v625_v9  ;;  %v246_v11 = vld [vmem:[#allocation2] sm:$0xff]  ;;  %vm258_vm2 = vcmask 261120   ;;  %s626_s26 = smov 64   ;;  %v244_v17 = vld [vmem:[%s215_s7] sm:$0xf] }
  0x2c   : > { %v554_v10 = vpack.c.bf16 %v250_v8, %v249_v5  ;;  %v526_v12 = vld [vmem:[%s742_s3] ss:$0 sm:$0xff]  ;;  %v245_v19 = vld [vmem:[%s215_s7 + $0x4] sm:$0xf]  ;;  %s627_s27 = smov 96   ;;  %s628_s28 = smov 32   ;;  %v381_v39 = vcombine.high %v246_v11, %v246_v11 }
  0x2d   : > { %552 = vmatpush3.bf16.msra.mxu0 %v551_v7  ;;  %vm405_vm3 = vcmask 257024   ;;  %s531_s29 = sshll.u32 (%p679_p5), %s667_s18, 2 }
  0x2e   : > { %553 = vmatprep.subr.bf16.mxu0 %v623_v6  ;;  %s416_s6 = scalar_lea.vmem (%p679_p5), %s743_s4, %s531_s29 }
  0x31   : > { %555 = vmatpush3.bf16.msra.mxu0 %v554_v10 }
  0x34   : > { %548 = vmatmul.mubr.msk.f32.vlgmr.msra.gmra.mrb[0].mxu0 %vm258_vm2, %v246_v11 }
 0x107   : > { %v328_v13 = vpop.f32.mrb[0].mxu0 }
 0x108   : > { %v329_v14 = vadd.f32 %v526_v12, %v328_v13  ;;  %v549_v15 = vpop.f32.mrb[1].mxu0 }
 0x10a   : > { %349 = vrot.lane.b32.xlu0 %v329_v14, %s626_s26  ;;  %v333_v16 = vcombine.high %v329_v14, %v329_v14  ;;  %v335_v18 = vadd.f32 %v329_v14, %v244_v17 }
 0x10c   : > { %v528_v20 = vmul.f32 -1.442695, %v335_v18  ;;  %v336_v21 = vadd.f32 %v333_v16, %v245_v19 }
 0x10e   : > { %351 = vrot.lane.b32.xlu0 %v333_v16, %s626_s26  ;;  %587 = vpow2.f32 %v528_v20  ;;  %v529_v22 = vmul.f32 -1.442695, %v336_v21 }
 0x110   : > { %589 = vpow2.f32 %v529_v22 }
 0x118   : > { %v588_v23 = vpop.eup %587 }
 0x119   : > { %v343_v24 = vadd.f32 1.0, %v588_v23 }
 0x11a   : > { %v590_v25 = vpop.eup %589 }
 0x11b   : > { %591 = vrcp.f32 %v343_v24  ;;  %v344_v26 = vadd.f32 1.0, %v590_v25 }
 0x11d   : > { %593 = vrcp.f32 %v344_v26 }
 0x125   : > { %v592_v27 = vpop.eup %591 }
 0x126   : > { %v369_v41 = vsub.f32 1.0, %v592_v27 }
 0x127   : > { %v594_v30 = vpop.eup %593 }
 0x128   : > { %v370_v47 = vsub.f32 1.0, %v594_v30 }
 0x17c   : > { %v350_v28 = vpop.permute.xlu0 %349 }
 0x17d   : > { %v355_v29 = vmul.f32 %v592_v27, %v350_v28 }
 0x17f   : > { %359 = vrot.lane.b32.xlu1 %v355_v29, %s626_s26 }
 0x180   : > { %v352_v31 = vpop.permute.xlu0 %351 }
 0x181   : > { %v356_v32 = vmul.f32 %v594_v30, %v352_v31 }
 0x183   : > { %361 = vrot.lane.b32.xlu1 %v356_v32, %s626_s26 }
 0x1f1   : > { %v360_v33 = vpop.permute.xlu1 %359 }
 0x1f2   : > { %v365_v34 = vadd.f32 %v360_v33, %v244_v17 }
 0x1f4   : > { %595 = vtanh.f32 %v365_v34 }
 0x1f5   : > { %v362_v35 = vpop.permute.xlu1 %361 }
 0x1f6   : > { %v366_v36 = vadd.f32 %v362_v35, %v245_v19 }
 0x1f8   : > { %597 = vtanh.f32 %v366_v36 }
 0x1fe   : > { %v596_v37 = vpop.eup %595 }
 0x1ff   : > { %373 = vrot.lane.b32.xlu0 %v596_v37, %s627_s27 }
 0x202   : > { %v598_v38 = vpop.eup %597 }
 0x203   : > { %382 = vrot.lane.b32.xlu0 %v246_v11, %s628_s28  ;;  %375 = vrot.lane.b32.xlu1 %v598_v38, %s627_s27 }
 0x207   : > { %384 = vrot.lane.b32.xlu1 %v381_v39, %s628_s28 }
 0x271   : > { %v374_v40 = vpop.permute.xlu0 %373 }
 0x272   : > { %v379_v44 = vmul.f32 %v374_v40, %v369_v41 }
 0x275   : > { %v383_v42 = vpop.permute.xlu0 %382  ;;  %v376_v43 = vpop.permute.xlu1 %375 }
 0x276   : > { %v388_v45 = vmul.f32 %v592_v27, %v383_v42  ;;  %v380_v49 = vmul.f32 %v376_v43, %v370_v47 }
 0x278   : > { %v390_v46 = vadd.f32 %v388_v45, %v379_v44 }
 0x279   : > { %v385_v48 = vpop.permute.xlu1 %384 }
 0x27a   : > { %v389_v50 = vmul.f32 %v594_v30, %v385_v48  ;;  %399 = vrot.lane.b32.xlu1 %v390_v46, %s627_s27 }
 0x27c   : > { %v391_v51 = vadd.f32 %v389_v50, %v380_v49 }
 0x27e   : > { %v394_v52 = vcombine.low %v390_v46, %v391_v51 }
 0x280   : > { %395 = vrot.lane.b32.xlu0 %v394_v52, %s627_s27 }
 0x284   : > { %401 = vrot.lane.b32.xlu0 %v391_v51, %s627_s27 }
 0x2ec   : > { %v400_v53 = vpop.permute.xlu1 %399 }
 0x2ed   : > { %406 = vst.msk [vmem:[%s692_s8] sm:$0xf] %vm405_vm3, %v400_v53 }
 0x2f1   : > { %414 = sbr.rel (!%p679_p5) target bundleno = 768 (0x300), region = 85 }
 0x2f2   : > { %v396_v54 = vpop.permute.xlu0 %395 }
 0x2f3   : > { %398 = vst.msk [vmem:[#allocation2] sm:$0xff] %vm258_vm2, %v396_v54 }
 0x2f4   : > { %v432_v56 = vld [vmem:[%s692_s8] sm:$0xf] (%p679_p5) }
 0x2f5   : > { %433 = vst [vmem:[%s416_s6] sm:$0xf] (%p679_p5), %v432_v56 }
 0x2f6   : > { %v402_v55 = vpop.permute.xlu0 %401 }
 0x2f7   : > { %407 = vst.msk [vmem:[%s692_s8 + $0x4] sm:$0xf] %vm405_vm3, %v402_v55 }
 0x2fe   : > { %v434_v57 = vld [vmem:[%s692_s8 + $0x4] sm:$0xf] }
 0x2ff   : > { %435 = vst [vmem:[%s416_s6 + $0xc] sm:$0xf] %v434_v57 }
 0x300 PF: > { %p11_p11 = scmp.ge.s32.totalorder %s669_s19, 5   ;;  %s745_s15 = smov %s617_s16 }
 0x301   : > { %s746_s16 = smov %s677_s22  ;;  %s747_s17 = smov %s669_s19 }
 0x302   :  { %13 = sbr.rel (!%p11_p11) target bundleno = 2 (0x2), region = 157 }

// kernel: forward.3
= control target key start
LH: loop header
LB: loop body
LE: loop exit
PB: predicated region body
PF: predicated region fallthrough
CT: control target
= control target key end

     0   :  { %s3718_s21 = smov 0   ;;  %s4095_s0 = inlined_call_operand.vmem [shape: f32[6,8,16], index: 0, kind: input, shape index: {}]   ;;  %s4096_s1 = inlined_call_operand.vmem [shape: f32[6,4,8], index: 1, kind: input, shape index: {}]   ;;  %s4097_s2 = inlined_call_operand.vmem [shape: f32[6,4,1], index: 2, kind: input, shape index: {}]   ;;  %s4098_s3 = inlined_call_operand.vmem [shape: f32[16,32], index: 3, kind: input, shape index: {}]   ;;  %s4099_s4 = inlined_call_operand.vmem [shape: f32[1,32], index: 4, kind: input, shape index: {}]   ;;  %s4100_s5 = inlined_call_operand.vmem [shape: f32[32,96], index: 5, kind: input, shape index: {}]   ;;  %s4101_s6 = inlined_call_operand.vmem [shape: f32[32,32], index: 6, kind: input, shape index: {}]   ;;  %s4102_s7 = inlined_call_operand.vmem [shape: f32[1,32], index: 7, kind: input, shape index: {}]   ;;  %s4103_s8 = inlined_call_operand.vmem [shape: f32[32,32], index: 8, kind: input, shape index: {}]   ;;  %s4104_s9 = inlined_call_operand.vmem [shape: f32[1,32], index: 9, kind: input, shape index: {}]   ;;  %s4105_s10 = inlined_call_operand.vmem [shape: f32[32,96], index: 10, kind: input, shape index: {}]   ;;  %s4106_s11 = inlined_call_operand.vmem [shape: f32[1,96], index: 11, kind: input, shape index: {}]   ;;  %s4107_s12 = inlined_call_operand.vmem [shape: f32[6,4,96], index: 12, kind: output, shape index: {}]  }
   0x1 LB: > { %s3192_s22 = sadd.s32 4294967295, %s3632_s21   ;;  %p3196_p0 = scmp.ge.s32.totalorder %s3632_s21, 1  ;;  %s3632_s21 = sphi %s3718_s21, %s22_s21  }
   0x2   : > { %p385_p1 = scmp.lt.s32.totalorder %s3632_s21, 3 }
   0x4   : > { %p386_p2 = pnand %p3196_p0, %p385_p1 }
   0x5   : > { %v464_v0 = vld [vmem:[%s4098_s3] sm:$0xff] (!%p386_p2)  ;;  %v465_v1 = vld [vmem:[%s4098_s3 + $0x8] sm:$0xff] (!%p386_p2)  ;;  %s437_s27 = smul.u32 (!%p386_p2), 3, %s3192_s22  ;;  %v3634_v2 = vmov (!%p386_p2), 0.0|0.0   ;;  %vm3635_vm0 = vmmov (!%p386_p2), 0   ;;  %v3636_v4 = vmov (!%p386_p2), 0.0  }
   0x6   : > { %389 = sbr.rel (%p386_p2) target bundleno = 3811 (0xee3), region = 68  ;;  %3516 = vmatprep.subr.bf16.mxu0 (!%p386_p2), %v3634_v2  ;;  %v3517_v3 = vpack.c.bf16 (!%p386_p2), %v465_v1, %v464_v0  ;;  %3337 = vmatprep.mubr.msk.f32.mxu0 (!%p386_p2), %vm3635_vm0, %v3636_v4  ;;  %v572_v5 = vld [vmem:[%s4100_s5] sm:$0xff] (!%p386_p2)  ;;  %v573_v6 = vld [vmem:[%s4100_s5 + $0x8] sm:$0xff] (!%p386_p2)  ;;  %vm473_vm1 = vcmask (!%p386_p2), 130048   ;;  %v574_v11 = vld [vmem:[%s4100_s5 + $0x10] sm:$0xff] (!%p386_p2)  ;;  %vm581_vm2 = vcmask (!%p386_p2), 261120  }
   0x7   : > { %p438_p3 = scmp.lt.s32.totalorder (!%p386_p2), %s437_s27, 5  ;;  %3519 = vmatprep.subr.bf16.mxu1 (!%p386_p2), %v3634_v2  ;;  %v3520_v7 = vpack.c.bf16 (!%p386_p2), %v573_v6, %v572_v5  ;;  %3354 = vmatprep.mubr.msk.f32.mxu1 (!%p386_p2), %vm3635_vm0, %v3636_v4  ;;  %v575_v12 = vld [vmem:[%s4100_s5 + $0x18] sm:$0xff] (!%p386_p2)  ;;  %v3201_v14 = vld [vmem:[%s4099_s4] ss:$0 sm:$0xff] (!%p386_p2)  ;;  %s3637_s25 = smov (!%p386_p2), 96   ;;  %vm674_vm3 = vcmask (!%p386_p2), 64512  }
   0x8   : > { %3518 = vmatpush3.bf16.msra.mxu0 (!%p386_p2), %v3517_v3  ;;  %v3523_v13 = vpack.c.bf16 (!%p386_p2), %v575_v12, %v574_v11  ;;  %vm912_vm5 = vcmask (!%p386_p2), 60416   ;;  %s3639_s13 = smov (!%p386_p2), 88   ;;  %s3641_s15 = smov (!%p386_p2), 56  }
   0x9   : > { %3521 = vmatpush3.bf16.msra.mxu1 (!%p386_p2), %v3520_v7  ;;  %3363 = vmatprep.subr.mxu0 (!%p386_p2), %v3636_v4  ;;  %s3642_s16 = smov (!%p386_p2), 80   ;;  %s3644_s18 = smov (!%p386_p2), 48  }
   0xa   : > { %3522 = vmatprep.subr.bf16.mxu1 (!%p386_p2), %v3634_v2  ;;  %s3645_s19 = smov (!%p386_p2), 72   ;;  %s3646_s20 = smov (!%p386_p2), 104  }
   0xb   : > { %s3647_s22 = smov (!%p386_p2), 40   ;;  %s3648_s23 = smov (!%p386_p2), 8  }
   0xc   : > { %s3649_s24 = smov (!%p386_p2), 16  }
   0xd   : > { %s4109_s27 = smov (!%p438_p3, %s437_s27), 5  ;;  %3524 = vmatpush3.bf16.msra.mxu1 %v3523_v13 }
   0xe   : > { %s3197_s14 = sshll.u32 %s4109_s27, 3  ;;  %3373 = vmatprep.subr.mxu1 %v3636_v4  ;;  %s3805_s26 = sshll.u32 %s4109_s27, 2 }
   0xf   : > { %s441_s17 = scalar_lea.vmem %s4095_s0, %s3197_s14  ;;  %s447_s30 = scalar_lea.vmem %s4096_s1, %s3805_s26 }
  0x10   : > { %v461_v8 = vld [vmem:[%s441_s17] sm:$0xff]  ;;  %v462_v9 = vld [vmem:[%s441_s17 + $0x8] sm:$0xff]  ;;  %v463_v10 = vld [vmem:[%s441_s17 + $0x10] sm:$0xff]  ;;  %s3638_s27 = smov 64   ;;  %s3640_s14 = smov 120  }
  0x11   : > { %3338 = vmatmul.mubr.msk.f32.vlgmr.msra.gmra.mrb[0].mxu0 %vm473_vm1, %v461_v8  ;;  %v3811_v36 = vld [vmem:[%s447_s30] sm:$0xf]  ;;  %v3814_v40 = vld [vmem:[%s447_s30 + $0x4] sm:$0xf]  ;;  %v3820_v46 = vld [vmem:[%s447_s30 + $0x8] sm:$0xf] }
  0x12   : > { %3340 = vmatprep.mubr.msk.f32.mxu0 %vm3635_vm0, %v3636_v4  ;;  %vm906_vm4 = vcmp.ne.f32.partialorder %v3811_v36, 0.0  ;;  %vm907_vm6 = vcmp.ne.f32.partialorder %v3814_v40, 0.0  ;;  %vm908_vm7 = vcmp.ne.f32.partialorder %v3820_v46, 0.0  ;;  %s3643_s17 = smov 112  }
  0x15   : > { %3341 = vmatmul.mubr.msk.f32.gmra.mrb[2].mxu0 %vm473_vm1, %v462_v9 }
  0x16   : > { %3343 = vmatprep.mubr.msk.f32.mxu0 %vm3635_vm0, %v3636_v4 }
  0x19   : > { %3344 = vmatmul.mubr.msk.f32.gmra.mrb[4].mxu0 %vm473_vm1, %v463_v10 }
  0x1a   : > { %3365 = vmatprep.mubr.msk.f32.mxu0 %vm3635_vm0, %v3636_v4 }
  0xe4   : > { %v549_v15 = vpop.f32.mrb[0].mxu0 }
  0xe5   : > { %v550_v16 = vadd.f32 %v3201_v14, %v549_v15  ;;  %v3339_v17 = vpop.f32.mrb[1].mxu0 }
  0xe7   : > { %v563_v18 = vmax.f32 %v550_v16, 0.0 }
  0xe8   : > { %v554_v19 = vpop.f32.mrb[2].mxu0 }
  0xe9   : > { %v555_v20 = vadd.f32 %v3201_v14, %v554_v19  ;;  %3355 = vmatmul.mubr.msk.f32.vlgmr.msra.gmra.mrb[0].mxu1 %vm581_vm2, %v563_v18  ;;  %v3342_v21 = vpop.f32.mrb[3].mxu0 }
  0xea   : > { %3357 = vmatprep.mubr.msk.f32.mxu1 %vm3635_vm0, %v3636_v4 }
  0xeb   : > { %v564_v22 = vmax.f32 %v555_v20, 0.0 }
  0xec   : > { %v559_v23 = vpop.f32.mrb[4].mxu0 }
  0xed   : > { %v560_v24 = vadd.f32 %v3201_v14, %v559_v23  ;;  %3358 = vmatmul.mubr.msk.f32.gmra.mrb[2].mxu1 %vm581_vm2, %v564_v22  ;;  %v3345_v25 = vpop.f32.mrb[5].mxu0 }
  0xee   : > { %3360 = vmatprep.mubr.msk.f32.mxu1 %vm3635_vm0, %v3636_v4 }
  0xef   : > { %v565_v26 = vmax.f32 %v560_v24, 0.0 }
  0xf1   : > { %3361 = vmatmul.mubr.msk.f32.gmra.mrb[4].mxu1 %vm581_vm2, %v565_v26 }
  0xf2   : > { %3375 = vmatprep.mubr.msk.f32.mxu1 %vm3635_vm0, %v3636_v4 }
 0x1bc   : > { %v3777_v27 = vpop.f32.mrb[0].mxu1 }
 0x1bd   : > { %672 = vrot.lane.b32.xlu0 %v3777_v27, %s3637_s25  ;;  %v3356_v28 = vpop.f32.mrb[1].mxu1 }
 0x1c0   : > { %v3780_v29 = vpop.f32.mrb[2].mxu1 }
 0x1c1   : > { %750 = vrot.lane.b32.xlu0 %v3780_v29, %s3637_s25  ;;  %v3359_v30 = vpop.f32.mrb[3].mxu1 }
 0x1c4   : > { %v3783_v31 = vpop.f32.mrb[4].mxu1 }
 0x1c5   : > { %827 = vrot.lane.b32.xlu1 %v3783_v31, %s3637_s25  ;;  %v3362_v32 = vpop.f32.mrb[5].mxu1  ;;  %s3650_s25 = smov 24  }
 0x22f   : > { %v673_v33 = vpop.permute.xlu0 %672 }
 0x230   : > { %3364 = vmatpush3.xpose.msk.msra.mxu0 %vm674_vm3, %v673_v33 }
 0x231   : > { %3368 = vmatprep.subr.mxu0 %v3636_v4 }
 0x233   : > { %3366 = vmatmul.mubr.msk.f32.vlgmr.msra.gmra.mrb[6].mxu0 %vm674_vm3, %v3777_v27  ;;  %v751_v34 = vpop.permute.xlu0 %750 }
 0x234   : > { %3369 = vmatpush3.xpose.msk.msra.mxu0 %vm674_vm3, %v751_v34  ;;  %3370 = vmatprep.mubr.msk.f32.mxu0 %vm3635_vm0, %v3636_v4 }
 0x235   : > { %3378 = vmatprep.subr.mxu0 %v3636_v4 }
 0x237   : > { %3371 = vmatmul.mubr.msk.f32.vlgmr.msra.gmra.mrb[8].mxu0 %vm674_vm3, %v3780_v29  ;;  %v828_v35 = vpop.permute.xlu1 %827 }
 0x238   : > { %3374 = vmatpush3.xpose.msk.msra.mxu1 %vm674_vm3, %v828_v35  ;;  %3380 = vmatprep.mubr.msk.f32.mxu0 %vm3635_vm0, %v3636_v4 }
 0x239   : > { %3383 = vmatprep.subr.mxu1 %v3636_v4 }
 0x23b   : > { %3376 = vmatmul.mubr.msk.f32.vlgmr.msra.gmra.mrb[6].mxu1 %vm674_vm3, %v3783_v31 }
 0x23c   : > { %3385 = vmatprep.mubr.msk.f32.mxu1 %vm3635_vm0, %v3636_v4 }
 0x306   : > { %v745_v37 = vpop.f32.mrb[6].mxu0 }
 0x307   : > { %v903_v38 = vmul.f32 0.35355338, %v745_v37  ;;  %v3367_v39 = vpop.f32.mrb[7].mxu0 }
 0x309   : > { %v909_v41 = vsel %vm906_vm4, -inf, %v903_v38 }
 0x30a   : > { %v822_v42 = vpop.f32.mrb[8].mxu0  ;;  %v913_v43 = vsel %vm912_vm5, %v909_v41, -inf }
 0x30b   : > { %v904_v44 = vmul.f32 0.35355338, %v822_v42  ;;  %914 = vmax.xlane.f32.xlu1 %v913_v43  ;;  %v3372_v45 = vpop.f32.mrb[9].mxu0 }
 0x30d   : > { %v910_v47 = vsel %vm907_vm6, -inf, %v904_v44 }
 0x30e   : > { %v899_v48 = vpop.f32.mrb[6].mxu1  ;;  %v916_v49 = vsel %vm912_vm5, %v910_v47, -inf }
 0x30f   : > { %v905_v50 = vmul.f32 0.35355338, %v899_v48  ;;  %v3377_v51 = vpop.f32.mrb[7].mxu1  ;;  %917 = vmax.xlane.f32.xlu0 %v916_v49 }
 0x311   : > { %v911_v52 = vsel %vm908_vm7, -inf, %v905_v50 }
 0x312   : > { %v919_v53 = vsel %vm912_vm5, %v911_v52, -inf }
 0x313   : > { %920 = vmax.xlane.f32.xlu0 %v919_v53 }
 0x31c   : > { %1037 = vrot.lane.b32.xlu1 %v3780_v29, %s3638_s27 }
 0x320   : > { %1113 = vrot.lane.b32.xlu1 %v3783_v31, %s3638_s27 }
 0x329   : > { %961 = vrot.lane.b32.xlu0 %v3777_v27, %s3638_s27  ;;  %s459_s27 = scalar_lea.vmem %s4107_s12, %s3805_s26 }
 0x398   : > { %v915_v54 = vpop.xlane.xlu1 %914 }
 0x399   : > { %vm922_vm8 = vcmp.eq.f32.partialorder %v915_v54, -inf }
 0x39a   : > { %v925_v55 = vsel %vm922_vm8, 0.0, %v915_v54 }
 0x39b   : > { %v928_v56 = vsub.f32 %v909_v41, %v925_v55 }
 0x39c   : > { %v1038_v57 = vpop.permute.xlu1 %1037  ;;  %v918_v58 = vpop.xlane.xlu0 %917 }
 0x39d   : > { %v931_v59 = vmul.f32 1.442695, %v928_v56  ;;  %vm923_vm9 = vcmp.eq.f32.partialorder %v918_v58, -inf  ;;  %3384 = vmatpush3.msra.mxu1 %v1038_v57 }
 0x39e   : > { %v926_v60 = vsel %vm923_vm9, 0.0, %v918_v58  ;;  %3393 = vmatprep.subr.mxu1 %v3636_v4 }
 0x39f   : > { %3578 = vpow2.f32 %v931_v59  ;;  %v929_v61 = vsub.f32 %v910_v47, %v926_v60 }
 0x3a0   : > { %v921_v62 = vpop.xlane.xlu0 %920  ;;  %v1114_v11 = vpop.permute.xlu1 %1113 }
 0x3a1   : > { %v933_v63 = vmul.f32 1.442695, %v929_v61  ;;  %vm924_vm10 = vcmp.eq.f32.partialorder %v921_v62, -inf }
 0x3a2   : > { %v927_v6 = vsel %vm924_vm10, 0.0, %v921_v62 }
 0x3a3   : > { %3580 = vpow2.f32 %v933_v63  ;;  %v930_v7 = vsub.f32 %v911_v52, %v927_v6 }
 0x3a4   : > { %v962_v0 = vpop.permute.xlu0 %961 }
 0x3a5   : > { %3379 = vmatpush3.msra.mxu0 %v962_v0  ;;  %v935_v8 = vmul.f32 1.442695, %v930_v7 }
 0x3a6   : > { %3388 = vmatprep.subr.mxu0 %v3636_v4 }
 0x3a7   : > { %3582 = vpow2.f32 %v935_v8 }
 0x3a9   : > { %v3579_v1 = vpop.eup %3578 }
 0x3aa   : > { %v937_v2 = vsel %vm912_vm5, %v3579_v1, 0.0 }
 0x3ab   : > { %938 = vadd.xlane.f32.xlu1 %v937_v2 }
 0x3ad   : > { %v3581_v3 = vpop.eup %3580 }
 0x3ae   : > { %v940_v5 = vsel %vm912_vm5, %v3581_v3, 0.0 }
 0x3af   : > { %941 = vadd.xlane.f32.xlu0 %v940_v5 }
 0x3b1   : > { %v3583_v9 = vpop.eup %3582 }
 0x3b2   : > { %v943_v10 = vsel %vm912_vm5, %v3583_v9, 0.0 }
 0x3bc   : > { %1269 = vrot.lane.b32.xlu1 %v3780_v29, %s3639_s13 }
 0x3c5   : > { %1191 = vrot.lane.b32.xlu0 %v3777_v27, %s3639_s13 }
 0x3c9   : > { %1189 = vrot.lane.b32.xlu0 %v3777_v27, %s3640_s14 }
 0x3cd   : > { %1347 = vrot.lane.b32.xlu0 %v3783_v31, %s3639_s13 }
 0x3e0   : > { %944 = vadd.xlane.f32.xlu1 %v943_v10 }
 0x3f1   : > { %1267 = vrot.lane.b32.xlu1 %v3780_v29, %s3640_s14 }
 0x3f5   : > { %1345 = vrot.lane.b32.xlu1 %v3783_v31, %s3640_s14 }
 0x438   : > { %v939_v12 = vpop.xlane.xlu1 %938 }
 0x439   : > { %vm946_vm11 = vcmp.eq.f32.partialorder %v939_v12, 0.0 }
 0x43a   : > { %v949_v13 = vsel %vm946_vm11, 1.0, %v3636_v4 }
 0x43b   : > { %v952_v14 = vadd.f32 %v949_v13, %v939_v12 }
 0x43c   : > { %v942_v15 = vpop.xlane.xlu0 %941  ;;  %v1270_v25 = vpop.permute.xlu1 %1269 }
 0x43d   : > { %3584 = vrcp.f32 %v952_v14  ;;  %vm947_vm12 = vcmp.eq.f32.partialorder %v942_v15, 0.0 }
 0x43e   : > { %v950_v16 = vsel %vm947_vm12, 1.0, %v3636_v4 }
 0x43f   : > { %v953_v17 = vadd.f32 %v950_v16, %v942_v15 }
 0x440   : > { %v1192_v18 = vpop.permute.xlu0 %1191 }
 0x441   : > { %3586 = vrcp.f32 %v953_v17 }
 0x444   : > { %v1190_v22 = vpop.permute.xlu0 %1189 }
 0x447   : > { %v3585_v19 = vpop.eup %3584 }
 0x448   : > { %v956_v20 = vmul.f32 %v3585_v19, %v3579_v1  ;;  %v1348_v24 = vpop.permute.xlu0 %1347 }
 0x44a   : > { %3381 = vmatmul.mubr.msk.f32.vlgmr.msra.gmra.mrb[10].mxu0 %vm674_vm3, %v956_v20 }
 0x44b   : > { %v3587_v21 = vpop.eup %3586  ;;  %3389 = vmatpush3.msra.mxu0 %v1114_v11  ;;  %3390 = vmatprep.mubr.msk.f32.mxu0 %vm3635_vm0, %v3636_v4 }
 0x44c   : > { %v958_v23 = vmul.f32 %v3587_v21, %v3581_v3  ;;  %3398 = vmatprep.subr.mxu0 %v3636_v4 }
 0x44e   : > { %3386 = vmatmul.mubr.msk.f32.vlgmr.msra.gmra.mrb[8].mxu1 %vm674_vm3, %v958_v23 }
 0x44f   : > { %3394 = vmatpush3.xpose.msk.msra.mxu1 %vm674_vm3, %v1192_v18  ;;  %3395 = vmatprep.mubr.msk.f32.mxu1 %vm3635_vm0, %v3636_v4 }
 0x450   : > { %3403 = vmatprep.subr.mxu1 %v3636_v4 }
 0x452   : > { %3396 = vmatmul.mubr.msk.f32.vlgmr.msra.gmra.mrb[10].mxu1 %vm674_vm3, %v1190_v22 }
 0x453   : > { %3404 = vmatpush3.xpose.msk.msra.mxu1 %vm674_vm3, %v1348_v24  ;;  %3405 = vmatprep.mubr.msk.f32.mxu1 %vm3635_vm0, %v3636_v4 }
 0x454   : > { %3413 = vmatprep.subr.mxu1 %v3636_v4 }
 0x46d   : > { %v945_v26 = vpop.xlane.xlu1 %944 }
 0x46e   : > { %vm948_vm13 = vcmp.eq.f32.partialorder %v945_v26, 0.0 }
 0x46f   : > { %v951_v28 = vsel %vm948_vm13, 1.0, %v3636_v4 }
 0x470   : > { %v954_v30 = vadd.f32 %v951_v28, %v945_v26 }
 0x471   : > { %v1268_v32 = vpop.permute.xlu1 %1267 }
 0x472   : > { %3588 = vrcp.f32 %v954_v30 }
 0x475   : > { %v1346_v33 = vpop.permute.xlu1 %1345 }
 0x476   : > { %3406 = vmatmul.mubr.msk.f32.vlgmr.msra.gmra.mrb[12].mxu1 %vm674_vm3, %v1346_v33 }
 0x477   : > { %3415 = vmatprep.mubr.msk.f32.mxu1 %vm3635_vm0, %v3636_v4 }
 0x47c   : > { %v3589_v34 = vpop.eup %3588 }
 0x47d   : > { %v960_v35 = vmul.f32 %v3589_v34, %v3583_v9 }
 0x47f   : > { %3391 = vmatmul.mubr.msk.f32.vlgmr.msra.gmra.mrb[12].mxu0 %vm674_vm3, %v960_v35 }
 0x480   : > { %3399 = vmatpush3.xpose.msk.msra.mxu0 %vm674_vm3, %v1270_v25  ;;  %3400 = vmatprep.mubr.msk.f32.mxu0 %vm3635_vm0, %v3636_v4 }
 0x481   : > { %3408 = vmatprep.subr.mxu0 %v3636_v4 }
 0x483   : > { %3401 = vmatmul.mubr.msk.f32.vlgmr.msra.gmra.mrb[14].mxu0 %vm674_vm3, %v1268_v32 }
 0x484   : > { %3410 = vmatprep.mubr.msk.f32.mxu0 %vm3635_vm0, %v3636_v4 }
 0x51d   : > { %v3871_v37 = vpop.f32.mrb[10].mxu0 }
 0x51e   : > { %v3382_v38 = vpop.f32.mrb[11].mxu0 }
 0x521   : > { %v3873_v39 = vpop.f32.mrb[8].mxu1 }
 0x522   : > { %v3387_v41 = vpop.f32.mrb[9].mxu1 }
 0x525   : > { %v1263_v42 = vpop.f32.mrb[10].mxu1 }
 0x526   : > { %v1423_v43 = vmul.f32 0.35355338, %v1263_v42  ;;  %v3397_v44 = vpop.f32.mrb[11].mxu1 }
 0x528   : > { %v1426_v45 = vsel %vm906_vm4, -inf, %v1423_v43 }
 0x529   : > { %v1429_v47 = vsel %vm912_vm5, %v1426_v45, -inf }
 0x52a   : > { %1430 = vmax.xlane.f32.xlu0 %v1429_v47 }
 0x549   : > { %v1419_v48 = vpop.f32.mrb[12].mxu1 }
 0x54a   : > { %v1425_v49 = vmul.f32 0.35355338, %v1419_v48  ;;  %v3407_v50 = vpop.f32.mrb[13].mxu1 }
 0x54c   : > { %v1428_v51 = vsel %vm908_vm7, -inf, %v1425_v49 }
 0x54d   : > { %v1435_v52 = vsel %vm912_vm5, %v1428_v51, -inf }
 0x54e   : > { %1436 = vmax.xlane.f32.xlu0 %v1435_v52 }
 0x552   : > { %v3881_v53 = vpop.f32.mrb[12].mxu0 }
 0x553   : > { %v3392_v54 = vpop.f32.mrb[13].mxu0 }
 0x556   : > { %v1341_v55 = vpop.f32.mrb[14].mxu0 }
 0x557   : > { %v1424_v56 = vmul.f32 0.35355338, %v1341_v55  ;;  %v3402_v57 = vpop.f32.mrb[15].mxu0 }
 0x559   : > { %v1427_v58 = vsel %vm907_vm6, -inf, %v1424_v56 }
 0x55a   : > { %v1432_v59 = vsel %vm912_vm5, %v1427_v58, -inf }
 0x55b   : > { %1433 = vmax.xlane.f32.xlu1 %v1432_v59 }
 0x564   : > { %1477 = vrot.lane.b32.xlu0 %v3777_v27, %s3641_s15 }
 0x56c   : > { %1553 = vrot.lane.b32.xlu1 %v3780_v29, %s3641_s15 }
 0x570   : > { %1629 = vrot.lane.b32.xlu1 %v3783_v31, %s3641_s15 }
 0x574   : > { %1707 = vrot.lane.b32.xlu1 %v3777_v27, %s3642_s16 }
 0x5b7   : > { %v1431_v60 = vpop.xlane.xlu0 %1430 }
 0x5b8   : > { %vm1438_vm14 = vcmp.eq.f32.partialorder %v1431_v60, -inf }
 0x5b9   : > { %v1441_v61 = vsel %vm1438_vm14, 0.0, %v1431_v60 }
 0x5ba   : > { %v1444_v62 = vsub.f32 %v1426_v45, %v1441_v61 }
 0x5bc   : > { %v1447_v63 = vmul.f32 1.442695, %v1444_v62 }
 0x5be   : > { %3590 = vpow2.f32 %v1447_v63 }
 0x5c8   : > { %v3591_v0 = vpop.eup %3590 }
 0x5c9   : > { %v1453_v1 = vsel %vm912_vm5, %v3591_v0, 0.0 }
 0x5ca   : > { %1454 = vadd.xlane.f32.xlu0 %v1453_v1 }
 0x5db   : > { %v1437_v2 = vpop.xlane.xlu0 %1436 }
 0x5dc   : > { %vm1440_vm15 = vcmp.eq.f32.partialorder %v1437_v2, -inf }
 0x5dd   : > { %v1443_v3 = vsel %vm1440_vm15, 0.0, %v1437_v2 }
 0x5de   : > { %v1446_v5 = vsub.f32 %v1428_v51, %v1443_v3 }
 0x5df   : > { %v1478_v6 = vpop.permute.xlu0 %1477 }
 0x5e0   : > { %v1451_v7 = vmul.f32 1.442695, %v1446_v5  ;;  %3409 = vmatpush3.msra.mxu0 %v1478_v6 }
 0x5e1   : > { %3418 = vmatprep.subr.mxu0 %v3636_v4 }
 0x5e2   : > { %3592 = vpow2.f32 %v1451_v7 }
 0x5e8   : > { %v1434_v8 = vpop.xlane.xlu1 %1433 }
 0x5e9   : > { %vm1439_vm8 = vcmp.eq.f32.partialorder %v1434_v8, -inf }
 0x5ea   : > { %v1442_v9 = vsel %vm1439_vm8, 0.0, %v1434_v8 }
 0x5eb   : > { %v1445_v10 = vsub.f32 %v1427_v58, %v1442_v9 }
 0x5ec   : > { %v3593_v11 = vpop.eup %3592  ;;  %v1554_v12 = vpop.permute.xlu1 %1553 }
 0x5ed   : > { %v1449_v13 = vmul.f32 1.442695, %v1445_v10  ;;  %3414 = vmatpush3.msra.mxu1 %v1554_v12  ;;  %v1459_v14 = vsel %vm912_vm5, %v3593_v11, 0.0 }
 0x5ee   : > { %1460 = vadd.xlane.f32.xlu0 %v1459_v14  ;;  %3423 = vmatprep.subr.mxu1 %v3636_v4 }
 0x5ef   : > { %3594 = vpow2.f32 %v1449_v13 }
 0x5f0   : > { %v1630_v22 = vpop.permute.xlu1 %1629 }
 0x5f4   : > { %v1708_v26 = vpop.permute.xlu1 %1707 }
 0x5f9   : > { %v3595_v15 = vpop.eup %3594 }
 0x5fa   : > { %v1456_v16 = vsel %vm912_vm5, %v3595_v15, 0.0 }
 0x5fb   : > { %1457 = vadd.xlane.f32.xlu1 %v1456_v16 }
 0x604   : > { %1705 = vrot.lane.b32.xlu0 %v3777_v27, %s3643_s17 }
 0x608   : > { %1863 = vrot.lane.b32.xlu0 %v3783_v31, %s3642_s16 }
 0x60c   : > { %1861 = vrot.lane.b32.xlu0 %v3783_v31, %s3643_s17  ;;  %1785 = vrot.lane.b32.xlu1 %v3780_v29, %s3642_s16 }
 0x610   : > { %1783 = vrot.lane.b32.xlu1 %v3780_v29, %s3643_s17 }
 0x657   : > { %v1455_v17 = vpop.xlane.xlu0 %1454 }
 0x658   : > { %vm1462_vm9 = vcmp.eq.f32.partialorder %v1455_v17, 0.0 }
 0x659   : > { %v1465_v18 = vsel %vm1462_vm9, 1.0, %v3636_v4 }
 0x65a   : > { %v1468_v19 = vadd.f32 %v1465_v18, %v1455_v17 }
 0x65c   : > { %3596 = vrcp.f32 %v1468_v19 }
 0x666   : > { %v3597_v20 = vpop.eup %3596 }
 0x667   : > { %v1472_v21 = vmul.f32 %v3597_v20, %v3591_v0 }
 0x669   : > { %3411 = vmatmul.mubr.msk.f32.vlgmr.msra.gmra.mrb[16].mxu0 %vm674_vm3, %v1472_v21 }
 0x66a   : > { %3419 = vmatpush3.msra.mxu0 %v1630_v22  ;;  %3420 = vmatprep.mubr.msk.f32.mxu0 %vm3635_vm0, %v3636_v4 }
 0x66b   : > { %3428 = vmatprep.subr.mxu0 %v3636_v4 }
 0x67b   : > { %v1461_v23 = vpop.xlane.xlu0 %1460 }
 0x67c   : > { %vm1464_vm10 = vcmp.eq.f32.partialorder %v1461_v23, 0.0 }
 0x67d   : > { %v1467_v24 = vsel %vm1464_vm10, 1.0, %v3636_v4 }
 0x67e   : > { %v1470_v25 = vadd.f32 %v1467_v24, %v1461_v23 }
 0x67f   : > { %v1706_v41 = vpop.permute.xlu0 %1705 }
 0x680   : > { %3598 = vrcp.f32 %v1470_v25 }
 0x683   : > { %v1864_v44 = vpop.permute.xlu0 %1863 }
 0x687   : > { %v1862_v45 = vpop.permute.xlu0 %1861 }
 0x688   : > { %v1458_v28 = vpop.xlane.xlu1 %1457 }
 0x689   : > { %vm1463_vm11 = vcmp.eq.f32.partialorder %v1458_v28, 0.0 }
 0x68a   : > { %v3599_v30 = vpop.eup %3598  ;;  %v1466_v32 = vsel %vm1463_vm11, 1.0, %v3636_v4 }
 0x68b   : > { %v1469_v33 = vadd.f32 %v1466_v32, %v1458_v28  ;;  %v1476_v34 = vmul.f32 %v3599_v30, %v3593_v11 }
 0x68c   : > { %v1786_v35 = vpop.permute.xlu1 %1785 }
 0x68d   : > { %3600 = vrcp.f32 %v1469_v33  ;;  %3421 = vmatmul.mubr.msk.f32.vlgmr.msra.gmra.mrb[18].mxu0 %vm674_vm3, %v1476_v34 }
 0x68e   : > { %3429 = vmatpush3.xpose.msk.msra.mxu0 %vm674_vm3, %v1786_v35  ;;  %3430 = vmatprep.mubr.msk.f32.mxu0 %vm3635_vm0, %v3636_v4 }
 0x68f   : > { %3438 = vmatprep.subr.mxu0 %v3636_v4 }
 0x690   : > { %v1784_v38 = vpop.permute.xlu1 %1783 }
 0x691   : > { %3431 = vmatmul.mubr.msk.f32.vlgmr.msra.gmra.mrb[20].mxu0 %vm674_vm3, %v1784_v38 }
 0x692   : > { %3440 = vmatprep.mubr.msk.f32.mxu0 %vm3635_vm0, %v3636_v4 }
 0x697   : > { %v3601_v42 = vpop.eup %3600 }
 0x698   : > { %v1474_v43 = vmul.f32 %v3601_v42, %v3595_v15 }
 0x69a   : > { %3416 = vmatmul.mubr.msk.f32.vlgmr.msra.gmra.mrb[14].mxu1 %vm674_vm3, %v1474_v43 }
 0x69b   : > { %3424 = vmatpush3.xpose.msk.msra.mxu1 %vm674_vm3, %v1708_v26  ;;  %3425 = vmatprep.mubr.msk.f32.mxu1 %vm3635_vm0, %v3636_v4 }
 0x69c   : > { %3433 = vmatprep.subr.mxu1 %v3636_v4 }
 0x69e   : > { %3426 = vmatmul.mubr.msk.f32.vlgmr.msra.gmra.mrb[16].mxu1 %vm674_vm3, %v1706_v41 }
 0x69f   : > { %3434 = vmatpush3.xpose.msk.msra.mxu1 %vm674_vm3, %v1864_v44  ;;  %3435 = vmatprep.mubr.msk.f32.mxu1 %vm3635_vm0, %v3636_v4 }
 0x6a0   : > { %3443 = vmatprep.subr.mxu1 %v3636_v4 }
 0x6a2   : > { %3436 = vmatmul.mubr.msk.f32.vlgmr.msra.gmra.mrb[18].mxu1 %vm674_vm3, %v1862_v45 }
 0x6a3   : > { %3445 = vmatprep.mubr.msk.f32.mxu1 %vm3635_vm0, %v3636_v4 }
 0x73c   : > { %v3931_v47 = vpop.f32.mrb[16].mxu0 }
 0x73d   : > { %v3412_v48 = vpop.f32.mrb[17].mxu0 }
 0x760   : > { %v3933_v49 = vpop.f32.mrb[18].mxu0 }
 0x761   : > { %v3422_v50 = vpop.f32.mrb[19].mxu0 }
 0x764   : > { %v1857_v51 = vpop.f32.mrb[20].mxu0 }
 0x765   : > { %v1940_v52 = vmul.f32 0.35355338, %v1857_v51  ;;  %v3432_v54 = vpop.f32.mrb[21].mxu0 }
 0x767   : > { %v1943_v55 = vsel %vm907_vm6, -inf, %v1940_v52 }
 0x768   : > { %v1948_v56 = vsel %vm912_vm5, %v1943_v55, -inf }
 0x769   : > { %1949 = vmax.xlane.f32.xlu0 %v1948_v56 }
 0x76d   : > { %v3938_v57 = vpop.f32.mrb[14].mxu1 }
 0x76e   : > { %v3417_v58 = vpop.f32.mrb[15].mxu1 }
 0x771   : > { %v1779_v59 = vpop.f32.mrb[16].mxu1 }
 0x772   : > { %v1939_v60 = vmul.f32 0.35355338, %v1779_v59  ;;  %v3427_v61 = vpop.f32.mrb[17].mxu1 }
 0x774   : > { %v1942_v62 = vsel %vm906_vm4, -inf, %v1939_v60 }
 0x775   : > { %v1935_v63 = vpop.f32.mrb[18].mxu1  ;;  %v1945_v0 = vsel %vm912_vm5, %v1942_v62, -inf }
 0x776   : > { %v1941_v1 = vmul.f32 0.35355338, %v1935_v63  ;;  %1946 = vmax.xlane.f32.xlu1 %v1945_v0  ;;  %v3437_v2 = vpop.f32.mrb[19].mxu1 }
 0x778   : > { %v1944_v3 = vsel %vm908_vm7, -inf, %v1941_v1 }
 0x779   : > { %v1951_v5 = vsel %vm912_vm5, %v1944_v3, -inf }
 0x77a   : > { %1952 = vmax.xlane.f32.xlu0 %v1951_v5 }
 0x787   : > { %2069 = vrot.lane.b32.xlu1 %v3780_v29, %s3644_s18 }
 0x78b   : > { %2145 = vrot.lane.b32.xlu1 %v3783_v31, %s3644_s18 }
 0x790   : > { %1993 = vrot.lane.b32.xlu0 %v3777_v27, %s3644_s18 }
 0x7f6   : > { %v1950_v6 = vpop.xlane.xlu0 %1949 }
 0x7f7   : > { %vm1955_vm12 = vcmp.eq.f32.partialorder %v1950_v6, -inf }
 0x7f8   : > { %v1958_v7 = vsel %vm1955_vm12, 0.0, %v1950_v6 }
 0x7f9   : > { %v1961_v8 = vsub.f32 %v1943_v55, %v1958_v7 }
 0x7fb   : > { %v1965_v9 = vmul.f32 1.442695, %v1961_v8 }
 0x7fd   : > { %3602 = vpow2.f32 %v1965_v9 }
 0x803   : > { %v1947_v10 = vpop.xlane.xlu1 %1946 }
 0x804   : > { %vm1954_vm13 = vcmp.eq.f32.partialorder %v1947_v10, -inf }
 0x805   : > { %v1957_v11 = vsel %vm1954_vm13, 0.0, %v1947_v10 }
 0x806   : > { %v1960_v12 = vsub.f32 %v1942_v62, %v1957_v11 }
 0x807   : > { %v3603_v13 = vpop.eup %3602  ;;  %v2070_v14 = vpop.permute.xlu1 %2069 }
 0x808   : > { %v1953_v15 = vpop.xlane.xlu0 %1952  ;;  %v1963_v16 = vmul.f32 1.442695, %v1960_v12  ;;  %3444 = vmatpush3.msra.mxu1 %v2070_v14  ;;  %v1972_v17 = vsel %vm912_vm5, %v3603_v13, 0.0 }
 0x809   : > { %1973 = vadd.xlane.f32.xlu0 %v1972_v17  ;;  %3453 = vmatprep.subr.mxu1 %v3636_v4  ;;  %vm1956_vm14 = vcmp.eq.f32.partialorder %v1953_v15, -inf }
 0x80a   : > { %3604 = vpow2.f32 %v1963_v16  ;;  %v1959_v21 = vsel %vm1956_vm14, 0.0, %v1953_v15  ;;  %vm2779_vm14 = vcmask 195584  }
 0x80b   : > { %v1962_v22 = vsub.f32 %v1944_v3, %v1959_v21  ;;  %v2146_v32 = vpop.permute.xlu1 %2145 }
 0x80c   : > { %v1994_v18 = vpop.permute.xlu0 %1993 }
 0x80d   : > { %3439 = vmatpush3.msra.mxu0 %v1994_v18  ;;  %v1967_v23 = vmul.f32 1.442695, %v1962_v22 }
 0x80e   : > { %3448 = vmatprep.subr.mxu0 %v3636_v4 }
 0x80f   : > { %3606 = vpow2.f32 %v1967_v23 }
 0x814   : > { %v3605_v19 = vpop.eup %3604 }
 0x815   : > { %v1969_v20 = vsel %vm912_vm5, %v3605_v19, 0.0 }
 0x816   : > { %1970 = vadd.xlane.f32.xlu1 %v1969_v20 }
 0x819   : > { %v3607_v24 = vpop.eup %3606 }
 0x81a   : > { %v1975_v25 = vsel %vm912_vm5, %v3607_v24, 0.0 }
 0x81f   : > { %2223 = vrot.lane.b32.xlu0 %v3777_v27, %s3645_s19 }
 0x823   : > { %2221 = vrot.lane.b32.xlu0 %v3777_v27, %s3646_s20 }
 0x827   : > { %2301 = vrot.lane.b32.xlu1 %v3780_v29, %s3645_s19  ;;  %2379 = vrot.lane.b32.xlu0 %v3783_v31, %s3645_s19  ;;  %s453_s19 = scalar_lea.vmem %s4097_s2, %s3805_s26 }
 0x84b   : > { %1976 = vadd.xlane.f32.xlu1 %v1975_v25 }
 0x85c   : > { %2299 = vrot.lane.b32.xlu1 %v3780_v29, %s3646_s20 }
 0x860   : > { %2377 = vrot.lane.b32.xlu1 %v3783_v31, %s3646_s20 }
 0x896   : > { %v1974_v26 = vpop.xlane.xlu0 %1973 }
 0x897   : > { %vm1979_vm15 = vcmp.eq.f32.partialorder %v1974_v26, 0.0 }
 0x898   : > { %v1982_v28 = vsel %vm1979_vm15, 1.0, %v3636_v4 }
 0x899   : > { %v1985_v30 = vadd.f32 %v1982_v28, %v1974_v26 }
 0x89a   : > { %v2224_v33 = vpop.permute.xlu0 %2223 }
 0x89b   : > { %3608 = vrcp.f32 %v1985_v30 }
 0x89e   : > { %v2222_v41 = vpop.permute.xlu0 %2221 }
 0x8a2   : > { %v2380_v44 = vpop.permute.xlu0 %2379 }
 0x8a3   : > { %v1971_v34 = vpop.xlane.xlu1 %1970 }
 0x8a4   : > { %vm1978_vm8 = vcmp.eq.f32.partialorder %v1971_v34, 0.0 }
 0x8a5   : > { %v3609_v35 = vpop.eup %3608  ;;  %v1981_v38 = vsel %vm1978_vm8, 1.0, %v3636_v4  ;;  %vm3108_vm8 = vcmask 781312  }
 0x8a6   : > { %v1984_v42 = vadd.f32 %v1981_v38, %v1971_v34  ;;  %v1990_v43 = vmul.f32 %v3609_v35, %v3603_v13 }
 0x8a7   : > { %v2302_v50 = vpop.permute.xlu1 %2301 }
 0x8a8   : > { %3610 = vrcp.f32 %v1984_v42  ;;  %3446 = vmatmul.mubr.msk.f32.vlgmr.msra.gmra.mrb[20].mxu1 %vm674_vm3, %v1990_v43 }
 0x8a9   : > { %3454 = vmatpush3.xpose.msk.msra.mxu1 %vm674_vm3, %v2224_v33  ;;  %3455 = vmatprep.mubr.msk.f32.mxu1 %vm3635_vm0, %v3636_v4 }
 0x8aa   : > { %3463 = vmatprep.subr.mxu1 %v3636_v4 }
 0x8ac   : > { %3456 = vmatmul.mubr.msk.f32.vlgmr.msra.gmra.mrb[22].mxu1 %vm674_vm3, %v2222_v41 }
 0x8ad   : > { %3464 = vmatpush3.xpose.msk.msra.mxu1 %vm674_vm3, %v2380_v44  ;;  %3465 = vmatprep.mubr.msk.f32.mxu1 %vm3635_vm0, %v3636_v4 }
 0x8ae   : > { %3473 = vmatprep.subr.mxu1 %v3636_v4 }
 0x8b2   : > { %v3611_v45 = vpop.eup %3610 }
 0x8b3   : > { %v1988_v48 = vmul.f32 %v3611_v45, %v3605_v19 }
 0x8b5   : > { %3441 = vmatmul.mubr.msk.f32.vlgmr.msra.gmra.mrb[22].mxu0 %vm674_vm3, %v1988_v48 }
 0x8b6   : > { %3449 = vmatpush3.msra.mxu0 %v2146_v32  ;;  %3450 = vmatprep.mubr.msk.f32.mxu0 %vm3635_vm0, %v3636_v4 }
 0x8b7   : > { %3458 = vmatprep.subr.mxu0 %v3636_v4 }
 0x8d8   : > { %v1977_v51 = vpop.xlane.xlu1 %1976 }
 0x8d9   : > { %vm1980_vm9 = vcmp.eq.f32.partialorder %v1977_v51, 0.0 }
 0x8da   : > { %v1983_v52 = vsel %vm1980_vm9, 1.0, %v3636_v4 }
 0x8db   : > { %v1986_v54 = vadd.f32 %v1983_v52, %v1977_v51 }
 0x8dc   : > { %v2300_v55 = vpop.permute.xlu1 %2299 }
 0x8dd   : > { %3612 = vrcp.f32 %v1986_v54 }
 0x8e0   : > { %v2378_v56 = vpop.permute.xlu1 %2377 }
 0x8e1   : > { %3466 = vmatmul.mubr.msk.f32.vlgmr.msra.gmra.mrb[24].mxu1 %vm674_vm3, %v2378_v56 }
 0x8e2   : > { %3475 = vmatprep.mubr.msk.f32.mxu1 %vm3635_vm0, %v3636_v4 }
 0x8e7   : > { %v3613_v58 = vpop.eup %3612 }
 0x8e8   : > { %v1992_v59 = vmul.f32 %v3613_v58, %v3607_v24 }
 0x8ea   : > { %3451 = vmatmul.mubr.msk.f32.vlgmr.msra.gmra.mrb[24].mxu0 %vm674_vm3, %v1992_v59  ;;  %v577_v59 = vld [vmem:[%s4101_s6 + $0x8] sm:$0xff] }
 0x8eb   : > { %3459 = vmatpush3.xpose.msk.msra.mxu0 %vm674_vm3, %v2302_v50  ;;  %3460 = vmatprep.mubr.msk.f32.mxu0 %vm3635_vm0, %v3636_v4 }
 0x8ec   : > { %3468 = vmatprep.subr.mxu0 %v3636_v4 }
 0x8ee   : > { %3461 = vmatmul.mubr.msk.f32.vlgmr.msra.gmra.mrb[26].mxu0 %vm674_vm3, %v2300_v55 }
 0x8ef   : > { %3470 = vmatprep.mubr.msk.f32.mxu0 %vm3635_vm0, %v3636_v4 }
 0x97b   : > { %v2141_v60 = vpop.f32.mrb[20].mxu1 }
 0x97c   : > { %v3447_v61 = vpop.f32.mrb[21].mxu1 }
 0x97f   : > { %v2295_v62 = vpop.f32.mrb[22].mxu1 }
 0x980   : > { %v2455_v63 = vmul.f32 0.35355338, %v2295_v62  ;;  %v3457_v0 = vpop.f32.mrb[23].mxu1  ;;  %v578_v62 = vld [vmem:[%s4101_s6 + $0x10] sm:$0xff] }
 0x982   : > { %v2458_v1 = vsel %vm906_vm4, -inf, %v2455_v63  ;;  %v579_v63 = vld [vmem:[%s4101_s6 + $0x18] sm:$0xff] }
 0x983   : > { %v2461_v2 = vsel %vm912_vm5, %v2458_v1, -inf }
 0x984   : > { %2462 = vmax.xlane.f32.xlu0 %v2461_v2  ;;  %v3651_v2 = vmov 0  }
 0x985   : > { %3577 = vset.pattern.permute.xlu1 %v3651_v2  ;;  %3576 = vset.pattern.permute.xlu0 %v3651_v2 }
 0x988   : > { %v2065_v3 = vpop.f32.mrb[22].mxu0 }
 0x989   : > { %v3442_v5 = vpop.f32.mrb[23].mxu0 }
 0x98a   : > { %v571_v5 = vld [vmem:[%s453_s19 + $0x8] sm:$0xf] }
 0x98b   : > { %vm2874_vm12 = vcmp.ne.f32.partialorder %v571_v5, 0.0 }
 0x9b4   : > { %v2451_v6 = vpop.f32.mrb[24].mxu1 }
 0x9b5   : > { %v2457_v7 = vmul.f32 0.35355338, %v2451_v6  ;;  %v3467_v8 = vpop.f32.mrb[25].mxu1 }
 0x9b7   : > { %v2460_v9 = vsel %vm908_vm7, -inf, %v2457_v7  ;;  %v2877_v7 = vsel %vm2874_vm12, 1, %v3651_v2 }
 0x9b8   : > { %v2467_v10 = vsel %vm912_vm5, %v2460_v9, -inf }
 0x9b9   : > { %2468 = vmax.xlane.f32.xlu0 %v2467_v10 }
 0x9bd   : > { %v3994_v11 = vpop.f32.mrb[24].mxu0 }
 0x9be   : > { %v3452_v12 = vpop.f32.mrb[25].mxu0 }
 0x9c1   : > { %v2373_v13 = vpop.f32.mrb[26].mxu0 }
 0x9c2   : > { %v2456_v36 = vmul.f32 0.35355338, %v2373_v13  ;;  %v3462_v14 = vpop.f32.mrb[27].mxu0 }
 0x9c4   : > { %v2459_v15 = vsel %vm907_vm6, -inf, %v2456_v36 }
 0x9c5   : > { %v2464_v16 = vsel %vm912_vm5, %v2459_v15, -inf }
 0x9c6   : > { %2465 = vmax.xlane.f32.xlu1 %v2464_v16 }
 0x9d7   : > { %2509 = vrot.lane.b32.xlu1 %v3777_v27, %s3647_s22 }
 0xa11   : > { %v2463_v46 = vpop.xlane.xlu0 %2462 }
 0xa12   : > { %vm2470_vm4 = vcmp.eq.f32.partialorder %v2463_v46, -inf }
 0xa13   : > { %v2473_v17 = vsel %vm2470_vm4, 0.0, %v2463_v46 }
 0xa14   : > { %v2476_v18 = vsub.f32 %v2458_v1, %v2473_v17  ;;  %v3529_v1 = vpack.c.bf16 %v579_v63, %v578_v62  ;;  %v3016_v62 = vld [vmem:[%s4105_s10 + $0x18] sm:$0xff] }
 0xa16   : > { %v2479_v19 = vmul.f32 1.442695, %v2476_v18 }
 0xa18   : > { %3614 = vpow2.f32 %v2479_v19 }
 0xa22   : > { %v3615_v20 = vpop.eup %3614 }
 0xa23   : > { %v2485_v21 = vsel %vm912_vm5, %v3615_v20, 0.0 }
 0xa24   : > { %2486 = vadd.xlane.f32.xlu0 %v2485_v21 }
 0xa46   : > { %v2469_v22 = vpop.xlane.xlu0 %2468 }
 0xa47   : > { %vm2472_vm7 = vcmp.eq.f32.partialorder %v2469_v22, -inf }
 0xa48   : > { %v2475_v40 = vsel %vm2472_vm7, 0.0, %v2469_v22 }
 0xa49   : > { %v2478_v23 = vsub.f32 %v2460_v9, %v2475_v40  ;;  %v569_v9 = vld [vmem:[%s453_s19] sm:$0xf] }
 0xa4a   : > { %vm2872_vm13 = vcmp.ne.f32.partialorder %v569_v9, 0.0 }
 0xa4b   : > { %v2483_v24 = vmul.f32 1.442695, %v2478_v23  ;;  %v2875_v12 = vsel %vm2872_vm13, 1, %v3651_v2 }
 0xa4d   : > { %3616 = vpow2.f32 %v2483_v24 }
 0xa53   : > { %v2466_v25 = vpop.xlane.xlu1 %2465 }
 0xa54   : > { %vm2471_vm6 = vcmp.eq.f32.partialorder %v2466_v25, -inf }
 0xa55   : > { %v2474_v26 = vsel %vm2471_vm6, 0.0, %v2466_v25 }
 0xa56   : > { %v2477_v27 = vsub.f32 %v2459_v15, %v2474_v26 }
 0xa57   : > { %v3617_v28 = vpop.eup %3616  ;;  %v2510_v30 = vpop.permute.xlu1 %2509 }
 0xa58   : > { %v2481_v32 = vmul.f32 1.442695, %v2477_v27  ;;  %3469 = vmatpush3.msra.mxu0 %v2510_v30  ;;  %v2491_v33 = vsel %vm912_vm5, %v3617_v28, 0.0  ;;  %v2918_v27 = vld [vmem:[%s4103_s8 + $0x8] sm:$0xff]  ;;  %v2920_v30 = vld [vmem:[%s4103_s8 + $0x18] sm:$0xff] }
 0xa59   : > { %2492 = vadd.xlane.f32.xlu0 %v2491_v33  ;;  %3478 = vmatprep.subr.mxu0 %v3636_v4  ;;  %v3013_v33 = vld [vmem:[%s4105_s10] sm:$0xff] }
 0xa5a   : > { %3618 = vpow2.f32 %v2481_v32 }
 0xa64   : > { %v3619_v34 = vpop.eup %3618 }
 0xa65   : > { %v2488_v35 = vsel %vm912_vm5, %v3619_v34, 0.0 }
 0xa66   : > { %2489 = vadd.xlane.f32.xlu1 %v2488_v35 }
 0xa6f   : > { %2585 = vrot.lane.b32.xlu0 %v3780_v29, %s3647_s22 }
 0xa73   : > { %2742 = vrot.lane.b32.xlu0 %v3938_v57, %s3648_s23 }
 0xa77   : > { %2754 = vrot.lane.b32.xlu0 %v2141_v60, %s3649_s24  ;;  %2661 = vrot.lane.b32.xlu1 %v3783_v31, %s3647_s22 }
 0xa7b   : > { %2740 = vrot.lane.b32.xlu1 %v3931_v47, %s3648_s23 }
 0xa7f   : > { %2752 = vrot.lane.b32.xlu1 %v2065_v3, %s3649_s24  ;;  %v570_v3 = vld [vmem:[%s453_s19 + $0x4] sm:$0xf] }
 0xa83   : > { %2744 = vrot.lane.b32.xlu1 %v3933_v49, %s3648_s23 }
 0xab1   : > { %v2487_v38 = vpop.xlane.xlu0 %2486 }
 0xab2   : > { %vm2494_vm5 = vcmp.eq.f32.partialorder %v2487_v38, 0.0 }
 0xab3   : > { %v2497_v41 = vsel %vm2494_vm5, 1.0, %v3636_v4 }
 0xab4   : > { %v2500_v29 = vadd.f32 %v2497_v41, %v2487_v38  ;;  %v3652_v38 = vmov 839922192  }
 0xab5   : > { %v2882_v41 = vunpack.c.l.s4 %v3652_v38 }
 0xab6   : > { %3620 = vrcp.f32 %v2500_v29  ;;  %v2884_v29 = vlaneseq }
 0xac0   : > { %v3621_v42 = vpop.eup %3620 }
 0xac1   : > { %v2504_v57 = vmul.f32 %v3621_v42, %v3615_v20  ;;  %v2883_v42 = vunpack.c.0.s8 %v2882_v41 }
 0xac3   : > { %3471 = vmatmul.mubr.msk.f32.vlgmr.msra.gmra.mrb[28].mxu0 %vm674_vm3, %v2504_v57  ;;  %v2885_v57 = vshrl.u32 %v2884_v29, 7 }
 0xac4   : > { %3480 = vmatprep.mubr.msk.f32.mxu0 %vm3635_vm0, %v3636_v4  ;;  %vm2873_vm0 = vcmp.ne.f32.partialorder %v570_v3, 0.0 }
 0xac5   : > { %v2876_v6 = vsel %vm2873_vm0, 1, %v3651_v2 }
 0xae6   : > { %v2493_v31 = vpop.xlane.xlu0 %2492 }
 0xae7   : > { %vm2496_vm10 = vcmp.eq.f32.partialorder %v2493_v31, 0.0 }
 0xae8   : > { %v2499_v47 = vsel %vm2496_vm10, 1.0, %v3636_v4 }
 0xae9   : > { %v2502_v43 = vadd.f32 %v2499_v47, %v2493_v31  ;;  %v2886_v47 = vsub.s32 %v2883_v42, %v2885_v57 }
 0xaea   : > { %v2586_v44 = vpop.permute.xlu0 %2585 }
 0xaeb   : > { %3622 = vrcp.f32 %v2502_v43  ;;  %3474 = vmatpush3.msra.mxu1 %v2586_v44 }
 0xaee   : > { %v2743_v14 = vpop.permute.xlu0 %2742 }
 0xaef   : > { %v2774_v17 = vsel %vm674_vm3, %v3873_v39, %v2743_v14 }
 0xaf2   : > { %v2755_v16 = vpop.permute.xlu0 %2754 }
 0xaf3   : > { %v2490_v49 = vpop.xlane.xlu1 %2489  ;;  %v2777_v19 = vsel %vm473_vm1, %v2774_v17, %v2755_v16 }
 0xaf4   : > { %vm2495_vm11 = vcmp.eq.f32.partialorder %v2490_v49, 0.0 }
 0xaf5   : > { %v3623_v45 = vpop.eup %3622  ;;  %v2498_v48 = vsel %vm2495_vm11, 1.0, %v3636_v4  ;;  %v576_v4 = vld [vmem:[%s4101_s6] sm:$0xff] }
 0xaf6   : > { %v2501_v50 = vadd.f32 %v2498_v48, %v2490_v49  ;;  %v2508_v51 = vmul.f32 %v3623_v45, %v3617_v28  ;;  %v3525_v60 = vpack.c.bf16 %v577_v59, %v576_v4  ;;  %v3244_v48 = vld [vmem:[%s4102_s7] ss:$0 sm:$0xff] }
 0xaf7   : > { %v2662_v52 = vpop.permute.xlu1 %2661 }
 0xaf8   : > { %3624 = vrcp.f32 %v2501_v50  ;;  %3479 = vmatpush3.msra.mxu0 %v2662_v52  ;;  %3526 = vmatprep.subr.bf16.mxu1 %v3525_v60 }
 0xaf9   : > { %3481 = vmatmul.mubr.msk.f32.vlgmr.msra.gmra.mrb[30].mxu0 %vm674_vm3, %v2508_v51 }
 0xafb   : > { %v2741_v13 = vpop.permute.xlu1 %2740 }
 0xafc   : > { %v2773_v18 = vsel %vm674_vm3, %v3871_v37, %v2741_v13  ;;  %v2917_v37 = vld [vmem:[%s4103_s8] sm:$0xff] }
 0xafd   : > { %v3533_v28 = vpack.c.bf16 %v2918_v27, %v2917_v37 }
 0xaff   : > { %v2753_v36 = vpop.permute.xlu1 %2752  ;;  %3534 = vmatprep.subr.bf16.mxu0 %v3533_v28 }
 0xb00   : > { %v2776_v20 = vsel %vm473_vm1, %v2773_v18, %v2753_v36  ;;  %3536 = vmatpush3.bf16.msra.mxu0 %v3533_v28 }
 0xb02   : > { %v3625_v54 = vpop.eup %3624 }
 0xb03   : > { %v2506_v55 = vmul.f32 %v3625_v54, %v3619_v34  ;;  %v2745_v15 = vpop.permute.xlu1 %2744  ;;  %v3014_v34 = vld [vmem:[%s4105_s10 + $0x8] sm:$0xff] }
 0xb04   : > { %v2775_v23 = vsel %vm674_vm3, %v3881_v53, %v2745_v15  ;;  %v2919_v53 = vld [vmem:[%s4103_s8 + $0x10] sm:$0xff]  ;;  %v3541_v35 = vpack.c.bf16 %v3014_v34, %v3013_v33 }
 0xb05   : > { %3476 = vmatmul.mubr.msk.f32.vlgmr.msra.gmra.mrb[26].mxu1 %vm674_vm3, %v2506_v55  ;;  %v3537_v32 = vpack.c.bf16 %v2920_v30, %v2919_v53 }
 0xb06   : > { %3528 = vmatpush3.bf16.msra.mxu1 %v3525_v60 }
 0xb07   : > { %3530 = vmatprep.subr.bf16.mxu1 %v3529_v1  ;;  %3538 = vmatprep.subr.bf16.mxu0 %v3537_v32 }
 0xb08   : > { %3540 = vmatpush3.bf16.msra.mxu0 %v3537_v32 }
 0xb0a   : > { %3532 = vmatpush3.bf16.msra.mxu1 %v3529_v1 }
 0xb0b   : > { %3542 = vmatprep.subr.bf16.mxu1 %v3541_v35 }
 0xb96   : > { %v2581_v56 = vpop.f32.mrb[28].mxu0 }
 0xb97   : > { %2764 = vrot.lane.b32.xlu1 %v2581_v56, %s3650_s25  ;;  %v3472_v58 = vpop.f32.mrb[29].mxu0 }
 0xbcc   : > { %v2733_v61 = vpop.f32.mrb[30].mxu0 }
 0xbcd   : > { %2768 = vrot.lane.b32.xlu1 %v2733_v61, %s3650_s25  ;;  %v3482_v0 = vpop.f32.mrb[31].mxu0  ;;  %v3015_v61 = vld [vmem:[%s4105_s10 + $0x10] sm:$0xff] }
 0xbce   : > { %v3545_v63 = vpack.c.bf16 %v3016_v62, %v3015_v61  ;;  %v3247_v0 = vld [vmem:[%s4104_s9] ss:$0 sm:$0xff] }
 0xbd1   : > { %2889 = vperm.xlu1 %3577, %v2876_v6  }
 0xbd5   : > { %2899 = vperm.xlu1 %3577, %v2877_v7  }
 0xbd8   : > { %v2657_v8 = vpop.f32.mrb[26].mxu1 }
 0xbd9   : > { %2766 = vrot.lane.b32.xlu0 %v2657_v8, %s3650_s25  ;;  %v3477_v10 = vpop.f32.mrb[27].mxu1  ;;  %v3250_v8 = vld [vmem:[%s4106_s11] ss:$0 sm:$0xff] }
 0xbdd   : > { %2756 = vrot.lane.b32.xlu0 %v3994_v11, %s3649_s24 }
 0xbe1   : > { %2879 = vperm.xlu0 %3576, %v2875_v12  }
 0xc09   : > { %v2765_v46 = vpop.permute.xlu1 %2764 }
 0xc0a   : > { %v2780_v21 = vsel %vm2779_vm14, %v2776_v20, %v2765_v46 }
 0xc3f   : > { %v2769_v25 = vpop.permute.xlu1 %2768 }
 0xc4b   : > { %v2767_v11 = vpop.permute.xlu0 %2766 }
 0xc4c   : > { %v2781_v22 = vsel %vm2779_vm14, %v2777_v19, %v2767_v11 }
 0xc4d   : > { %v2792_v40 = vcombine.low %v2780_v21, %v2781_v22 }
 0xc4f   : > { %v2757_v24 = vpop.permute.xlu0 %2756  ;;  %3491 = vmatprep.mubr.msk.f32.mxu1 %vm581_vm2, %v2792_v40 }
 0xc50   : > { %v2778_v39 = vsel %vm473_vm1, %v2775_v23, %v2757_v24  ;;  %v2890_v31 = vpop.permute.xlu1 %2889 }
 0xc51   : > { %v2782_v26 = vsel %vm2779_vm14, %v2778_v39, %v2769_v25  ;;  %v2897_v44 = vrot.slane %v2890_v31, %v2886_v47 }
 0xc52   : > { %3492 = vmatmul.mubr.msk.f32.vlgmr.msra.gmra.mrb[28].mxu1 %vm581_vm2, %v2782_v26 }
 0xc53   : > { %3544 = vmatpush3.bf16.msra.mxu1 %v3541_v35  ;;  %vm2909_vm1 = vcmp.eq.s32.totalorder %v2897_v44, 1 }
 0xc54   : > { %v2900_v49 = vpop.permute.xlu1 %2899  ;;  %3546 = vmatprep.subr.bf16.mxu1 %v3545_v63 }
 0xc55   : > { %v2907_v52 = vrot.slane %v2900_v49, %v2886_v47 }
 0xc57   : > { %vm2910_vm15 = vcmp.eq.s32.totalorder %v2907_v52, 1  ;;  %3548 = vmatpush3.bf16.msra.mxu1 %v3545_v63 }
 0xc60   : > { %v2880_v43 = vpop.permute.xlu0 %2879 }
 0xc61   : > { %v2887_v45 = vrot.slane %v2880_v43, %v2886_v47 }
 0xc63   : > { %vm2908_vm3 = vcmp.eq.s32.totalorder %v2887_v45, 1 }
 0xd25   : > { %v3493_v50 = vpop.f32.mrb[28].mxu1 }
 0xd26   : > { %v2863_v51 = vpop.f32.mrb[29].mxu1  ;;  %v2869_v56 = vadd.f32 %v3493_v50, %v3244_v48 }
 0xd27   : > { %v2864_v54 = vadd.f32 %v3244_v48, %v2863_v51 }
 0xd28   : > { %v2916_v60 = vsel %vm2910_vm15, 0.0, %v2869_v56 }
 0xd29   : > { %v2912_v55 = vcombine.high %v2864_v54, %v2864_v54  ;;  %v2914_v58 = vsel %vm2908_vm3, 0.0, %v2864_v54 }
 0xd2b   : > { %v2915_v4 = vsel %vm2909_vm1, 0.0, %v2912_v55 }
 0xd2c   : > { %v2931_v59 = vcombine.low %v2914_v58, %v2915_v4 }
 0xd2e   : > { %3502 = vmatprep.mubr.msk.f32.mxu0 %vm581_vm2, %v2931_v59 }
 0xd2f   : > { %3503 = vmatmul.mubr.msk.f32.vlgmr.msra.gmra.mrb[32].mxu0 %vm581_vm2, %v2916_v60 }
 0xe02   : > { %v3504_v1 = vpop.f32.mrb[32].mxu0 }
 0xe03   : > { %v3008_v2 = vadd.f32 %v3504_v1, %v3247_v0  ;;  %v3002_v3 = vpop.f32.mrb[33].mxu0 }
 0xe04   : > { %v3003_v5 = vadd.f32 %v3247_v0, %v3002_v3 }
 0xe05   : > { %v3012_v7 = vmax.f32 %v3008_v2, 0.0 }
 0xe06   : > { %v3011_v6 = vmax.f32 %v3003_v5, 0.0 }
 0xe08   : > { %3513 = vmatprep.mubr.msk.f32.mxu1 %vm581_vm2, %v3011_v6 }
 0xe09   : > { %3514 = vmatmul.mubr.msk.f32.vlgmr.msra.gmra.mrb[30].mxu1 %vm581_vm2, %v3012_v7 }
 0xedc   : > { %v3515_v9 = vpop.f32.mrb[30].mxu1 }
 0xedd   : > { %v3102_v10 = vadd.f32 %v3515_v9, %v3250_v8  ;;  %v3096_v12 = vpop.f32.mrb[31].mxu1 }
 0xede   : > { %v3097_v13 = vadd.f32 %v3250_v8, %v3096_v12 }
 0xedf   : > { %3111 = vst.msk [vmem:[%s459_s27 + $0x8] sm:$0xf] %vm3108_vm8, %v3102_v10 }
 0xee0   : > { %v3106_v36 = vcombine.high %v3097_v13, %v3097_v13  ;;  %3109 = vst.msk [vmem:[%s459_s27] sm:$0xf] %vm3108_vm8, %v3097_v13 }
 0xee2   : > { %3110 = vst.msk [vmem:[%s459_s27 + $0x4] sm:$0xf] %vm3108_vm8, %v3106_v36 }
 0xee3 PF: > { %s22_s21 = sadd.s32 1, %s3632_s21  }
 0xee4   : > { %p19_p4 = scmp.ge.s32.totalorder %s22_s21, 4  }
 0xee6   :  { %21 = sbr.rel (!%p19_p4) target bundleno = 1 (0x1), region = 104 }

// kernel: forward.5
= control target key start
LH: loop header
LB: loop body
LE: loop exit
PB: predicated region body
PF: predicated region fallthrough
CT: control target
= control target key end

     0   :  { %s8660_s0 = inlined_call_operand.vmem [shape: f32[6,4,32], index: 0, kind: input, shape index: {}]   ;;  %s8661_s1 = inlined_call_operand.vmem [shape: f32[6,4,4], index: 1, kind: input, shape index: {}]   ;;  %s8662_s2 = inlined_call_operand.vmem [shape: f32[6,4,1], index: 2, kind: input, shape index: {}]   ;;  %s8663_s3 = inlined_call_operand.vmem [shape: f32[6,4,4], index: 3, kind: input, shape index: {}]   ;;  %s8664_s4 = inlined_call_operand.vmem [shape: f32[32,96], index: 4, kind: input, shape index: {}]   ;;  %s8665_s5 = inlined_call_operand.vmem [shape: f32[32,32], index: 5, kind: input, shape index: {}]   ;;  %s8666_s6 = inlined_call_operand.vmem [shape: f32[1,32], index: 6, kind: input, shape index: {}]   ;;  %s8667_s7 = inlined_call_operand.vmem [shape: f32[32,16], index: 7, kind: input, shape index: {}]   ;;  %s8668_s8 = inlined_call_operand.vmem [shape: f32[32,16], index: 8, kind: input, shape index: {}]   ;;  %s8669_s9 = inlined_call_operand.vmem [shape: f32[1,16], index: 9, kind: input, shape index: {}]   ;;  %s8670_s10 = inlined_call_operand.vmem [shape: f32[16,16], index: 10, kind: input, shape index: {}]   ;;  %s8671_s11 = inlined_call_operand.vmem [shape: f32[1,16], index: 11, kind: input, shape index: {}]   ;;  %s8672_s12 = inlined_call_operand.vmem [shape: f32[1,16], index: 12, kind: input, shape index: {}]   ;;  %s8673_s13 = inlined_call_operand.<no memory space> [shape: f32[1,1], index: 13, kind: input, shape index: {}]   ;;  %s8674_s14 = inlined_call_operand.vmem [shape: f32[32,96], index: 14, kind: input, shape index: {}]   ;;  %s8675_s15 = inlined_call_operand.vmem [shape: f32[32,32], index: 15, kind: input, shape index: {}]   ;;  %s8676_s16 = inlined_call_operand.vmem [shape: f32[1,32], index: 16, kind: input, shape index: {}]   ;;  %s8677_s17 = inlined_call_operand.vmem [shape: f32[64,6], index: 17, kind: input, shape index: {}]   ;;  %s8678_s18 = inlined_call_operand.vmem [shape: f32[1,6], index: 18, kind: input, shape index: {}]   ;;  %s8679_s19 = inlined_call_operand.hbm [shape: f32[6,4,6], index: 19, kind: output, shape index: {}]  }
   0x1   :  { %8718 = sst [smem:[#allocation10_spill]] %s8660_s0  ;;  %v24_v0 = vstv %s8673_s13 }
   0x2   :  { %8719 = sst [smem:[#allocation11_spill]] %s8661_s1  ;;  %25 = vst [vmem:[#allocation2] sm:$0x1] %v24_v0 }
   0x3   :  { %8720 = sst [smem:[#allocation12_spill]] %s8662_s2 }
   0x4   :  { %8721 = sst [smem:[#allocation13_spill]] %s8663_s3 }
   0x5   :  { %8722 = sst [smem:[#allocation14_spill]] %s8664_s4 }
   0x6   :  { %8723 = sst [smem:[#allocation15_spill]] %s8665_s5 }
   0x7   :  { %26 = vsyncpa [#allocation4], 0 }
   0x8   :  { %28 = vsyncpa [#allocation4 + $0x1], 0  ;;  %s7661_s20 = smov 0   ;;  %s7663_s21 = smov 0  }
   0x9   :  { %s7665_s1 = smov 0   ;;  %s7667_s22 = smov 0  }
   0xa LB: > { %8724 = sst [smem:[#allocation6_spill]] %s7528_s1  ;;  %s7682_s13 = sadd.s32 4294967295, %s7532_s22   ;;  %s7532_s22 = sphi %s7667_s22, %s8789_s22   ;;  %s7528_s1 = sphi %s7665_s1, %s8791_s1   ;;  %s7524_s21 = sphi %s7663_s21, %s8793_s21   ;;  %s7520_s20 = sphi %s7661_s20, %s8792_s20  }
   0xb   : > { %s6525_s2 = sadd.s32 4294967294, %s7532_s22   ;;  %s7686_s23 = sadd.s32 1, %s7532_s22  }
   0xc   : > { %8725 = sst [smem:[#allocation7_spill]] %s7686_s23  ;;  %s460_s24 = sadd.s32 1, %s7528_s1 }
   0xd   : > { %s457_s25 = ssub.s32 %s7532_s22, %s7686_s23  ;;  %p470_p0 = scmp.ne.s32.totalorder %s7528_s1, %s7524_s21 }
   0xe   : > { %p458_p1 = scmp.eq.s32.totalorder %s457_s25, 0  ;;  %p471_p2 = scmp.eq.s32.totalorder %s7682_s13, 1 }
   0xf   : > { %p476_p3 = scmp.ne.s32.totalorder %s7524_s21, %s7520_s20  ;;  %p477_p4 = scmp.eq.s32.totalorder %s6525_s2, 1 }
  0x10   : > { %s7697_s3 = scalar_select %p458_p1, %s7528_s1, %s460_s24  }
  0x11   : > { %p7699_p5 = por %p471_p2, %p470_p0  ;;  %p7703_p6 = por %p477_p4, %p476_p3 }
  0x12   : > { %8726 = sst [smem:[#allocation8_spill]] %s7697_s3  ;;  %p6528_p7 = scmp.ge.s32.totalorder %s7532_s22, 1 }
  0x13   : > { %s8728_s27 = scalar_select %p7703_p6, 1, 0 }
  0x14   : > { %p576_p8 = scmp.lt.s32.totalorder %s7532_s22, 3 }
  0x15   : > { %8729 = sst [smem:[#allocation9_spill]] %s8728_s27 }
  0x16   : > { %p577_p9 = pnand %p6528_p7, %p576_p8 }
  0x17   : > { %s8730_s4 = sld [smem:[#allocation14_spill]] (!%p577_p9)  ;;  %s647_s25 = smul.u32 (!%p577_p9), 3, %s7682_s13  ;;  %vm8712_vm0 = vcmask (!%p577_p9), 261120   ;;  %v7534_v11 = vmov (!%p577_p9), 0.0   ;;  %vm8715_vm1 = vmmov (!%p577_p9), 0   ;;  %vm8717_vm2 = vcmask (!%p577_p9), 64512  }
  0x18   : > { %580 = sbr.rel (%p577_p9) target bundleno = 7011 (0x1b63), region = 96  ;;  %s8731_s30 = sld [smem:[#allocation10_spill]] (!%p577_p9)  ;;  %6851 = vmatprep.subr.mxu1 (!%p577_p9), %v7534_v11  ;;  %6853 = vmatprep.mubr.msk.f32.mxu1 (!%p577_p9), %vm8715_vm1, %v7534_v11  ;;  %vm1018_vm4 = vcmask (!%p577_p9), 27648   ;;  %vm1073_vm8 = vcmask (!%p577_p9), 1043456   ;;  %vm1069_vm13 = vcmask (!%p577_p9), 31744  }
  0x19   : > { %p648_p10 = scmp.lt.s32.totalorder (!%p577_p9), %s647_s25, 5  ;;  %s8703_s1 = smov (!%p577_p9), 96  }
  0x1a   : > { %s8701_s0 = smov (!%p577_p9), 64   ;;  %s8697_s3 = smov (!%p577_p9), 120  }
  0x1b   : > { %s8691_s24 = smov (!%p577_p9), 56   ;;  %s8733_s5 = sld [smem:[#allocation15_spill]] (!%p577_p9) }
  0x1c   : > { %s8755_s27 = smov (!%p577_p9), 112  }
  0x1d   : > { %v684_v1 = vld [vmem:[%s8730_s4] sm:$0xff] (!%p577_p9)  ;;  %v685_v2 = vld [vmem:[%s8730_s4 + $0x8] sm:$0xff] (!%p577_p9)  ;;  %v686_v3 = vld [vmem:[%s8730_s4 + $0x10] sm:$0xff] (!%p577_p9) }
  0x1e   : > { %v7188_v4 = vpack.c.bf16 (!%p577_p9), %v685_v2, %v684_v1  ;;  %v687_v5 = vld [vmem:[%s8730_s4 + $0x18] sm:$0xff] (!%p577_p9)  ;;  %s8735_s4 = smov (!%p577_p9), 16  }
  0x1f   : > { %v7192_v6 = vpack.c.bf16 %v687_v5, %v686_v3  ;;  %s8795_s25 = smov (!%p648_p10, %s647_s25), 5 }
  0x20   : > { %7189 = vmatprep.subr.bf16.mxu0 %v7188_v4  ;;  %s7722_s28 = sshll.u32 %s8795_s25, 2  ;;  %s8732_s25 = sld [smem:[#allocation11_spill]] }
  0x21   : > { %7191 = vmatpush3.bf16.msra.mxu0 %v7188_v4  ;;  %s7728_s2 = scalar_lea.vmem %s8731_s30, %s7722_s28  ;;  %s8699_s30 = smov 88  }
  0x22   : > { %7193 = vmatprep.subr.bf16.mxu0 %v7192_v6  ;;  %v672_v7 = vld [vmem:[%s7728_s2] sm:$0xf]  ;;  %v673_v8 = vld [vmem:[%s7728_s2 + $0x4] sm:$0xf]  ;;  %v674_v10 = vld [vmem:[%s7728_s2 + $0x8] sm:$0xf] }
  0x23   : > { %v7732_v9 = vcombine.low %v672_v7, %v673_v8 }
  0x25   : > { %7195 = vmatpush3.bf16.msra.mxu0 %v7192_v6  ;;  %6843 = vmatprep.mubr.msk.f32.mxu0 %vm8712_vm0, %v7732_v9 }
  0x26   : > { %6846 = vmatprep.subr.mxu0 %v7534_v11  ;;  %s657_s29 = scalar_lea.vmem %s8732_s25, %s7722_s28  ;;  %s8681_s25 = smov 80  }
  0x27   : > { %v7780_v18 = vld [vmem:[%s657_s29] sm:$0xf]  ;;  %v7783_v22 = vld [vmem:[%s657_s29 + $0x4] sm:$0xf]  ;;  %v7787_v24 = vld [vmem:[%s657_s29 + $0x8] sm:$0xf] }
  0x28   : > { %6844 = vmatmul.mubr.msk.f32.vlgmr.msra.gmra.mrb[0].mxu0 %vm8712_vm0, %v674_v10  ;;  %vm1012_vm3 = vcmp.ne.f32.partialorder %v7780_v18, 0.0  ;;  %vm1013_vm5 = vcmp.ne.f32.partialorder %v7783_v22, 0.0  ;;  %vm1014_vm6 = vcmp.ne.f32.partialorder %v7787_v24, 0.0  ;;  %s8685_s29 = smov 112  }
  0x29   : > { %6848 = vmatprep.mubr.msk.f32.mxu0 %vm8715_vm1, %v7534_v11 }
  0xfb   : > { %v7744_v12 = vpop.f32.mrb[0].mxu0 }
  0xfc   : > { %933 = vrot.lane.b32.xlu1 %v7744_v12, %s8703_s1  ;;  %v7748_v13 = vpop.f32.mrb[1].mxu0 }
  0xfd   : > { %780 = vrot.lane.b32.xlu0 %v7748_v13, %s8703_s1  ;;  %v7754_v14 = vcombine.high %v7748_v13, %v7748_v13 }
 0x101   : > { %857 = vrot.lane.b32.xlu0 %v7754_v14, %s8703_s1  ;;  %s7552_s1 = smov 126  }
 0x16e   : > { %v934_v16 = vpop.permute.xlu1 %933 }
 0x16f   : > { %v781_v15 = vpop.permute.xlu0 %780 }
 0x170   : > { %6847 = vmatpush3.xpose.msk.msra.mxu0 %vm8717_vm2, %v781_v15 }
 0x171   : > { %6856 = vmatprep.subr.mxu0 %v7534_v11 }
 0x173   : > { %6849 = vmatmul.mubr.msk.f32.vlgmr.msra.gmra.mrb[2].mxu0 %vm8717_vm2, %v7748_v13  ;;  %v858_v17 = vpop.permute.xlu0 %857 }
 0x174   : > { %6852 = vmatpush3.xpose.msk.msra.mxu1 %vm8717_vm2, %v858_v17  ;;  %6857 = vmatpush3.xpose.msk.msra.mxu0 %vm8717_vm2, %v934_v16 }
 0x175   : > { %6858 = vmatprep.mubr.msk.f32.mxu0 %vm8715_vm1, %v7534_v11  ;;  %6866 = vmatprep.subr.mxu0 %v7534_v11 }
 0x176   : > { %6861 = vmatprep.subr.mxu1 %v7534_v11 }
 0x177   : > { %6854 = vmatmul.mubr.msk.f32.vlgmr.msra.gmra.mrb[0].mxu1 %vm8717_vm2, %v7754_v14  ;;  %6859 = vmatmul.mubr.msk.f32.vlgmr.msra.gmra.mrb[4].mxu0 %vm8717_vm2, %v7744_v12 }
 0x178   : > { %6863 = vmatprep.mubr.msk.f32.mxu1 %vm8715_vm1, %v7534_v11  ;;  %6868 = vmatprep.mubr.msk.f32.mxu0 %vm8715_vm1, %v7534_v11 }
 0x246   : > { %v853_v19 = vpop.f32.mrb[2].mxu0 }
 0x247   : > { %v1009_v20 = vmul.f32 0.35355338, %v853_v19  ;;  %v6850_v21 = vpop.f32.mrb[3].mxu0 }
 0x249   : > { %v1015_v23 = vsel %vm1012_vm3, -inf, %v1009_v20 }
 0x24a   : > { %v929_v25 = vpop.f32.mrb[0].mxu1  ;;  %v1005_v26 = vpop.f32.mrb[4].mxu0  ;;  %v1019_v27 = vsel %vm1018_vm4, %v1015_v23, -inf }
 0x24b   : > { %v1010_v28 = vmul.f32 0.35355338, %v929_v25  ;;  %v1011_v29 = vmul.f32 0.35355338, %v1005_v26  ;;  %1020 = vmax.xlane.f32.xlu1 %v1019_v27  ;;  %v6855_v30 = vpop.f32.mrb[1].mxu1  ;;  %v6860_v31 = vpop.f32.mrb[5].mxu0 }
 0x24d   : > { %v1016_v32 = vsel %vm1013_vm5, -inf, %v1010_v28  ;;  %v1017_v34 = vsel %vm1014_vm6, -inf, %v1011_v29 }
 0x24e   : > { %v1022_v33 = vsel %vm1018_vm4, %v1016_v32, -inf  ;;  %v1025_v35 = vsel %vm1018_vm4, %v1017_v34, -inf }
 0x24f   : > { %1023 = vmax.xlane.f32.xlu0 %v1022_v33 }
 0x253   : > { %1026 = vmax.xlane.f32.xlu0 %v1025_v35 }
 0x25c   : > { %1146 = vrot.lane.b32.xlu1 %v7754_v14, %s8701_s0 }
 0x260   : > { %1223 = vrot.lane.b32.xlu1 %v7744_v12, %s8701_s0 }
 0x269   : > { %1067 = vrot.lane.b32.xlu0 %v7748_v13, %s8701_s0  ;;  %s7554_s0 = smov 127  }
 0x2d8   : > { %v1021_v36 = vpop.xlane.xlu1 %1020 }
 0x2d9   : > { %vm1028_vm7 = vcmp.eq.f32.partialorder %v1021_v36, -inf }
 0x2da   : > { %v1031_v37 = vsel %vm1028_vm7, 0.0, %v1021_v36 }
 0x2db   : > { %v1034_v38 = vsub.f32 %v1015_v23, %v1031_v37 }
 0x2dc   : > { %v1147_v39 = vpop.permute.xlu1 %1146  ;;  %v1024_v40 = vpop.xlane.xlu0 %1023 }
 0x2dd   : > { %v1037_v41 = vmul.f32 1.442695, %v1034_v38  ;;  %vm1029_vm9 = vcmp.eq.f32.partialorder %v1024_v40, -inf  ;;  %6867 = vmatpush3.msk.msra.mxu0 %vm1073_vm8, %v1147_v39 }
 0x2de   : > { %v1032_v42 = vsel %vm1029_vm9, 0.0, %v1024_v40  ;;  %6876 = vmatprep.subr.mxu0 %v7534_v11 }
 0x2df   : > { %7364 = vpow2.f32 %v1037_v41  ;;  %v1035_v43 = vsub.f32 %v1016_v32, %v1032_v42 }
 0x2e0   : > { %v1027_v44 = vpop.xlane.xlu0 %1026  ;;  %v1224_v56 = vpop.permute.xlu1 %1223 }
 0x2e1   : > { %v1039_v45 = vmul.f32 1.442695, %v1035_v43  ;;  %vm1030_vm10 = vcmp.eq.f32.partialorder %v1027_v44, -inf }
 0x2e2   : > { %v1033_v51 = vsel %vm1030_vm10, 0.0, %v1027_v44 }
 0x2e3   : > { %7366 = vpow2.f32 %v1039_v45  ;;  %v1036_v52 = vsub.f32 %v1017_v34, %v1033_v51 }
 0x2e4   : > { %v1068_v46 = vpop.permute.xlu0 %1067 }
 0x2e5   : > { %6862 = vmatpush3.msk.msra.mxu1 %vm1073_vm8, %v1068_v46  ;;  %v1041_v53 = vmul.f32 1.442695, %v1036_v52 }
 0x2e6   : > { %6871 = vmatprep.subr.mxu1 %v7534_v11 }
 0x2e7   : > { %7368 = vpow2.f32 %v1041_v53 }
 0x2e9   : > { %v7365_v47 = vpop.eup %7364 }
 0x2ea   : > { %v1043_v48 = vsel %vm1018_vm4, %v7365_v47, 0.0 }
 0x2eb   : > { %1044 = vadd.xlane.f32.xlu1 %v1043_v48 }
 0x2ed   : > { %v7367_v49 = vpop.eup %7366 }
 0x2ee   : > { %v1046_v50 = vsel %vm1018_vm4, %v7367_v49, 0.0 }
 0x2ef   : > { %1047 = vadd.xlane.f32.xlu0 %v1046_v50 }
 0x2f1   : > { %v7369_v54 = vpop.eup %7368 }
 0x2f2   : > { %v1049_v55 = vsel %vm1018_vm4, %v7369_v54, 0.0 }
 0x2fc   : > { %1380 = vrot.lane.b32.xlu1 %v7754_v14, %s8699_s30 }
 0x305   : > { %1302 = vrot.lane.b32.xlu0 %v7748_v13, %s8699_s30 }
 0x309   : > { %1300 = vrot.lane.b32.xlu0 %v7748_v13, %s8697_s3 }
 0x30d   : > { %1458 = vrot.lane.b32.xlu0 %v7744_v12, %s8699_s30  ;;  %s8746_s30 = smov 120  }
 0x320   : > { %1050 = vadd.xlane.f32.xlu1 %v1049_v55 }
 0x331   : > { %1378 = vrot.lane.b32.xlu1 %v7754_v14, %s8697_s3 }
 0x335   : > { %1456 = vrot.lane.b32.xlu1 %v7744_v12, %s8697_s3  ;;  %s8734_s3 = sld [smem:[#allocation12_spill]] }
 0x378   : > { %v1045_v57 = vpop.xlane.xlu1 %1044 }
 0x379   : > { %vm1052_vm11 = vcmp.eq.f32.partialorder %v1045_v57, 0.0 }
 0x37a   : > { %v1055_v58 = vsel %vm1052_vm11, 1.0, %v7534_v11 }
 0x37b   : > { %v1058_v59 = vadd.f32 %v1055_v58, %v1045_v57 }
 0x37c   : > { %v1048_v60 = vpop.xlane.xlu0 %1047  ;;  %v1381_v6 = vpop.permute.xlu1 %1380 }
 0x37d   : > { %7370 = vrcp.f32 %v1058_v59  ;;  %vm1053_vm12 = vcmp.eq.f32.partialorder %v1048_v60, 0.0 }
 0x37e   : > { %v1056_v61 = vsel %vm1053_vm12, 1.0, %v7534_v11 }
 0x37f   : > { %v1059_v62 = vadd.f32 %v1056_v61, %v1048_v60 }
 0x380   : > { %v1303_v63 = vpop.permute.xlu0 %1302 }
 0x381   : > { %7372 = vrcp.f32 %v1059_v62 }
 0x384   : > { %v1301_v3 = vpop.permute.xlu0 %1300 }
 0x387   : > { %v7371_v0 = vpop.eup %7370 }
 0x388   : > { %v1062_v1 = vmul.f32 %v7371_v0, %v7365_v47  ;;  %v1459_v5 = vpop.permute.xlu0 %1458 }
 0x38a   : > { %6864 = vmatmul.mubr.msk.f32.vlgmr.msra.gmra.mrb[2].mxu1 %vm1069_vm13, %v1062_v1 }
 0x38b   : > { %v7373_v2 = vpop.eup %7372  ;;  %6872 = vmatpush3.msk.msra.mxu1 %vm1073_vm8, %v1224_v56  ;;  %6873 = vmatprep.mubr.msk.f32.mxu1 %vm8715_vm1, %v7534_v11 }
 0x38c   : > { %v1064_v4 = vmul.f32 %v7373_v2, %v7367_v49  ;;  %6881 = vmatprep.subr.mxu1 %v7534_v11 }
 0x38e   : > { %6869 = vmatmul.mubr.msk.f32.vlgmr.msra.gmra.mrb[6].mxu0 %vm1069_vm13, %v1064_v4 }
 0x38f   : > { %6877 = vmatpush3.xpose.msk.msra.mxu0 %vm8717_vm2, %v1303_v63  ;;  %6878 = vmatprep.mubr.msk.f32.mxu0 %vm8715_vm1, %v7534_v11 }
 0x390   : > { %6886 = vmatprep.subr.mxu0 %v7534_v11 }
 0x392   : > { %6879 = vmatmul.mubr.msk.f32.vlgmr.msra.gmra.mrb[8].mxu0 %vm8717_vm2, %v1301_v3 }
 0x393   : > { %6887 = vmatpush3.xpose.msk.msra.mxu0 %vm8717_vm2, %v1459_v5  ;;  %6888 = vmatprep.mubr.msk.f32.mxu0 %vm8715_vm1, %v7534_v11 }
 0x394   : > { %6896 = vmatprep.subr.mxu0 %v7534_v11 }
 0x3ad   : > { %v1051_v7 = vpop.xlane.xlu1 %1050 }
 0x3ae   : > { %vm1054_vm14 = vcmp.eq.f32.partialorder %v1051_v7, 0.0 }
 0x3af   : > { %v1057_v8 = vsel %vm1054_vm14, 1.0, %v7534_v11 }
 0x3b0   : > { %v1060_v10 = vadd.f32 %v1057_v8, %v1051_v7 }
 0x3b1   : > { %v1379_v15 = vpop.permute.xlu1 %1378 }
 0x3b2   : > { %7374 = vrcp.f32 %v1060_v10 }
 0x3b5   : > { %v1457_v16 = vpop.permute.xlu1 %1456 }
 0x3b6   : > { %6889 = vmatmul.mubr.msk.f32.vlgmr.msra.gmra.mrb[10].mxu0 %vm8717_vm2, %v1457_v16 }
 0x3b7   : > { %6898 = vmatprep.mubr.msk.f32.mxu0 %vm8715_vm1, %v7534_v11 }
 0x3bc   : > { %v7375_v17 = vpop.eup %7374 }
 0x3bd   : > { %v1066_v19 = vmul.f32 %v7375_v17, %v7369_v54 }
 0x3bf   : > { %6874 = vmatmul.mubr.msk.f32.vlgmr.msra.gmra.mrb[4].mxu1 %vm1069_vm13, %v1066_v19 }
 0x3c0   : > { %6882 = vmatpush3.xpose.msk.msra.mxu1 %vm8717_vm2, %v1381_v6  ;;  %6883 = vmatprep.mubr.msk.f32.mxu1 %vm8715_vm1, %v7534_v11 }
 0x3c1   : > { %6891 = vmatprep.subr.mxu1 %v7534_v11 }
 0x3c3   : > { %6884 = vmatmul.mubr.msk.f32.vlgmr.msra.gmra.mrb[6].mxu1 %vm8717_vm2, %v1379_v15 }
 0x3c4   : > { %6893 = vmatprep.mubr.msk.f32.mxu1 %vm8715_vm1, %v7534_v11 }
 0x45d   : > { %v7852_v20 = vpop.f32.mrb[2].mxu1 }
 0x45e   : > { %v6865_v21 = vpop.f32.mrb[3].mxu1 }
 0x461   : > { %v7854_v23 = vpop.f32.mrb[6].mxu0 }
 0x462   : > { %v6870_v25 = vpop.f32.mrb[7].mxu0 }
 0x465   : > { %v1374_v26 = vpop.f32.mrb[8].mxu0 }
 0x466   : > { %v1534_v27 = vmul.f32 0.35355338, %v1374_v26  ;;  %v6880_v28 = vpop.f32.mrb[9].mxu0 }
 0x468   : > { %v1537_v29 = vsel %vm1012_vm3, -inf, %v1534_v27 }
 0x469   : > { %v1540_v30 = vsel %vm1018_vm4, %v1537_v29, -inf }
 0x46a   : > { %1541 = vmax.xlane.f32.xlu0 %v1540_v30 }
 0x489   : > { %v1530_v31 = vpop.f32.mrb[10].mxu0 }
 0x48a   : > { %v1536_v32 = vmul.f32 0.35355338, %v1530_v31  ;;  %v6890_v33 = vpop.f32.mrb[11].mxu0 }
 0x48c   : > { %v1539_v34 = vsel %vm1014_vm6, -inf, %v1536_v32 }
 0x48d   : > { %v1546_v35 = vsel %vm1018_vm4, %v1539_v34, -inf }
 0x48e   : > { %1547 = vmax.xlane.f32.xlu0 %v1546_v35 }
 0x492   : > { %v7862_v36 = vpop.f32.mrb[4].mxu1 }
 0x493   : > { %v6875_v37 = vpop.f32.mrb[5].mxu1 }
 0x496   : > { %v1452_v38 = vpop.f32.mrb[6].mxu1 }
 0x497   : > { %v1535_v39 = vmul.f32 0.35355338, %v1452_v38  ;;  %v6885_v40 = vpop.f32.mrb[7].mxu1 }
 0x499   : > { %v1538_v41 = vsel %vm1013_vm5, -inf, %v1535_v39 }
 0x49a   : > { %v1543_v42 = vsel %vm1018_vm4, %v1538_v41, -inf }
 0x49b   : > { %1544 = vmax.xlane.f32.xlu1 %v1543_v42 }
 0x4a4   : > { %1588 = vrot.lane.b32.xlu0 %v7748_v13, %s8691_s24 }
 0x4ac   : > { %1665 = vrot.lane.b32.xlu1 %v7754_v14, %s8691_s24 }
 0x4b0   : > { %1742 = vrot.lane.b32.xlu1 %v7744_v12, %s8691_s24  ;;  %s8705_s24 = smov 16  }
 0x4b4   : > { %1821 = vrot.lane.b32.xlu1 %v7748_v13, %s8681_s25 }
 0x4f7   : > { %v1542_v43 = vpop.xlane.xlu0 %1541 }
 0x4f8   : > { %vm1549_vm15 = vcmp.eq.f32.partialorder %v1542_v43, -inf }
 0x4f9   : > { %v1552_v44 = vsel %vm1549_vm15, 0.0, %v1542_v43 }
 0x4fa   : > { %v1555_v45 = vsub.f32 %v1537_v29, %v1552_v44 }
 0x4fc   : > { %v1558_v46 = vmul.f32 1.442695, %v1555_v45 }
 0x4fe   : > { %7376 = vpow2.f32 %v1558_v46 }
 0x508   : > { %v7377_v47 = vpop.eup %7376 }
 0x509   : > { %v1564_v48 = vsel %vm1018_vm4, %v7377_v47, 0.0 }
 0x50a   : > { %1565 = vadd.xlane.f32.xlu0 %v1564_v48 }
 0x51b   : > { %v1548_v49 = vpop.xlane.xlu0 %1547 }
 0x51c   : > { %vm1551_vm7 = vcmp.eq.f32.partialorder %v1548_v49, -inf }
 0x51d   : > { %v1554_v50 = vsel %vm1551_vm7, 0.0, %v1548_v49 }
 0x51e   : > { %v1557_v51 = vsub.f32 %v1539_v34, %v1554_v50 }
 0x51f   : > { %v1589_v52 = vpop.permute.xlu0 %1588 }
 0x520   : > { %v1562_v53 = vmul.f32 1.442695, %v1557_v51  ;;  %6892 = vmatpush3.msk.msra.mxu1 %vm1073_vm8, %v1589_v52 }
 0x521   : > { %6901 = vmatprep.subr.mxu1 %v7534_v11 }
 0x522   : > { %7378 = vpow2.f32 %v1562_v53 }
 0x528   : > { %v1545_v54 = vpop.xlane.xlu1 %1544 }
 0x529   : > { %vm1550_vm9 = vcmp.eq.f32.partialorder %v1545_v54, -inf }
 0x52a   : > { %v1553_v55 = vsel %vm1550_vm9, 0.0, %v1545_v54 }
 0x52b   : > { %v1556_v56 = vsub.f32 %v1538_v41, %v1553_v55 }
 0x52c   : > { %v7379_v57 = vpop.eup %7378  ;;  %v1666_v58 = vpop.permute.xlu1 %1665 }
 0x52d   : > { %v1560_v59 = vmul.f32 1.442695, %v1556_v56  ;;  %6897 = vmatpush3.msk.msra.mxu0 %vm1073_vm8, %v1666_v58  ;;  %v1570_v60 = vsel %vm1018_vm4, %v7379_v57, 0.0 }
 0x52e   : > { %1571 = vadd.xlane.f32.xlu0 %v1570_v60  ;;  %6906 = vmatprep.subr.mxu0 %v7534_v11 }
 0x52f   : > { %7380 = vpow2.f32 %v1560_v59 }
 0x530   : > { %v1743_v4 = vpop.permute.xlu1 %1742 }
 0x534   : > { %v1822_v8 = vpop.permute.xlu1 %1821 }
 0x539   : > { %v7381_v61 = vpop.eup %7380 }
 0x53a   : > { %v1567_v62 = vsel %vm1018_vm4, %v7381_v61, 0.0 }
 0x53b   : > { %1568 = vadd.xlane.f32.xlu1 %v1567_v62 }
 0x544   : > { %1819 = vrot.lane.b32.xlu0 %v7748_v13, %s8685_s29 }
 0x548   : > { %1977 = vrot.lane.b32.xlu0 %v7744_v12, %s8681_s25 }
 0x54c   : > { %1975 = vrot.lane.b32.xlu0 %v7744_v12, %s8685_s29  ;;  %1899 = vrot.lane.b32.xlu1 %v7754_v14, %s8681_s25  ;;  %s8683_s25 = smov 48  }
 0x550   : > { %1897 = vrot.lane.b32.xlu1 %v7754_v14, %s8685_s29  ;;  %s8687_s29 = smov 104  }
 0x597   : > { %v1566_v63 = vpop.xlane.xlu0 %1565 }
 0x598   : > { %vm1573_vm10 = vcmp.eq.f32.partialorder %v1566_v63, 0.0 }
 0x599   : > { %v1576_v0 = vsel %vm1573_vm10, 1.0, %v7534_v11 }
 0x59a   : > { %v1579_v1 = vadd.f32 %v1576_v0, %v1566_v63 }
 0x59c   : > { %7382 = vrcp.f32 %v1579_v1 }
 0x5a6   : > { %v7383_v2 = vpop.eup %7382 }
 0x5a7   : > { %v1583_v3 = vmul.f32 %v7383_v2, %v7377_v47 }
 0x5a9   : > { %6894 = vmatmul.mubr.msk.f32.vlgmr.msra.gmra.mrb[8].mxu1 %vm1069_vm13, %v1583_v3 }
 0x5aa   : > { %6902 = vmatpush3.msk.msra.mxu1 %vm1073_vm8, %v1743_v4  ;;  %6903 = vmatprep.mubr.msk.f32.mxu1 %vm8715_vm1, %v7534_v11 }
 0x5ab   : > { %6911 = vmatprep.subr.mxu1 %v7534_v11 }
 0x5bb   : > { %v1572_v5 = vpop.xlane.xlu0 %1571 }
 0x5bc   : > { %vm1575_vm11 = vcmp.eq.f32.partialorder %v1572_v5, 0.0 }
 0x5bd   : > { %v1578_v6 = vsel %vm1575_vm11, 1.0, %v7534_v11 }
 0x5be   : > { %v1581_v7 = vadd.f32 %v1578_v6, %v1572_v5 }
 0x5bf   : > { %v1820_v26 = vpop.permute.xlu0 %1819 }
 0x5c0   : > { %7384 = vrcp.f32 %v1581_v7 }
 0x5c3   : > { %v1978_v29 = vpop.permute.xlu0 %1977 }
 0x5c7   : > { %v1976_v30 = vpop.permute.xlu0 %1975 }
 0x5c8   : > { %v1569_v10 = vpop.xlane.xlu1 %1568 }
 0x5c9   : > { %vm1574_vm12 = vcmp.eq.f32.partialorder %v1569_v10, 0.0 }
 0x5ca   : > { %v7385_v15 = vpop.eup %7384  ;;  %v1577_v16 = vsel %vm1574_vm12, 1.0, %v7534_v11 }
 0x5cb   : > { %v1580_v17 = vadd.f32 %v1577_v16, %v1569_v10  ;;  %v1587_v19 = vmul.f32 %v7385_v15, %v7379_v57 }
 0x5cc   : > { %v1900_v21 = vpop.permute.xlu1 %1899 }
 0x5cd   : > { %7386 = vrcp.f32 %v1580_v17  ;;  %6904 = vmatmul.mubr.msk.f32.vlgmr.msra.gmra.mrb[10].mxu1 %vm1069_vm13, %v1587_v19 }
 0x5ce   : > { %6912 = vmatpush3.xpose.msk.msra.mxu1 %vm8717_vm2, %v1900_v21  ;;  %6913 = vmatprep.mubr.msk.f32.mxu1 %vm8715_vm1, %v7534_v11 }
 0x5cf   : > { %6921 = vmatprep.subr.mxu1 %v7534_v11 }
 0x5d0   : > { %v1898_v25 = vpop.permute.xlu1 %1897 }
 0x5d1   : > { %6914 = vmatmul.mubr.msk.f32.vlgmr.msra.gmra.mrb[12].mxu1 %vm8717_vm2, %v1898_v25 }
 0x5d2   : > { %6923 = vmatprep.mubr.msk.f32.mxu1 %vm8715_vm1, %v7534_v11 }
 0x5d7   : > { %v7387_v27 = vpop.eup %7386 }
 0x5d8   : > { %v1585_v28 = vmul.f32 %v7387_v27, %v7381_v61 }
 0x5da   : > { %6899 = vmatmul.mubr.msk.f32.vlgmr.msra.gmra.mrb[12].mxu0 %vm1069_vm13, %v1585_v28 }
 0x5db   : > { %6907 = vmatpush3.xpose.msk.msra.mxu0 %vm8717_vm2, %v1822_v8  ;;  %6908 = vmatprep.mubr.msk.f32.mxu0 %vm8715_vm1, %v7534_v11 }
 0x5dc   : > { %6916 = vmatprep.subr.mxu0 %v7534_v11 }
 0x5de   : > { %6909 = vmatmul.mubr.msk.f32.vlgmr.msra.gmra.mrb[14].mxu0 %vm8717_vm2, %v1820_v26 }
 0x5df   : > { %6917 = vmatpush3.xpose.msk.msra.mxu0 %vm8717_vm2, %v1978_v29  ;;  %6918 = vmatprep.mubr.msk.f32.mxu0 %vm8715_vm1, %v7534_v11 }
 0x5e0   : > { %6926 = vmatprep.subr.mxu0 %v7534_v11 }
 0x5e2   : > { %6919 = vmatmul.mubr.msk.f32.vlgmr.msra.gmra.mrb[16].mxu0 %vm8717_vm2, %v1976_v30 }
 0x5e3   : > { %6928 = vmatprep.mubr.msk.f32.mxu0 %vm8715_vm1, %v7534_v11 }
 0x67c   : > { %v7921_v31 = vpop.f32.mrb[8].mxu1 }
 0x67d   : > { %v6895_v32 = vpop.f32.mrb[9].mxu1 }
 0x6a0   : > { %v7923_v33 = vpop.f32.mrb[10].mxu1 }
 0x6a1   : > { %v6905_v34 = vpop.f32.mrb[11].mxu1 }
 0x6a4   : > { %v1971_v35 = vpop.f32.mrb[12].mxu1 }
 0x6a5   : > { %v2054_v37 = vmul.f32 0.35355338, %v1971_v35  ;;  %v6915_v38 = vpop.f32.mrb[13].mxu1 }
 0x6a7   : > { %v2057_v39 = vsel %vm1013_vm5, -inf, %v2054_v37 }
 0x6a8   : > { %v2062_v40 = vsel %vm1018_vm4, %v2057_v39, -inf }
 0x6a9   : > { %2063 = vmax.xlane.f32.xlu0 %v2062_v40 }
 0x6ad   : > { %v7928_v41 = vpop.f32.mrb[12].mxu0 }
 0x6ae   : > { %v6900_v42 = vpop.f32.mrb[13].mxu0 }
 0x6b1   : > { %v1893_v43 = vpop.f32.mrb[14].mxu0 }
 0x6b2   : > { %v2053_v44 = vmul.f32 0.35355338, %v1893_v43  ;;  %v6910_v45 = vpop.f32.mrb[15].mxu0 }
 0x6b4   : > { %v2056_v46 = vsel %vm1012_vm3, -inf, %v2053_v44 }
 0x6b5   : > { %v2049_v47 = vpop.f32.mrb[16].mxu0  ;;  %v2059_v48 = vsel %vm1018_vm4, %v2056_v46, -inf }
 0x6b6   : > { %v2055_v49 = vmul.f32 0.35355338, %v2049_v47  ;;  %2060 = vmax.xlane.f32.xlu1 %v2059_v48  ;;  %v6920_v50 = vpop.f32.mrb[17].mxu0 }
 0x6b8   : > { %v2058_v51 = vsel %vm1014_vm6, -inf, %v2055_v49 }
 0x6b9   : > { %v2065_v52 = vsel %vm1018_vm4, %v2058_v51, -inf }
 0x6ba   : > { %2066 = vmax.xlane.f32.xlu0 %v2065_v52 }
 0x6c7   : > { %2184 = vrot.lane.b32.xlu1 %v7754_v14, %s8683_s25 }
 0x6cb   : > { %2261 = vrot.lane.b32.xlu1 %v7744_v12, %s8683_s25 }
 0x6d0   : > { %2107 = vrot.lane.b32.xlu0 %v7748_v13, %s8683_s25  ;;  %s8689_s25 = smov 72  }
 0x736   : > { %v2064_v53 = vpop.xlane.xlu0 %2063 }
 0x737   : > { %vm2069_vm14 = vcmp.eq.f32.partialorder %v2064_v53, -inf }
 0x738   : > { %v2072_v54 = vsel %vm2069_vm14, 0.0, %v2064_v53 }
 0x739   : > { %v2075_v55 = vsub.f32 %v2057_v39, %v2072_v54 }
 0x73b   : > { %v2079_v56 = vmul.f32 1.442695, %v2075_v55 }
 0x73d   : > { %7388 = vpow2.f32 %v2079_v56 }
 0x743   : > { %v2061_v57 = vpop.xlane.xlu1 %2060 }
 0x744   : > { %vm2068_vm15 = vcmp.eq.f32.partialorder %v2061_v57, -inf }
 0x745   : > { %v2071_v58 = vsel %vm2068_vm15, 0.0, %v2061_v57 }
 0x746   : > { %v2074_v59 = vsub.f32 %v2056_v46, %v2071_v58 }
 0x747   : > { %v7389_v60 = vpop.eup %7388  ;;  %v2185_v61 = vpop.permute.xlu1 %2184 }
 0x748   : > { %v2067_v62 = vpop.xlane.xlu0 %2066  ;;  %v2077_v63 = vmul.f32 1.442695, %v2074_v59  ;;  %6927 = vmatpush3.msk.msra.mxu0 %vm1073_vm8, %v2185_v61  ;;  %v2086_v0 = vsel %vm1018_vm4, %v7389_v60, 0.0 }
 0x749   : > { %2087 = vadd.xlane.f32.xlu0 %v2086_v0  ;;  %6936 = vmatprep.subr.mxu0 %v7534_v11  ;;  %vm2070_vm7 = vcmp.eq.f32.partialorder %v2067_v62, -inf }
 0x74a   : > { %7390 = vpow2.f32 %v2077_v63  ;;  %v2073_v4 = vsel %vm2070_vm7, 0.0, %v2067_v62 }
 0x74b   : > { %v2076_v5 = vsub.f32 %v2058_v51, %v2073_v4  ;;  %v2262_v17 = vpop.permute.xlu1 %2261 }
 0x74c   : > { %v2108_v1 = vpop.permute.xlu0 %2107 }
 0x74d   : > { %6922 = vmatpush3.msk.msra.mxu1 %vm1073_vm8, %v2108_v1  ;;  %v2081_v6 = vmul.f32 1.442695, %v2076_v5 }
 0x74e   : > { %6931 = vmatprep.subr.mxu1 %v7534_v11 }
 0x74f   : > { %7392 = vpow2.f32 %v2081_v6 }
 0x754   : > { %v7391_v2 = vpop.eup %7390 }
 0x755   : > { %v2083_v3 = vsel %vm1018_vm4, %v7391_v2, 0.0 }
 0x756   : > { %2084 = vadd.xlane.f32.xlu1 %v2083_v3 }
 0x759   : > { %v7393_v7 = vpop.eup %7392 }
 0x75a   : > { %v2089_v8 = vsel %vm1018_vm4, %v7393_v7, 0.0 }
 0x75f   : > { %2340 = vrot.lane.b32.xlu0 %v7748_v13, %s8689_s25 }
 0x763   : > { %2338 = vrot.lane.b32.xlu0 %v7748_v13, %s8687_s29 }
 0x767   : > { %2418 = vrot.lane.b32.xlu1 %v7754_v14, %s8689_s25  ;;  %2496 = vrot.lane.b32.xlu0 %v7744_v12, %s8689_s25  ;;  %s8693_s25 = smov 8  }
 0x78b   : > { %2090 = vadd.xlane.f32.xlu1 %v2089_v8 }
 0x79c   : > { %2416 = vrot.lane.b32.xlu1 %v7754_v14, %s8687_s29 }
 0x7a0   : > { %2494 = vrot.lane.b32.xlu1 %v7744_v12, %s8687_s29  ;;  %s8695_s29 = smov 40  }
 0x7d6   : > { %v2088_v10 = vpop.xlane.xlu0 %2087 }
 0x7d7   : > { %vm2093_vm9 = vcmp.eq.f32.partialorder %v2088_v10, 0.0 }
 0x7d8   : > { %v2096_v15 = vsel %vm2093_vm9, 1.0, %v7534_v11 }
 0x7d9   : > { %v2099_v16 = vadd.f32 %v2096_v15, %v2088_v10 }
 0x7da   : > { %v2341_v19 = vpop.permute.xlu0 %2340 }
 0x7db   : > { %7394 = vrcp.f32 %v2099_v16 }
 0x7de   : > { %v2339_v27 = vpop.permute.xlu0 %2338 }
 0x7e2   : > { %v2497_v30 = vpop.permute.xlu0 %2496 }
 0x7e3   : > { %v2085_v21 = vpop.xlane.xlu1 %2084 }
 0x7e4   : > { %vm2092_vm10 = vcmp.eq.f32.partialorder %v2085_v21, 0.0 }
 0x7e5   : > { %v7395_v25 = vpop.eup %7394  ;;  %v2095_v26 = vsel %vm2092_vm10, 1.0, %v7534_v11 }
 0x7e6   : > { %v2098_v28 = vadd.f32 %v2095_v26, %v2085_v21  ;;  %v2104_v29 = vmul.f32 %v7395_v25, %v7389_v60 }
 0x7e7   : > { %v2419_v35 = vpop.permute.xlu1 %2418 }
 0x7e8   : > { %7396 = vrcp.f32 %v2098_v28  ;;  %6929 = vmatmul.mubr.msk.f32.vlgmr.msra.gmra.mrb[18].mxu0 %vm1069_vm13, %v2104_v29 }
 0x7e9   : > { %6937 = vmatpush3.xpose.msk.msra.mxu0 %vm8717_vm2, %v2341_v19  ;;  %6938 = vmatprep.mubr.msk.f32.mxu0 %vm8715_vm1, %v7534_v11 }
 0x7ea   : > { %6946 = vmatprep.subr.mxu0 %v7534_v11 }
 0x7ec   : > { %6939 = vmatmul.mubr.msk.f32.vlgmr.msra.gmra.mrb[20].mxu0 %vm8717_vm2, %v2339_v27 }
 0x7ed   : > { %6947 = vmatpush3.xpose.msk.msra.mxu0 %vm8717_vm2, %v2497_v30  ;;  %6948 = vmatprep.mubr.msk.f32.mxu0 %vm8715_vm1, %v7534_v11 }
 0x7ee   : > { %6956 = vmatprep.subr.mxu0 %v7534_v11 }
 0x7f2   : > { %v7397_v32 = vpop.eup %7396 }
 0x7f3   : > { %v2102_v34 = vmul.f32 %v7397_v32, %v7391_v2 }
 0x7f5   : > { %6924 = vmatmul.mubr.msk.f32.vlgmr.msra.gmra.mrb[14].mxu1 %vm1069_vm13, %v2102_v34 }
 0x7f6   : > { %6932 = vmatpush3.msk.msra.mxu1 %vm1073_vm8, %v2262_v17  ;;  %6933 = vmatprep.mubr.msk.f32.mxu1 %vm8715_vm1, %v7534_v11 }
 0x7f7   : > { %6941 = vmatprep.subr.mxu1 %v7534_v11 }
 0x818   : > { %v2091_v37 = vpop.xlane.xlu1 %2090 }
 0x819   : > { %vm2094_vm11 = vcmp.eq.f32.partialorder %v2091_v37, 0.0 }
 0x81a   : > { %v2097_v38 = vsel %vm2094_vm11, 1.0, %v7534_v11 }
 0x81b   : > { %v2100_v39 = vadd.f32 %v2097_v38, %v2091_v37 }
 0x81c   : > { %v2417_v40 = vpop.permute.xlu1 %2416 }
 0x81d   : > { %7398 = vrcp.f32 %v2100_v39 }
 0x820   : > { %v2495_v42 = vpop.permute.xlu1 %2494 }
 0x821   : > { %6949 = vmatmul.mubr.msk.f32.vlgmr.msra.gmra.mrb[22].mxu0 %vm8717_vm2, %v2495_v42 }
 0x822   : > { %6958 = vmatprep.mubr.msk.f32.mxu0 %vm8715_vm1, %v7534_v11 }
 0x827   : > { %v7399_v43 = vpop.eup %7398 }
 0x828   : > { %v2106_v44 = vmul.f32 %v7399_v43, %v7393_v7 }
 0x82a   : > { %6934 = vmatmul.mubr.msk.f32.vlgmr.msra.gmra.mrb[16].mxu1 %vm1069_vm13, %v2106_v44 }
 0x82b   : > { %6942 = vmatpush3.xpose.msk.msra.mxu1 %vm8717_vm2, %v2419_v35  ;;  %6943 = vmatprep.mubr.msk.f32.mxu1 %vm8715_vm1, %v7534_v11 }
 0x82c   : > { %6951 = vmatprep.subr.mxu1 %v7534_v11 }
 0x82e   : > { %6944 = vmatmul.mubr.msk.f32.vlgmr.msra.gmra.mrb[18].mxu1 %vm8717_vm2, %v2417_v40 }
 0x82f   : > { %6953 = vmatprep.mubr.msk.f32.mxu1 %vm8715_vm1, %v7534_v11 }
 0x8bb   : > { %v2257_v45 = vpop.f32.mrb[18].mxu0 }
 0x8bc   : > { %v6930_v46 = vpop.f32.mrb[19].mxu0 }
 0x8bf   : > { %v2412_v47 = vpop.f32.mrb[20].mxu0 }
 0x8c0   : > { %v2572_v48 = vmul.f32 0.35355338, %v2412_v47  ;;  %v6940_v49 = vpop.f32.mrb[21].mxu0 }
 0x8c1   : > { %v689_v49 = vld [vmem:[%s8733_s5 + $0x8] sm:$0xff] }
 0x8c2   : > { %v2575_v50 = vsel %vm1012_vm3, -inf, %v2572_v48  ;;  %v688_v48 = vld [vmem:[%s8733_s5] sm:$0xff] }
 0x8c3   : > { %v2578_v51 = vsel %vm1018_vm4, %v2575_v50, -inf }
 0x8c4   : > { %2579 = vmax.xlane.f32.xlu0 %v2578_v51 }
 0x8c8   : > { %v2180_v52 = vpop.f32.mrb[14].mxu1 }
 0x8c9   : > { %v6925_v53 = vpop.f32.mrb[15].mxu1 }
 0x8ca   : > { %v691_v53 = vld [vmem:[%s8733_s5 + $0x18] sm:$0xff] }
 0x8f4   : > { %v2568_v54 = vpop.f32.mrb[22].mxu0 }
 0x8f5   : > { %v2574_v55 = vmul.f32 0.35355338, %v2568_v54  ;;  %v6950_v56 = vpop.f32.mrb[23].mxu0 }
 0x8f6   : > { %v7550_v56 = vmov 0  }
 0x8f7   : > { %v2577_v57 = vsel %vm1014_vm6, -inf, %v2574_v55  ;;  %7332 = vset.pattern.permute.xlu1 %v7550_v56  ;;  %7331 = vset.pattern.permute.xlu0 %v7550_v56 }
 0x8f8   : > { %v2584_v58 = vsel %vm1018_vm4, %v2577_v57, -inf }
 0x8f9   : > { %2585 = vmax.xlane.f32.xlu0 %v2584_v58 }
 0x8fd   : > { %v7996_v59 = vpop.f32.mrb[16].mxu1 }
 0x8fe   : > { %v6935_v60 = vpop.f32.mrb[17].mxu1 }
 0x901   : > { %v2490_v61 = vpop.f32.mrb[18].mxu1 }
 0x902   : > { %v2573_v62 = vmul.f32 0.35355338, %v2490_v61  ;;  %v6945_v63 = vpop.f32.mrb[19].mxu1 }
 0x904   : > { %v2576_v0 = vsel %vm1013_vm5, -inf, %v2573_v62 }
 0x905   : > { %v2581_v1 = vsel %vm1018_vm4, %v2576_v0, -inf }
 0x906   : > { %2582 = vmax.xlane.f32.xlu1 %v2581_v1 }
 0x917   : > { %2626 = vrot.lane.b32.xlu1 %v7748_v13, %s8695_s29 }
 0x951   : > { %v2580_v2 = vpop.xlane.xlu0 %2579 }
 0x952   : > { %vm2587_vm12 = vcmp.eq.f32.partialorder %v2580_v2, -inf }
 0x953   : > { %v2590_v3 = vsel %vm2587_vm12, 0.0, %v2580_v2 }
 0x954   : > { %v2593_v4 = vsub.f32 %v2575_v50, %v2590_v3  ;;  %v7196_v50 = vpack.c.bf16 %v689_v49, %v688_v48  ;;  %v6583_v48 = vld [vmem:[%s8666_s6] ss:$0 sm:$0xff] }
 0x956   : > { %v2596_v5 = vmul.f32 1.442695, %v2593_v4 }
 0x958   : > { %7400 = vpow2.f32 %v2596_v5 }
 0x962   : > { %v7401_v6 = vpop.eup %7400 }
 0x963   : > { %v2602_v7 = vsel %vm1018_vm4, %v7401_v6, 0.0 }
 0x964   : > { %2603 = vadd.xlane.f32.xlu0 %v2602_v7 }
 0x986   : > { %v2586_v8 = vpop.xlane.xlu0 %2585 }
 0x987   : > { %vm2589_vm14 = vcmp.eq.f32.partialorder %v2586_v8, -inf }
 0x988   : > { %v2592_v10 = vsel %vm2589_vm14, 0.0, %v2586_v8 }
 0x989   : > { %v2595_v15 = vsub.f32 %v2577_v57, %v2592_v10 }
 0x98b   : > { %v2600_v16 = vmul.f32 1.442695, %v2595_v15 }
 0x98d   : > { %7402 = vpow2.f32 %v2600_v16 }
 0x993   : > { %v2583_v17 = vpop.xlane.xlu1 %2582 }
 0x994   : > { %vm2588_vm15 = vcmp.eq.f32.partialorder %v2583_v17, -inf }
 0x995   : > { %v2591_v19 = vsel %vm2588_vm15, 0.0, %v2583_v17  ;;  %vm8714_vm15 = vcmask 130048  }
 0x996   : > { %v2594_v13 = vsub.f32 %v2576_v0, %v2591_v19 }
 0x997   : > { %v7403_v21 = vpop.eup %7402  ;;  %v2627_v25 = vpop.permute.xlu1 %2626 }
 0x998   : > { %v2598_v26 = vmul.f32 1.442695, %v2594_v13  ;;  %6952 = vmatpush3.msk.msra.mxu1 %vm1073_vm8, %v2627_v25  ;;  %v2608_v27 = vsel %vm1018_vm4, %v7403_v21, 0.0 }
 0x999   : > { %2609 = vadd.xlane.f32.xlu0 %v2608_v27  ;;  %6961 = vmatprep.subr.mxu1 %v7534_v11  ;;  %v3038_v27 = vld [vmem:[%s8667_s7] sm:$0xff] }
 0x99a   : > { %7404 = vpow2.f32 %v2598_v26 }
 0x9a4   : > { %v7405_v28 = vpop.eup %7404 }
 0x9a5   : > { %v2605_v29 = vsel %vm1018_vm4, %v7405_v28, 0.0 }
 0x9a6   : > { %2606 = vadd.xlane.f32.xlu1 %v2605_v29 }
 0x9af   : > { %2703 = vrot.lane.b32.xlu0 %v7754_v14, %s8695_s29 }
 0x9b3   : > { %2862 = vrot.lane.b32.xlu0 %v7928_v41, %s8693_s25 }
 0x9b7   : > { %2874 = vrot.lane.b32.xlu0 %v2257_v45, %s8705_s24  ;;  %2780 = vrot.lane.b32.xlu1 %v7744_v12, %s8695_s29  ;;  %s663_s29 = scalar_lea.vmem %s8734_s3, %s7722_s28  ;;  %s8756_s3 = smov 80  }
 0x9b8   : > { %v679_v57 = vld [vmem:[%s663_s29 + $0x4] sm:$0xf]  ;;  %v680_v58 = vld [vmem:[%s663_s29 + $0x8] sm:$0xf]  ;;  %v678_v63 = vld [vmem:[%s663_s29] sm:$0xf] }
 0x9b9   : > { %vm2994_vm11 = vcmp.ne.f32.partialorder %v679_v57, 0.0  ;;  %vm2995_vm12 = vcmp.ne.f32.partialorder %v680_v58, 0.0  ;;  %vm2993_vm14 = vcmp.ne.f32.partialorder %v678_v63, 0.0  ;;  %v3217_v63 = vld [vmem:[%s8670_s10] sm:$0xff]  ;;  %s8743_s29 = sld [smem:[#allocation13_spill]] }
 0x9ba   : > { %v2997_v60 = vsel %vm2994_vm11, 1, %v7550_v56  ;;  %v2998_v61 = vsel %vm2995_vm12, 1, %v7550_v56  ;;  %v2996_v1 = vsel %vm2993_vm14, 1, %v7550_v56  ;;  %vm3344_vm12 = vcmask 125952  }
 0x9bb   : > { %2860 = vrot.lane.b32.xlu1 %v7921_v31, %s8693_s25 }
 0x9bf   : > { %2872 = vrot.lane.b32.xlu1 %v2180_v52, %s8705_s24  ;;  %v690_v52 = vld [vmem:[%s8733_s5 + $0x10] sm:$0xff]  ;;  %s8742_s5 = smov 96   ;;  %s669_s23 = scalar_lea.vmem %s8743_s29, %s7722_s28 }
 0x9c0   : > { %v7200_v55 = vpack.c.bf16 %v691_v53, %v690_v52  ;;  %s7553_s24 = smov 125   ;;  %s8744_s28 = smov 64  }
 0x9c1   : > { %s8762_s29 = smov 48  }
 0x9c3   : > { %2864 = vrot.lane.b32.xlu1 %v7923_v33, %s8693_s25  ;;  %s8709_s25 = smov 24  }
 0x9f1   : > { %v2604_v30 = vpop.xlane.xlu0 %2603 }
 0x9f2   : > { %vm2611_vm7 = vcmp.eq.f32.partialorder %v2604_v30, 0.0 }
 0x9f3   : > { %v2614_v14 = vsel %vm2611_vm7, 1.0, %v7534_v11  ;;  %vm8713_vm7 = vcmask 195584  }
 0x9f4   : > { %v2617_v32 = vadd.f32 %v2614_v14, %v2604_v30  ;;  %v3136_v30 = vld [vmem:[%s8668_s8 + $0x8] sm:$0xff] }
 0x9f6   : > { %7406 = vrcp.f32 %v2617_v32  ;;  %v3040_v32 = vld [vmem:[%s8667_s7 + $0x10] sm:$0xff] }
 0xa00   : > { %v7407_v41 = vpop.eup %7406 }
 0xa01   : > { %v2621_v34 = vmul.f32 %v7407_v41, %v7401_v6  ;;  %v3041_v41 = vld [vmem:[%s8667_s7 + $0x18] sm:$0xff] }
 0xa03   : > { %6954 = vmatmul.mubr.msk.f32.vlgmr.msra.gmra.mrb[20].mxu1 %vm1069_vm13, %v2621_v34  ;;  %v3137_v34 = vld [vmem:[%s8668_s8 + $0x10] sm:$0xff] }
 0xa04   : > { %6963 = vmatprep.mubr.msk.f32.mxu1 %vm8715_vm1, %v7534_v11 }
 0xa26   : > { %v2610_v12 = vpop.xlane.xlu0 %2609 }
 0xa27   : > { %vm2613_vm9 = vcmp.eq.f32.partialorder %v2610_v12, 0.0 }
 0xa28   : > { %v2616_v31 = vsel %vm2613_vm9, 1.0, %v7534_v11 }
 0xa29   : > { %v2619_v35 = vadd.f32 %v2616_v31, %v2610_v12  ;;  %v7208_v12 = vpack.c.bf16 %v3041_v41, %v3040_v32  ;;  %v3138_v31 = vld [vmem:[%s8668_s8 + $0x18] sm:$0xff] }
 0xa2a   : > { %v2704_v37 = vpop.permute.xlu0 %2703 }
 0xa2b   : > { %7408 = vrcp.f32 %v2619_v35  ;;  %6957 = vmatpush3.msk.msra.mxu0 %vm1073_vm8, %v2704_v37  ;;  %v7216_v35 = vpack.c.bf16 %v3138_v31, %v3137_v34  ;;  %v7551_v37 = vmov 839922192  }
 0xa2c   : > { %7197 = vmatprep.subr.bf16.mxu0 %v7196_v50 }
 0xa2e   : > { %v2863_v4 = vpop.permute.xlu0 %2862 }
 0xa2f   : > { %v2894_v8 = vsel %vm8717_vm2, %v7854_v23, %v2863_v4 }
 0xa32   : > { %v2875_v6 = vpop.permute.xlu0 %2874 }
 0xa33   : > { %v2607_v33 = vpop.xlane.xlu1 %2606  ;;  %v2898_v15 = vsel %vm8714_vm15, %v2894_v8, %v2875_v6  ;;  %v6586_v8 = vld [vmem:[%s8669_s9] ss:$0 sm:$0xff] }
 0xa34   : > { %vm2612_vm10 = vcmp.eq.f32.partialorder %v2607_v33, 0.0 }
 0xa35   : > { %v7409_v38 = vpop.eup %7408  ;;  %v2615_v39 = vsel %vm2612_vm10, 1.0, %v7534_v11 }
 0xa36   : > { %v2618_v40 = vadd.f32 %v2615_v39, %v2607_v33  ;;  %v2625_v42 = vmul.f32 %v7409_v38, %v7403_v21  ;;  %v3003_v33 = vunpack.c.l.s4 %v7551_v37  ;;  %v3005_v38 = vlaneseq }
 0xa37   : > { %v2781_v43 = vpop.permute.xlu1 %2780 }
 0xa38   : > { %7410 = vrcp.f32 %v2618_v40  ;;  %6962 = vmatpush3.msk.msra.mxu1 %vm1073_vm8, %v2781_v43  ;;  %v3004_v39 = vunpack.c.0.s8 %v3003_v33  ;;  %v3006_v40 = vshrl.u32 %v3005_v38, 7 }
 0xa39   : > { %6964 = vmatmul.mubr.msk.f32.vlgmr.msra.gmra.mrb[22].mxu1 %vm1069_vm13, %v2625_v42 }
 0xa3a   : > { %v8090_v43 = vsub.s32 %v3004_v39, %v3006_v40  ;;  %v3418_v6 = vsub.s32 1, %v3006_v40 }
 0xa3b   : > { %v2861_v2 = vpop.permute.xlu1 %2860 }
 0xa3c   : > { %v2893_v10 = vsel %vm8717_vm2, %v7852_v20, %v2861_v2  ;;  %v3971_v2 = vld [vmem:[%s8674_s14] sm:$0xff] }
 0xa3f   : > { %v2873_v3 = vpop.permute.xlu1 %2872 }
 0xa42   : > { %v7411_v44 = vpop.eup %7410 }
 0xa43   : > { %v2623_v45 = vmul.f32 %v7411_v44, %v7405_v28  ;;  %v2865_v5 = vpop.permute.xlu1 %2864  ;;  %v3039_v28 = vld [vmem:[%s8667_s7 + $0x8] sm:$0xff] }
 0xa44   : > { %v2895_v21 = vsel %vm8717_vm2, %v7862_v36, %v2865_v5  ;;  %v7204_v29 = vpack.c.bf16 %v3039_v28, %v3038_v27  ;;  %v3135_v36 = vld [vmem:[%s8668_s8] sm:$0xff]  ;;  %v3226_v5 = vsub.s32 0, %v3006_v40 }
 0xa45   : > { %6959 = vmatmul.mubr.msk.f32.vlgmr.msra.gmra.mrb[24].mxu0 %vm1069_vm13, %v2623_v45  ;;  %v7212_v14 = vpack.c.bf16 %v3136_v30, %v3135_v36 }
 0xa46   : > { %7199 = vmatpush3.bf16.msra.mxu0 %v7196_v50  ;;  %7205 = vmatprep.subr.bf16.mxu1 %v7204_v29 }
 0xa47   : > { %7201 = vmatprep.subr.bf16.mxu0 %v7200_v55  ;;  %7207 = vmatpush3.bf16.msra.mxu1 %v7204_v29 }
 0xa48   : > { %7209 = vmatprep.subr.bf16.mxu1 %v7208_v12 }
 0xa4a   : > { %7203 = vmatpush3.bf16.msra.mxu0 %v7200_v55 }
 0xa4b   : > { %7213 = vmatprep.subr.bf16.mxu0 %v7212_v14  ;;  %7211 = vmatpush3.bf16.msra.mxu1 %v7208_v12 }
 0xad6   : > { %v2699_v46 = vpop.f32.mrb[20].mxu1 }
 0xad7   : > { %2884 = vrot.lane.b32.xlu1 %v2699_v46, %s8709_s25  ;;  %v6955_v47 = vpop.f32.mrb[21].mxu1 }
 0xb0c   : > { %v2853_v51 = vpop.f32.mrb[22].mxu1 }
 0xb0d   : > { %2888 = vrot.lane.b32.xlu1 %v2853_v51, %s8709_s25  ;;  %v6965_v54 = vpop.f32.mrb[23].mxu1 }
 0xb11   : > { %3010 = vperm.xlu1 %7332, %v2997_v60  }
 0xb15   : > { %3020 = vperm.xlu1 %7332, %v2998_v61  }
 0xb18   : > { %v2776_v62 = vpop.f32.mrb[24].mxu0 }
 0xb19   : > { %2886 = vrot.lane.b32.xlu0 %v2776_v62, %s8709_s25  ;;  %v6960_v0 = vpop.f32.mrb[25].mxu0  ;;  %s8745_s25 = smov 88  }
 0xb1a   : > { %v3218_v0 = vld [vmem:[%s8670_s10 + $0x8] sm:$0xff] }
 0xb1d   : > { %2876 = vrot.lane.b32.xlu0 %v7996_v59, %s8735_s4  ;;  %v2897_v59 = vsel %vm8714_vm15, %v2893_v10, %v2873_v3  ;;  %v3972_v3 = vld [vmem:[%s8674_s14 + $0x8] sm:$0xff]  ;;  %v3785_v10 = vsub.s32 3, %v3006_v40 }
 0xb1e   : > { %v7236_v4 = vpack.c.bf16 %v3972_v3, %v3971_v2 }
 0xb21   : > { %3000 = vperm.xlu0 %7331, %v2996_v1   ;;  %v8126_v1 = vpack.c.bf16 %v3218_v0, %v3217_v63 }
 0xb23   : > { %7221 = vmatprep.subr.bf16.mxu1 %v8126_v1 }
 0xb49   : > { %v2885_v7 = vpop.permute.xlu1 %2884 }
 0xb4a   : > { %v2901_v17 = vsel %vm8713_vm7, %v2897_v59, %v2885_v7  ;;  %v3603_v7 = vsub.s32 2, %v3006_v40 }
 0xb7f   : > { %v2889_v23 = vpop.permute.xlu1 %2888 }
 0xb8b   : > { %v2887_v16 = vpop.permute.xlu0 %2886 }
 0xb8c   : > { %v2902_v19 = vsel %vm8713_vm7, %v2898_v15, %v2887_v16 }
 0xb8d   : > { %v2913_v13 = vcombine.low %v2901_v17, %v2902_v19 }
 0xb8f   : > { %v2877_v25 = vpop.permute.xlu0 %2876  ;;  %6974 = vmatprep.mubr.msk.f32.mxu0 %vm8712_vm0, %v2913_v13 }
 0xb90   : > { %v2899_v26 = vsel %vm8714_vm15, %v2895_v21, %v2877_v25  ;;  %v3011_v42 = vpop.permute.xlu1 %3010 }
 0xb91   : > { %v2903_v20 = vsel %vm8713_vm7, %v2899_v26, %v2889_v23  ;;  %v3018_v45 = vrot.slane %v3011_v42, %v8090_v43 }
 0xb92   : > { %6975 = vmatmul.mubr.msk.f32.vlgmr.msra.gmra.mrb[26].mxu0 %vm8712_vm0, %v2903_v20 }
 0xb93   : > { %7215 = vmatpush3.bf16.msra.mxu0 %v7212_v14  ;;  %vm8098_vm9 = vcmp.eq.s32.totalorder %v3018_v45, 1 }
 0xb94   : > { %7217 = vmatprep.subr.bf16.mxu0 %v7216_v35  ;;  %v3021_v46 = vpop.permute.xlu1 %3020 }
 0xb95   : > { %v3028_v51 = vrot.slane %v3021_v46, %v8090_v43 }
 0xb97   : > { %7219 = vmatpush3.bf16.msra.mxu0 %v7216_v35  ;;  %vm8106_vm11 = vcmp.eq.s32.totalorder %v3028_v51, 1 }
 0xb98   : > { %7229 = vmatprep.subr.bf16.mxu0 %v8126_v1 }
 0xba0   : > { %v3001_v44 = vpop.permute.xlu0 %3000 }
 0xba1   : > { %v3008_v47 = vrot.slane %v3001_v44, %v8090_v43 }
 0xba3   : > { %vm8102_vm10 = vcmp.eq.s32.totalorder %v3008_v47, 1 }
 0xc65   : > { %v6976_v49 = vpop.f32.mrb[26].mxu0 }
 0xc66   : > { %v2984_v50 = vpop.f32.mrb[27].mxu0  ;;  %v2990_v56 = vadd.f32 %v6976_v49, %v6583_v48 }
 0xc67   : > { %v2985_v52 = vadd.f32 %v6583_v48, %v2984_v50 }
 0xc68   : > { %v3037_v62 = vsel %vm8106_vm11, 0.0, %v2990_v56  ;;  %v3974_v56 = vld [vmem:[%s8674_s14 + $0x18] sm:$0xff] }
 0xc69   : > { %v3033_v55 = vcombine.high %v2985_v52, %v2985_v52  ;;  %v3035_v58 = vsel %vm8102_vm10, 0.0, %v2985_v52 }
 0xc6b   : > { %v3036_v60 = vsel %vm8098_vm9, 0.0, %v3033_v55  ;;  %v3973_v55 = vld [vmem:[%s8674_s14 + $0x10] sm:$0xff] }
 0xc6c   : > { %v3052_v61 = vcombine.low %v3035_v58, %v3036_v60 }
 0xc6e   : > { %6985 = vmatprep.mubr.msk.f32.mxu1 %vm8712_vm0, %v3052_v61  ;;  %6996 = vmatprep.mubr.msk.f32.mxu0 %vm8712_vm0, %v3052_v61 }
 0xc6f   : > { %6986 = vmatmul.mubr.msk.f32.vlgmr.msra.gmra.mrb[24].mxu1 %vm8712_vm0, %v3037_v62  ;;  %6997 = vmatmul.mubr.msk.f32.vlgmr.msra.gmra.mrb[28].mxu0 %vm8712_vm0, %v3037_v62 }
 0xc70   : > { %7231 = vmatpush3.bf16.msra.mxu0 %v8126_v1  ;;  %7223 = vmatpush3.bf16.msra.mxu1 %v8126_v1 }
 0xc71   : > { %7225 = vmatprep.subr.bf16.mxu1 %v8126_v1  ;;  %7237 = vmatprep.subr.bf16.mxu0 %v7236_v4 }
 0xd42   : > { %v6987_v15 = vpop.f32.mrb[24].mxu1  ;;  %v6998_v59 = vpop.f32.mrb[28].mxu0 }
 0xd43   : > { %v3129_v16 = vadd.f32 %v6987_v15, %v6586_v8  ;;  %v3235_v17 = vrot.slane %v6998_v59, %v3226_v5  ;;  %v3427_v19 = vrot.slane %v6998_v59, %v3418_v6  ;;  %v3612_v13 = vrot.slane %v6998_v59, %v3603_v7  ;;  %v3123_v21 = vpop.f32.mrb[25].mxu1  ;;  %v3205_v25 = vpop.f32.mrb[29].mxu0 }
 0xd44   : > { %v3794_v23 = vrot.slane %v6998_v59, %v3785_v10  ;;  %v3124_v26 = vadd.f32 %v6586_v8, %v3123_v21  ;;  %v3215_v20 = vcombine.high %v3205_v25, %v3205_v25  ;;  %v3227_v27 = vrot.slane %v3205_v25, %v3226_v5  ;;  %v6591_v59 = vld [vmem:[%s8671_s11] ss:$0 sm:$0xff] }
 0xd45   : > { %v3238_v28 = vadd.f32 %v3235_v17, %v3129_v16  ;;  %v3430_v29 = vadd.f32 %v3427_v19, %v3129_v16  ;;  %v3615_v36 = vadd.f32 %v3612_v13, %v3129_v16  ;;  %v3419_v30 = vrot.slane %v3205_v25, %v3418_v6 }
 0xd46   : > { %v3797_v14 = vadd.f32 %v3794_v23, %v3129_v16  ;;  %v3133_v32 = vcombine.high %v3124_v26, %v3124_v26  ;;  %v3604_v41 = vrot.slane %v3205_v25, %v3603_v7  ;;  %v3786_v34 = vrot.slane %v3205_v25, %v3785_v10 }
 0xd47   : > { %v3231_v12 = vrot.slane %v3215_v20, %v3226_v5  ;;  %v3236_v31 = vadd.f32 %v3227_v27, %v3124_v26  ;;  %v3608_v35 = vrot.slane %v3215_v20, %v3603_v7  ;;  %v3423_v39 = vrot.slane %v3215_v20, %v3418_v6 }
 0xd48   : > { %v3613_v37 = vadd.f32 %v3604_v41, %v3124_v26  ;;  %v3428_v40 = vadd.f32 %v3419_v30, %v3124_v26  ;;  %v3790_v42 = vrot.slane %v3215_v20, %v3785_v10  ;;  %v3795_v45 = vadd.f32 %v3786_v34, %v3124_v26  ;;  %v6594_v26 = vld [vmem:[%s8672_s12] ss:$0 sm:$0xff] }
 0xd49   : > { %v3237_v33 = vadd.f32 %v3231_v12, %v3133_v32  ;;  %v3614_v44 = vadd.f32 %v3608_v35, %v3133_v32  ;;  %v3239_v46 = vmax.f32 %v3236_v31, 0.0  ;;  %v3429_v48 = vadd.f32 %v3423_v39, %v3133_v32 }
 0xd4a   : > { %v3796_v49 = vadd.f32 %v3790_v42, %v3133_v32  ;;  %v3616_v50 = vmax.f32 %v3613_v37, 0.0  ;;  %v3431_v52 = vmax.f32 %v3428_v40, 0.0  ;;  %v3798_v61 = vmax.f32 %v3795_v45, 0.0 }
 0xd4b   : > { %v3240_v47 = vmax.f32 %v3237_v33, 0.0  ;;  %v3617_v51 = vmax.f32 %v3614_v44, 0.0  ;;  %v3432_v60 = vmax.f32 %v3429_v48, 0.0  ;;  %v3241_v63 = vmax.f32 %v3238_v28, 0.0 }
 0xd4c   : > { %v3799_v62 = vmax.f32 %v3796_v49, 0.0  ;;  %v3618_v2 = vmax.f32 %v3615_v36, 0.0  ;;  %v7240_v5 = vpack.c.bf16 %v3974_v56, %v3973_v55  ;;  %v3433_v7 = vmax.f32 %v3430_v29, 0.0 }
 0xd4d   : > { %v3251_v58 = vcombine.low %v3239_v46, %v3240_v47  ;;  %v3622_v0 = vcombine.low %v3616_v50, %v3617_v51  ;;  %v3437_v3 = vcombine.low %v3431_v52, %v3432_v60  ;;  %v3800_v8 = vmax.f32 %v3797_v14, 0.0  ;;  %v681_v60 = vld [vmem:[%s669_s23] sm:$0xf] }
 0xd4e   : > { %v3804_v6 = vcombine.low %v3798_v61, %v3799_v62  ;;  %v8200_v61 = vld [vmem:[%s669_s23 + $0x8] sm:$0xf]  ;;  %v682_v62 = vld [vmem:[%s669_s23 + $0x4] sm:$0xf]  ;;  %s8763_s23 = smov 72  }
 0xd4f   : > { %7003 = vmatprep.mubr.msk.f32.mxu1 %vm8714_vm15, %v3251_v58  ;;  %7017 = vmatprep.mubr.msk.f32.mxu0 %vm8714_vm15, %v3622_v0 }
 0xd50   : > { %7004 = vmatmul.mubr.msk.f32.vlgmr.msra.gmra.mrb[26].mxu1 %vm8714_vm15, %v3241_v63  ;;  %7018 = vmatmul.mubr.msk.f32.vlgmr.msra.gmra.mrb[30].mxu0 %vm8714_vm15, %v3618_v2 }
 0xd51   : > { %7227 = vmatpush3.bf16.msra.mxu1 %v8126_v1  ;;  %7239 = vmatpush3.bf16.msra.mxu0 %v7236_v4  ;;  %v7466_v4 = vld [vmem:[%s7728_s2 + $0x8] sm:$0xf] }
 0xd52   : > { %7010 = vmatprep.mubr.msk.f32.mxu1 %vm8714_vm15, %v3437_v3  ;;  %7241 = vmatprep.subr.bf16.mxu0 %v7240_v5 }
 0xd53   : > { %7233 = vmatprep.subr.bf16.mxu1 %v8126_v1  ;;  %7035 = vmatprep.mubr.msk.f32.mxu0 %vm8712_vm0, %v7732_v9 }
 0xd54   : > { %7011 = vmatmul.mubr.msk.f32.vlgmr.msra.gmra.mrb[28].mxu1 %vm8714_vm15, %v3433_v7 }
 0xd55   : > { %7235 = vmatpush3.bf16.msra.mxu1 %v8126_v1  ;;  %7024 = vmatprep.mubr.msk.f32.mxu1 %vm8714_vm15, %v3804_v6 }
 0xd56   : > { %7243 = vmatpush3.bf16.msra.mxu0 %v7240_v5  ;;  %7038 = vmatprep.subr.mxu1 %v7534_v11 }
 0xd57   : > { %7048 = vmatprep.subr.mxu0 %v7534_v11 }
 0xd58   : > { %7025 = vmatmul.mubr.msk.f32.vlgmr.msra.gmra.mrb[30].mxu1 %vm8714_vm15, %v3800_v8 }
 0xd59   : > { %7036 = vmatmul.mubr.msk.f32.vlgmr.msra.gmra.mrb[32].mxu0 %vm8712_vm0, %v7466_v4  ;;  %7040 = vmatprep.mubr.msk.f32.mxu1 %vm8715_vm1, %v7534_v11 }
 0xd5a   : > { %7050 = vmatprep.mubr.msk.f32.mxu0 %vm8715_vm1, %v7534_v11 }
 0xe23   : > { %v7005_v9 = vpop.f32.mrb[26].mxu1  ;;  %v7019_v1 = vpop.f32.mrb[30].mxu0 }
 0xe24   : > { %v3322_v10 = vpop.f32.mrb[27].mxu1  ;;  %v3693_v15 = vpop.f32.mrb[31].mxu0  ;;  %v3328_v40 = vadd.f32 %v7005_v9, %v6591_v59  ;;  %v3699_v46 = vadd.f32 %v7019_v1, %v6591_v59 }
 0xe25   : > { %v3694_v33 = vadd.f32 %v6591_v59, %v3693_v15  ;;  %v3323_v39 = vadd.f32 %v6591_v59, %v3322_v10 }
 0xe26   : > { %v3332_v45 = vmax.f32 %v3328_v40, 0.0  ;;  %v3703_v49 = vmax.f32 %v3699_v46, 0.0 }
 0xe27   : > { %v7012_v16 = vpop.f32.mrb[28].mxu1  ;;  %v3702_v42 = vmax.f32 %v3694_v33, 0.0  ;;  %v3331_v44 = vmax.f32 %v3323_v39, 0.0 }
 0xe28   : > { %v3514_v17 = vadd.f32 %v7012_v16, %v6591_v59  ;;  %v3508_v19 = vpop.f32.mrb[29].mxu1  ;;  %v3340_v51 = vmul.f32 %v6594_v26, %v3332_v45  ;;  %v3705_v56 = vmul.f32 %v6594_v26, %v3703_v49  ;;  %v6595_v16 = vld [vmem:[#allocation2] ss:$0 sm:$0xff] }
 0xe29   : > { %v3509_v13 = vadd.f32 %v6591_v59, %v3508_v19  ;;  %v3704_v47 = vmul.f32 %v6594_v26, %v3702_v42  ;;  %v3339_v48 = vmul.f32 %v6594_v26, %v3331_v44 }
 0xe2a   : > { %v3518_v21 = vmax.f32 %v3514_v17, 0.0  ;;  %v3345_v55 = vsel %vm3344_vm12, %v3340_v51, 0.0  ;;  %v3709_v58 = vsel %vm3344_vm12, %v3705_v56, 0.0 }
 0xe2b   : > { %v3517_v25 = vmax.f32 %v3509_v13, 0.0  ;;  %v7026_v23 = vpop.f32.mrb[30].mxu1  ;;  %v3706_v50 = vsel %vm8714_vm15, %v3704_v47, 0.0  ;;  %v3341_v52 = vsel %vm8714_vm15, %v3339_v48, 0.0 }
 0xe2c   : > { %v8175_v20 = vpop.f32.mrb[32].mxu0  ;;  %v3881_v27 = vadd.f32 %v7026_v23, %v6591_v59  ;;  %v3875_v28 = vpop.f32.mrb[31].mxu1  ;;  %v3520_v29 = vmul.f32 %v6594_v26, %v3518_v21 }
 0xe2d   : > { %v8177_v36 = vpop.f32.mrb[33].mxu0  ;;  %v3876_v30 = vadd.f32 %v6591_v59, %v3875_v28  ;;  %v3519_v14 = vmul.f32 %v6594_v26, %v3517_v25 }
 0xe2e   : > { %v3885_v32 = vmax.f32 %v3881_v27, 0.0  ;;  %v8181_v41 = vcombine.high %v8177_v36, %v8177_v36  ;;  %4058 = vrot.lane.b32.xlu0 %v8177_v36, %s8742_s5  ;;  %v3524_v34 = vsel %vm3344_vm12, %v3520_v29, 0.0 }
 0xe2f   : > { %v3884_v12 = vmax.f32 %v3876_v30, 0.0  ;;  %v3521_v63 = vsel %vm8714_vm15, %v3519_v14, 0.0 }
 0xe30   : > { %4134 = vrot.lane.b32.xlu1 %v8181_v41, %s8742_s5  ;;  %v3887_v31 = vmul.f32 %v6594_v26, %v3885_v32 }
 0xe31   : > { %v3886_v35 = vmul.f32 %v6594_v26, %v3884_v12 }
 0xe32   : > { %4210 = vrot.lane.b32.xlu0 %v8175_v20, %s8742_s5  ;;  %v3891_v37 = vsel %vm3344_vm12, %v3887_v31, 0.0  ;;  %s8754_s5 = smov 56  }
 0xe33   : > { %v3888_v0 = vsel %vm8714_vm15, %v3886_v35, 0.0 }
 0xe51   : > { %3707 = vadd.xlane.f32.xlu0 %v3706_v50 }
 0xe54   : > { %3342 = vadd.xlane.f32.xlu1 %v3341_v52 }
 0xe55   : > { %3346 = vadd.xlane.f32.xlu0 %v3345_v55 }
 0xe59   : > { %3710 = vadd.xlane.f32.xlu0 %v3709_v58 }
 0xe65   : > { %3717 = vrot.lane.b32.xlu1 %v681_v60, %s7552_s1 }
 0xe69   : > { %3899 = vrot.lane.b32.xlu1 %v681_v60, %s7553_s24 }
 0xe6d   : > { %3539 = vrot.lane.b32.xlu1 %v8200_v61, %s7554_s0 }
 0xe6f   : > { %3535 = vrot.lane.b32.xlu0 %v681_v60, %s7554_s0 }
 0xe71   : > { %3721 = vrot.lane.b32.xlu1 %v8200_v61, %s7552_s1 }
 0xe73   : > { %3537 = vrot.lane.b32.xlu0 %v682_v62, %s7554_s0  ;;  %s8772_s0 = smov 8  }
 0xe77   : > { %3719 = vrot.lane.b32.xlu0 %v682_v62, %s7552_s1  ;;  %s8764_s1 = smov 104  }
 0xe95   : > { %3525 = vadd.xlane.f32.xlu1 %v3524_v34 }
 0xe96   : > { %3522 = vadd.xlane.f32.xlu0 %v3521_v63 }
 0xe99   : > { %3892 = vadd.xlane.f32.xlu1 %v3891_v37 }
 0xe9d   : > { %3889 = vadd.xlane.f32.xlu1 %v3888_v0 }
 0xea0   : > { %v4059_v2 = vpop.permute.xlu0 %4058 }
 0xea1   : > { %7039 = vmatpush3.xpose.msk.msra.mxu1 %vm8717_vm2, %v4059_v2 }
 0xea2   : > { %7043 = vmatprep.subr.mxu1 %v7534_v11  ;;  %v4135_v3 = vpop.permute.xlu1 %4134 }
 0xea4   : > { %v4211_v5 = vpop.permute.xlu0 %4210  ;;  %7041 = vmatmul.mubr.msk.f32.vlgmr.msra.gmra.mrb[32].mxu1 %vm8717_vm2, %v8177_v36 }
 0xea5   : > { %7044 = vmatpush3.xpose.msk.msra.mxu1 %vm8717_vm2, %v4135_v3  ;;  %7049 = vmatpush3.xpose.msk.msra.mxu0 %vm8717_vm2, %v4211_v5 }
 0xea6   : > { %7045 = vmatprep.mubr.msk.f32.mxu1 %vm8715_vm1, %v7534_v11  ;;  %7053 = vmatprep.subr.mxu1 %v7534_v11 }
 0xea7   : > { %7058 = vmatprep.subr.mxu0 %v7534_v11 }
 0xea8   : > { %7046 = vmatmul.mubr.msk.f32.vlgmr.msra.gmra.mrb[34].mxu1 %vm8717_vm2, %v8181_v41  ;;  %7051 = vmatmul.mubr.msk.f32.vlgmr.msra.gmra.mrb[34].mxu0 %vm8717_vm2, %v8175_v20 }
 0xea9   : > { %7060 = vmatprep.mubr.msk.f32.mxu0 %vm8715_vm1, %v7534_v11  ;;  %7055 = vmatprep.mubr.msk.f32.mxu1 %vm8715_vm1, %v7534_v11 }
 0xeac   : > { %3901 = vrot.lane.b32.xlu0 %v682_v62, %s7553_s24 }
 0xeae   : > { %3903 = vrot.lane.b32.xlu1 %v8200_v61, %s7553_s24  ;;  %s8771_s24 = smov 40  }
 0xede   : > { %v3708_v6 = vpop.xlane.xlu0 %3707 }
 0xedf   : > { %v3712_v21 = vadd.f32 %v6595_v16, %v3708_v6 }
 0xee1   : > { %v3343_v7 = vpop.xlane.xlu1 %3342  ;;  %v3715_v14 = vcombine.high %v3712_v21, %v3712_v21 }
 0xee2   : > { %v3347_v8 = vpop.xlane.xlu0 %3346  ;;  %v3354_v17 = vadd.f32 %v6595_v16, %v3343_v7 }
 0xee3   : > { %v3355_v33 = vadd.f32 %v6595_v16, %v3347_v8 }
 0xee4   : > { %v3357_v25 = vcombine.high %v3354_v17, %v3354_v17  ;;  %v3359_v23 = vadd.f32 %v3354_v17, %v681_v60 }
 0xee5   : > { %v3718_v4 = vpop.permute.xlu1 %3717  ;;  %v3361_v50 = vadd.f32 %v3355_v33, %v8200_v61 }
 0xee6   : > { %v3711_v9 = vpop.xlane.xlu0 %3710  ;;  %v3360_v30 = vadd.f32 %v3357_v25, %v682_v62  ;;  %vm3363_vm14 = vcmp.gt.f32.partialorder %v3359_v23, 0.0  ;;  %v3726_v39 = vadd.f32 %v3718_v4, %v3712_v21  ;;  %v3223_v23 = vand.u32 127, %v3005_v38 }
 0xee7   : > { %v3713_v28 = vadd.f32 %v6595_v16, %v3711_v9  ;;  %v6596_v42 = vsel %vm3363_vm14, 1.0, %v7534_v11 }
 0xee8   : > { %vm3364_vm0 = vcmp.gt.f32.partialorder %v3360_v30, 0.0  ;;  %vm3730_vm2 = vcmp.gt.f32.partialorder %v3726_v39, 0.0 }
 0xee9   : > { %v3900_v1 = vpop.permute.xlu1 %3899  ;;  %v6597_v58 = vsel %vm3364_vm0, 1.0, %v7534_v11  ;;  %v6606_v3 = vsel %vm3730_vm2, 1.0, %v7534_v11  ;;  %vm3547_vm2 = vcmp.eq.s32.totalorder %v3223_v23, 1 }
 0xeea   : > { %v3536_v10 = vpop.permute.xlu0 %3535 }
 0xeed   : > { %v3540_v15 = vpop.permute.xlu1 %3539 }
 0xeee   : > { %v3538_v59 = vpop.permute.xlu0 %3537 }
 0xef1   : > { %v3722_v19 = vpop.permute.xlu1 %3721 }
 0xef2   : > { %v3720_v13 = vpop.permute.xlu0 %3719  ;;  %v3728_v32 = vadd.f32 %v3722_v19, %v3713_v28 }
 0xef3   : > { %v3727_v35 = vadd.f32 %v3720_v13, %v3715_v14 }
 0xef4   : > { %vm3732_vm7 = vcmp.gt.f32.partialorder %v3728_v32, 0.0 }
 0xef5   : > { %vm3731_vm1 = vcmp.gt.f32.partialorder %v3727_v35, 0.0  ;;  %v6608_v60 = vsel %vm3732_vm7, 1.0, %v7534_v11 }
 0xef6   : > { %v6607_v62 = vsel %vm3731_vm1, 1.0, %v7534_v11  ;;  %vm3362_vm1 = vcmp.eq.s32.totalorder %v3223_v23, 0 }
 0xef7   : > { %v7353_v7 = vpack.i.bf16 %v6608_v60, %v6607_v62 }
 0xf22   : > { %v3526_v26 = vpop.xlane.xlu1 %3525 }
 0xf23   : > { %v3523_v27 = vpop.xlane.xlu0 %3522  ;;  %v3528_v37 = vadd.f32 %v6595_v16, %v3526_v26 }
 0xf24   : > { %v3527_v29 = vadd.f32 %v6595_v16, %v3523_v27 }
 0xf25   : > { %v3546_v47 = vadd.f32 %v3540_v15, %v3528_v37 }
 0xf26   : > { %v3530_v34 = vcombine.high %v3527_v29, %v3527_v29  ;;  %v3544_v12 = vadd.f32 %v3536_v10, %v3527_v29  ;;  %v3893_v31 = vpop.xlane.xlu1 %3892 }
 0xf27   : > { %v3902_v51 = vpop.permute.xlu0 %3901  ;;  %v3895_v52 = vadd.f32 %v6595_v16, %v3893_v31  ;;  %vm3550_vm14 = vcmp.gt.f32.partialorder %v3546_v47, 0.0 }
 0xf28   : > { %v3545_v40 = vadd.f32 %v3538_v59, %v3530_v34  ;;  %vm3548_vm12 = vcmp.gt.f32.partialorder %v3544_v12, 0.0  ;;  %v6603_v8 = vsel %vm3550_vm14, 1.0, %v7534_v11  ;;  %vm3729_vm14 = vcmp.eq.s32.totalorder %v3223_v23, 2 }
 0xf29   : > { %v6601_v44 = vsel %vm3548_vm12, 1.0, %v7534_v11  ;;  %vm3365_vm12 = vcmp.gt.f32.partialorder %v3361_v50, 0.0 }
 0xf2a   : > { %vm3549_vm15 = vcmp.gt.f32.partialorder %v3545_v40, 0.0  ;;  %v3890_v45 = vpop.xlane.xlu1 %3889  ;;  %v7333_v46 = vpack.i.bf16 %v6601_v44, %v6596_v42  ;;  %v6598_v4 = vsel %vm3365_vm12, 1.0, %v7534_v11 }
 0xf2b   : > { %v3894_v48 = vadd.f32 %v6595_v16, %v3890_v45  ;;  %v6602_v49 = vsel %vm3549_vm15, 1.0, %v7534_v11  ;;  %v7348_v9 = vpack.i.bf16 %v6603_v8, %v6598_v4 }
 0xf2c   : > { %7334 = vperm.xlu0 %7331, %v7333_v46   ;;  %v7338_v0 = vpack.i.bf16 %v6602_v49, %v6597_v58 }
 0xf2d   : > { %v3908_v55 = vadd.f32 %v3900_v1, %v3894_v48  ;;  %v3897_v56 = vcombine.high %v3894_v48, %v3894_v48 }
 0xf2e   : > { %v3904_v63 = vpop.permute.xlu1 %3903 }
 0xf2f   : > { %vm3912_vm15 = vcmp.gt.f32.partialorder %v3908_v55, 0.0  ;;  %v3909_v2 = vadd.f32 %v3902_v51, %v3897_v56  ;;  %v3910_v61 = vadd.f32 %v3904_v63, %v3895_v52 }
 0xf30   : > { %v6611_v5 = vsel %vm3912_vm15, 1.0, %v7534_v11  ;;  %7339 = vperm.xlu0 %7331, %v7338_v0   ;;  %vm3911_vm15 = vcmp.eq.s32.totalorder %v3223_v23, 3 }
 0xf31   : > { %v7343_v6 = vpack.i.bf16 %v6611_v5, %v6606_v3  ;;  %vm3913_vm0 = vcmp.gt.f32.partialorder %v3909_v2, 0.0  ;;  %vm3914_vm7 = vcmp.gt.f32.partialorder %v3910_v61, 0.0 }
 0xf32   : > { %v6612_v1 = vsel %vm3913_vm0, 1.0, %v7534_v11  ;;  %v6613_v10 = vsel %vm3914_vm7, 1.0, %v7534_v11 }
 0xf33   : > { %7344 = vperm.xlu1 %7332, %v7343_v6   ;;  %v7358_v15 = vpack.i.bf16 %v6613_v10, %v6612_v1 }
 0xf34   : > { %7354 = vperm.xlu0 %7331, %v7353_v7  }
 0xf37   : > { %7349 = vperm.xlu1 %7332, %v7348_v9  }
 0xf3b   : > { %7359 = vperm.xlu1 %7332, %v7358_v15  }
 0xf77   : > { %v4130_v59 = vpop.f32.mrb[32].mxu1 }
 0xf78   : > { %v7042_v16 = vpop.f32.mrb[33].mxu1 }
 0xf79   : > { %v4286_v16 = vmul.f32 0.35355338, %v4130_v59 }
 0xf7b   : > { %v8242_v17 = vpop.f32.mrb[34].mxu1  ;;  %v8244_v19 = vpop.f32.mrb[34].mxu0 }
 0xf7c   : > { %v7047_v13 = vpop.f32.mrb[35].mxu1  ;;  %v7052_v21 = vpop.f32.mrb[35].mxu0  ;;  %v4287_v18 = vmul.f32 0.35355338, %v8242_v17 }
 0xfab   : > { %v7335_v25 = vpop.permute.xlu0 %7334 }
 0xfac   : > { %v7337_v26 = vunpack.i.h.bf16 %v7335_v25  ;;  %v7336_v27 = vunpack.i.l.bf16 %v7335_v25 }
 0xfae   : > { %v3570_v28 = vrot.slane %v7337_v26, %v8090_v43  ;;  %v3385_v29 = vrot.slane %v7336_v27, %v8090_v43 }
 0xfaf   : > { %v7340_v30 = vpop.permute.xlu0 %7339 }
 0xfb0   : > { %v7342_v14 = vunpack.i.h.bf16 %v7340_v30  ;;  %v7341_v32 = vunpack.i.l.bf16 %v7340_v30  ;;  %v3595_v12 = vsel %vm3547_vm2, %v3570_v28, 0.0  ;;  %v3410_v31 = vsel %vm3362_vm1, %v3385_v29, 0.0 }
 0xfb1   : > { %v3598_v46 = vadd.f32 %v3595_v12, %v3410_v31 }
 0xfb2   : > { %v7345_v34 = vpop.permute.xlu1 %7344  ;;  %v3582_v38 = vrot.slane %v7342_v14, %v8090_v43  ;;  %v3397_v39 = vrot.slane %v7341_v32, %v8090_v43  ;;  %v4288_v32 = vmul.f32 0.35355338, %v8244_v19 }
 0xfb3   : > { %v7347_v35 = vunpack.i.h.bf16 %v7345_v34  ;;  %v7346_v37 = vunpack.i.l.bf16 %v7345_v34  ;;  %v7355_v33 = vpop.permute.xlu0 %7354 }
 0xfb4   : > { %v7356_v40 = vunpack.i.l.bf16 %v7355_v33  ;;  %v7357_v45 = vunpack.i.h.bf16 %v7355_v33  ;;  %v3596_v52 = vsel %vm3547_vm2, %v3582_v38, 0.0  ;;  %v3411_v55 = vsel %vm3362_vm1, %v3397_v39, 0.0 }
 0xfb5   : > { %v3934_v42 = vrot.slane %v7347_v35, %v8090_v43  ;;  %v3752_v44 = vrot.slane %v7346_v37, %v8090_v43  ;;  %v3599_v8 = vadd.f32 %v3596_v52, %v3411_v55 }
 0xfb6   : > { %v3764_v47 = vrot.slane %v7356_v40, %v8090_v43  ;;  %v7350_v48 = vpop.permute.xlu1 %7349  ;;  %v3776_v60 = vrot.slane %v7357_v45, %v8090_v43 }
 0xfb7   : > { %v3777_v49 = vsel %vm3729_vm14, %v3752_v44, 0.0  ;;  %v7352_v50 = vunpack.i.h.bf16 %v7350_v48  ;;  %v7351_v51 = vunpack.i.l.bf16 %v7350_v48  ;;  %v3959_v58 = vsel %vm3911_vm15, %v3934_v42, 0.0 }
 0xfb8   : > { %v3780_v56 = vadd.f32 %v3777_v49, %v3598_v46  ;;  %v3778_v2 = vsel %vm3729_vm14, %v3764_v47, 0.0  ;;  %v3779_v1 = vsel %vm3729_vm14, %v3776_v60, 0.0 }
 0xfb9   : > { %v3594_v62 = vrot.slane %v7352_v50, %v8090_v43  ;;  %v3409_v63 = vrot.slane %v7351_v51, %v8090_v43  ;;  %v3781_v13 = vadd.f32 %v3778_v2, %v3599_v8 }
 0xfba   : > { %v3962_v0 = vadd.f32 %v3959_v58, %v3780_v56  ;;  %v7360_v61 = vpop.permute.xlu1 %7359 }
 0xfbb   : > { %v3597_v3 = vsel %vm3547_vm2, %v3594_v62, 0.0  ;;  %v3412_v5 = vsel %vm3362_vm1, %v3409_v63, 0.0  ;;  %v7362_v6 = vunpack.i.h.bf16 %v7360_v61  ;;  %v7361_v7 = vunpack.i.l.bf16 %v7360_v61 }
 0xfbc   : > { %v3965_v4 = vsub.f32 1.0, %v3962_v0  ;;  %v3600_v9 = vadd.f32 %v3597_v3, %v3412_v5 }
 0xfbd   : > { %v3958_v10 = vrot.slane %v7362_v6, %v8090_v43  ;;  %v3946_v15 = vrot.slane %v7361_v7, %v8090_v43 }
 0xfbe   : > { %v3782_v21 = vadd.f32 %v3779_v1, %v3600_v9  ;;  %v8271_v25 = vsel %vm1012_vm3, 1.0, %v3965_v4 }
 0xfbf   : > { %v3961_v26 = vsel %vm3911_vm15, %v3958_v10, 0.0  ;;  %v3960_v27 = vsel %vm3911_vm15, %v3946_v15, 0.0  ;;  %vm4289_vm12 = vcmp.ne.f32.partialorder %v8271_v25, 0.0  ;;  %vm8747_vm15 = vcmask 64512  }
 0xfc0   : > { %v3963_v28 = vadd.f32 %v3960_v27, %v3781_v13  ;;  %v3964_v29 = vadd.f32 %v3961_v26, %v3782_v21  ;;  %v4292_v30 = vsel %vm4289_vm12, -inf, %v4286_v16 }
 0xfc1   : > { %v4295_v43 = vsel %vm1018_vm4, %v4292_v30, -inf }
 0xfc2   : > { %v3966_v59 = vsub.f32 1.0, %v3963_v28  ;;  %v3967_v14 = vsub.f32 1.0, %v3964_v29  ;;  %4296 = vmax.xlane.f32.xlu0 %v4295_v43 }
 0xfc4   : > { %v8283_v23 = vsel %vm1013_vm5, 1.0, %v3966_v59  ;;  %v8287_v34 = vsel %vm1014_vm6, 1.0, %v3967_v14 }
 0xfc5   : > { %vm4290_vm3 = vcmp.ne.f32.partialorder %v8283_v23, 0.0  ;;  %vm4291_vm0 = vcmp.ne.f32.partialorder %v8287_v34, 0.0 }
 0xfc6   : > { %v4293_v12 = vsel %vm4290_vm3, -inf, %v4287_v18  ;;  %v4294_v17 = vsel %vm4291_vm0, -inf, %v4288_v32 }
 0xfc7   : > { %v4298_v19 = vsel %vm1018_vm4, %v4293_v12, -inf  ;;  %v4301_v22 = vsel %vm1018_vm4, %v4294_v17, -inf }
 0xfc8   : > { %4299 = vmax.xlane.f32.xlu1 %v4298_v19  ;;  %4302 = vmax.xlane.f32.xlu0 %v4301_v22 }
 0xfd9   : > { %4343 = vrot.lane.b32.xlu1 %v8177_v36, %s8744_s28 }
 0xfdd   : > { %4497 = vrot.lane.b32.xlu1 %v8175_v20, %s8744_s28 }
 0xfe1   : > { %4576 = vrot.lane.b32.xlu1 %v8177_v36, %s8745_s25 }
0x104f   : > { %v4297_v24 = vpop.xlane.xlu0 %4296 }
0x1050   : > { %vm4304_vm5 = vcmp.eq.f32.partialorder %v4297_v24, -inf }
0x1051   : > { %v4307_v31 = vsel %vm4304_vm5, 0.0, %v4297_v24  ;;  %vm8748_vm5 = vmmov 0  }
0x1052   : > { %v4310_v33 = vsub.f32 %v4292_v30, %v4307_v31 }
0x1054   : > { %v4313_v47 = vmul.f32 1.442695, %v4310_v33 }
0x1055   : > { %v4300_v35 = vpop.xlane.xlu1 %4299  ;;  %v4303_v37 = vpop.xlane.xlu0 %4302 }
0x1056   : > { %vm4305_vm6 = vcmp.eq.f32.partialorder %v4300_v35, -inf  ;;  %vm4306_vm7 = vcmp.eq.f32.partialorder %v4303_v37, -inf }
0x1057   : > { %v4308_v38 = vsel %vm4305_vm6, 0.0, %v4300_v35  ;;  %v4309_v39 = vsel %vm4306_vm7, 0.0, %v4303_v37  ;;  %vm8749_vm6 = vmmov %vm8747_vm15 }
0x1058   : > { %v4311_v40 = vsub.f32 %v4293_v12, %v4308_v38  ;;  %v4312_v42 = vsub.f32 %v4294_v17, %v4309_v39  ;;  %vm8750_vm7 = vmmov %vm8749_vm6 }
0x1059   : > { %v4344_v44 = vpop.permute.xlu1 %4343 }
0x105a   : > { %v4315_v45 = vmul.f32 1.442695, %v4311_v40  ;;  %v4317_v46 = vmul.f32 1.442695, %v4312_v42  ;;  %7054 = vmatpush3.msk.msra.mxu1 %vm1073_vm8, %v4344_v44 }
0x105b   : > { %7063 = vmatprep.subr.mxu1 %v7534_v11 }
0x105c   : > { %7412 = vpow2.f32 %v4315_v45 }
0x105d   : > { %7414 = vpow2.f32 %v4317_v46  ;;  %v4498_v56 = vpop.permute.xlu1 %4497 }
0x105e   : > { %7416 = vpow2.f32 %v4313_v47 }
0x1061   : > { %v4577_v58 = vpop.permute.xlu1 %4576 }
0x1066   : > { %v7413_v48 = vpop.eup %7412 }
0x1067   : > { %v7415_v49 = vpop.eup %7414  ;;  %v4322_v50 = vsel %vm1018_vm4, %v7413_v48, 0.0 }
0x1068   : > { %4323 = vadd.xlane.f32.xlu1 %v4322_v50  ;;  %v4325_v51 = vsel %vm1018_vm4, %v7415_v49, 0.0  ;;  %v7417_v52 = vpop.eup %7416 }
0x1069   : > { %4326 = vadd.xlane.f32.xlu0 %v4325_v51  ;;  %v4319_v55 = vsel %vm1018_vm4, %v7417_v52, 0.0 }
0x106d   : > { %4320 = vadd.xlane.f32.xlu0 %v4319_v55 }
0x1079   : > { %4574 = vrot.lane.b32.xlu1 %v8177_v36, %s8746_s30 }
0x107d   : > { %4732 = vrot.lane.b32.xlu1 %v8175_v20, %s8745_s25 }
0x1083   : > { %4420 = vrot.lane.b32.xlu0 %v8181_v41, %s8744_s28 }
0x1087   : > { %4654 = vrot.lane.b32.xlu0 %v8181_v41, %s8745_s25 }
0x108b   : > { %4652 = vrot.lane.b32.xlu0 %v8181_v41, %s8746_s30 }
0x108f   : > { %4730 = vrot.lane.b32.xlu0 %v8175_v20, %s8746_s30  ;;  %s6676_s30 = smul.u32 192, %s7682_s13 }
0x10f5   : > { %v4324_v60 = vpop.xlane.xlu1 %4323 }
0x10f6   : > { %vm4329_vm1 = vcmp.eq.f32.partialorder %v4324_v60, 0.0  ;;  %v4327_v62 = vpop.xlane.xlu0 %4326 }
0x10f7   : > { %v4332_v63 = vsel %vm4329_vm1, 1.0, %v7534_v11  ;;  %vm4330_vm2 = vcmp.eq.f32.partialorder %v4327_v62, 0.0  ;;  %vm8751_vm1 = vmmov %vm8749_vm6 }
0x10f8   : > { %v4335_v0 = vadd.f32 %v4332_v63, %v4324_v60  ;;  %v4333_v2 = vsel %vm4330_vm2, 1.0, %v7534_v11  ;;  %vm8752_vm2 = vmmov %vm8751_vm1 }
0x10f9   : > { %v4336_v5 = vadd.f32 %v4333_v2, %v4327_v62  ;;  %v4575_v9 = vpop.permute.xlu1 %4574 }
0x10fa   : > { %7418 = vrcp.f32 %v4335_v0  ;;  %v4321_v61 = vpop.xlane.xlu0 %4320 }
0x10fb   : > { %vm4328_vm14 = vcmp.eq.f32.partialorder %v4321_v61, 0.0 }
0x10fc   : > { %v4331_v3 = vsel %vm4328_vm14, 1.0, %v7534_v11  ;;  %vm8753_vm14 = vmmov %vm8751_vm1 }
0x10fd   : > { %v4334_v6 = vadd.f32 %v4331_v3, %v4321_v61  ;;  %v4733_v21 = vpop.permute.xlu1 %4732 }
0x10fe   : > { %v4421_v7 = vpop.permute.xlu0 %4420 }
0x10ff   : > { %7420 = vrcp.f32 %v4334_v6  ;;  %7059 = vmatpush3.msk.msra.mxu0 %vm1073_vm8, %v4421_v7 }
0x1100   : > { %7068 = vmatprep.subr.mxu0 %v7534_v11  ;;  %7422 = vrcp.f32 %v4336_v5 }
0x1102   : > { %v4655_v8 = vpop.permute.xlu0 %4654 }
0x1104   : > { %v7419_v4 = vpop.eup %7418 }
0x1105   : > { %v4340_v1 = vmul.f32 %v7419_v4, %v7413_v48 }
0x1106   : > { %v4653_v10 = vpop.permute.xlu0 %4652 }
0x1107   : > { %7061 = vmatmul.mubr.msk.f32.vlgmr.msra.gmra.mrb[36].mxu0 %vm1069_vm13, %v4340_v1 }
0x1108   : > { %7069 = vmatpush3.xpose.msk.msra.mxu0 %vm8747_vm15, %v4577_v58  ;;  %7070 = vmatprep.mubr.msk.f32.mxu0 %vm8748_vm5, %v7534_v11 }
0x1109   : > { %v7421_v15 = vpop.eup %7420  ;;  %7078 = vmatprep.subr.mxu0 %v7534_v11 }
0x110a   : > { %v4338_v16 = vmul.f32 %v7421_v15, %v7417_v52  ;;  %v7423_v13 = vpop.eup %7422  ;;  %v4731_v26 = vpop.permute.xlu0 %4730 }
0x110b   : > { %7071 = vmatmul.mubr.msk.f32.vlgmr.msra.gmra.mrb[38].mxu0 %vm8749_vm6, %v4575_v9  ;;  %v4342_v27 = vmul.f32 %v7423_v13, %v7415_v49 }
0x110c   : > { %7056 = vmatmul.mubr.msk.f32.vlgmr.msra.gmra.mrb[36].mxu1 %vm1069_vm13, %v4338_v16  ;;  %7079 = vmatpush3.xpose.msk.msra.mxu0 %vm8750_vm7, %v4733_v21 }
0x110d   : > { %7064 = vmatpush3.msk.msra.mxu1 %vm1073_vm8, %v4498_v56  ;;  %7065 = vmatprep.mubr.msk.f32.mxu1 %vm8748_vm5, %v7534_v11 }
0x110e   : > { %7080 = vmatprep.mubr.msk.f32.mxu0 %vm8748_vm5, %v7534_v11  ;;  %7073 = vmatprep.subr.mxu1 %v7534_v11 }
0x110f   : > { %7081 = vmatmul.mubr.msk.f32.vlgmr.msra.gmra.mrb[40].mxu0 %vm8751_vm1, %v4731_v26  ;;  %7088 = vmatprep.subr.mxu0 %v7534_v11 }
0x1110   : > { %7066 = vmatmul.mubr.msk.f32.vlgmr.msra.gmra.mrb[38].mxu1 %vm1069_vm13, %v4342_v27  ;;  %7090 = vmatprep.mubr.msk.f32.mxu0 %vm8748_vm5, %v7534_v11 }
0x1111   : > { %7075 = vmatprep.mubr.msk.f32.mxu1 %vm8748_vm5, %v7534_v11 }
0x1114   : > { %7074 = vmatpush3.xpose.msk.msra.mxu1 %vm8752_vm2, %v4655_v8 }
0x1115   : > { %7083 = vmatprep.subr.mxu1 %v7534_v11 }
0x1117   : > { %7076 = vmatmul.mubr.msk.f32.vlgmr.msra.gmra.mrb[40].mxu1 %vm8753_vm14, %v4653_v10 }
0x1118   : > { %7085 = vmatprep.mubr.msk.f32.mxu1 %vm8748_vm5, %v7534_v11 }
0x11da   : > { %v8351_v28 = vpop.f32.mrb[36].mxu0 }
0x11db   : > { %v7062_v29 = vpop.f32.mrb[37].mxu0 }
0x11de   : > { %v4648_v30 = vpop.f32.mrb[38].mxu0 }
0x11df   : > { %v8353_v43 = vpop.f32.mrb[36].mxu1  ;;  %v4808_v59 = vmul.f32 0.35355338, %v4648_v30  ;;  %v7072_v14 = vpop.f32.mrb[39].mxu0 }
0x11e0   : > { %v7057_v18 = vpop.f32.mrb[37].mxu1 }
0x11e1   : > { %v4811_v32 = vsel %vm4289_vm12, -inf, %v4808_v59 }
0x11e2   : > { %v4804_v12 = vpop.f32.mrb[40].mxu0  ;;  %v4814_v17 = vsel %vm1018_vm4, %v4811_v32, -inf }
0x11e3   : > { %v8358_v19 = vpop.f32.mrb[38].mxu1  ;;  %4815 = vmax.xlane.f32.xlu1 %v4814_v17  ;;  %v7082_v22 = vpop.f32.mrb[41].mxu0  ;;  %v4810_v35 = vmul.f32 0.35355338, %v4804_v12 }
0x11e4   : > { %v7067_v24 = vpop.f32.mrb[39].mxu1 }
0x11e5   : > { %v4813_v40 = vsel %vm4291_vm0, -inf, %v4810_v35 }
0x11e6   : > { %v4820_v42 = vsel %vm1018_vm4, %v4813_v40, -inf }
0x11ea   : > { %v4726_v31 = vpop.f32.mrb[40].mxu1 }
0x11eb   : > { %v4809_v37 = vmul.f32 0.35355338, %v4726_v31  ;;  %v7077_v33 = vpop.f32.mrb[41].mxu1 }
0x11ed   : > { %v4812_v38 = vsel %vm4290_vm3, -inf, %v4809_v37 }
0x11ee   : > { %v4817_v39 = vsel %vm1018_vm4, %v4812_v38, -inf }
0x11ef   : > { %4818 = vmax.xlane.f32.xlu0 %v4817_v39 }
0x11f3   : > { %4821 = vmax.xlane.f32.xlu0 %v4820_v42 }
0x1270   : > { %v4816_v44 = vpop.xlane.xlu1 %4815 }
0x1271   : > { %vm4823_vm15 = vcmp.eq.f32.partialorder %v4816_v44, -inf }
0x1272   : > { %v4826_v45 = vsel %vm4823_vm15, 0.0, %v4816_v44  ;;  %vm8757_vm15 = vmmov %vm8753_vm14 }
0x1273   : > { %v4829_v46 = vsub.f32 %v4811_v32, %v4826_v45 }
0x1275   : > { %v4832_v47 = vmul.f32 1.442695, %v4829_v46 }
0x1277   : > { %7424 = vpow2.f32 %v4832_v47 }
0x127c   : > { %v4819_v48 = vpop.xlane.xlu0 %4818 }
0x127d   : > { %vm4824_vm6 = vcmp.eq.f32.partialorder %v4819_v48, -inf }
0x127e   : > { %v4827_v49 = vsel %vm4824_vm6, 0.0, %v4819_v48  ;;  %vm8758_vm6 = vmmov %vm8753_vm14 }
0x127f   : > { %v4830_v50 = vsub.f32 %v4812_v38, %v4827_v49 }
0x1280   : > { %v4822_v60 = vpop.xlane.xlu0 %4821 }
0x1281   : > { %v7425_v51 = vpop.eup %7424  ;;  %v4834_v52 = vmul.f32 1.442695, %v4830_v50  ;;  %vm4825_vm7 = vcmp.eq.f32.partialorder %v4822_v60, -inf }
0x1282   : > { %v4838_v55 = vsel %vm1018_vm4, %v7425_v51, 0.0  ;;  %v4828_v62 = vsel %vm4825_vm7, 0.0, %v4822_v60 }
0x1283   : > { %7426 = vpow2.f32 %v4834_v52  ;;  %4839 = vadd.xlane.f32.xlu1 %v4838_v55  ;;  %v4831_v63 = vsub.f32 %v4813_v40, %v4828_v62 }
0x1285   : > { %v4836_v0 = vmul.f32 1.442695, %v4831_v63 }
0x1287   : > { %7428 = vpow2.f32 %v4836_v0 }
0x128d   : > { %v7427_v56 = vpop.eup %7426 }
0x128e   : > { %v4841_v58 = vsel %vm1018_vm4, %v7427_v56, 0.0 }
0x128f   : > { %4842 = vadd.xlane.f32.xlu0 %v4841_v58 }
0x1291   : > { %v7429_v2 = vpop.eup %7428 }
0x1292   : > { %v4844_v61 = vsel %vm1018_vm4, %v7429_v2, 0.0 }
0x1294   : > { %4862 = vrot.lane.b32.xlu1 %v8177_v36, %s8754_s5 }
0x1298   : > { %5016 = vrot.lane.b32.xlu1 %v8175_v20, %s8754_s5 }
0x129c   : > { %5093 = vrot.lane.b32.xlu1 %v8177_v36, %s8755_s27 }
0x12a0   : > { %5251 = vrot.lane.b32.xlu1 %v8175_v20, %s8756_s3 }
0x12a5   : > { %4939 = vrot.lane.b32.xlu0 %v8181_v41, %s8754_s5 }
0x12a9   : > { %5095 = vrot.lane.b32.xlu0 %v8177_v36, %s8756_s3 }
0x12ad   : > { %5173 = vrot.lane.b32.xlu0 %v8181_v41, %s8756_s3 }
0x12b1   : > { %5171 = vrot.lane.b32.xlu0 %v8181_v41, %s8755_s27 }
0x12c4   : > { %4845 = vadd.xlane.f32.xlu1 %v4844_v61 }
0x12d5   : > { %5249 = vrot.lane.b32.xlu1 %v8175_v20, %s8755_s27  ;;  %s8613_s27 = scalar_lea.hbm %s8679_s19, %s6676_s30 }
0x1310   : > { %v4840_v3 = vpop.xlane.xlu1 %4839 }
0x1311   : > { %vm4847_vm1 = vcmp.eq.f32.partialorder %v4840_v3, 0.0 }
0x1312   : > { %v4850_v5 = vsel %vm4847_vm1, 1.0, %v7534_v11  ;;  %vm8759_vm1 = vmmov %vm8758_vm6 }
0x1313   : > { %v4853_v6 = vadd.f32 %v4850_v5, %v4840_v3 }
0x1314   : > { %v4863_v7 = vpop.permute.xlu1 %4862 }
0x1315   : > { %7430 = vrcp.f32 %v4853_v6  ;;  %7084 = vmatpush3.msk.msra.mxu1 %vm1073_vm8, %v4863_v7 }
0x1316   : > { %7093 = vmatprep.subr.mxu1 %v7534_v11 }
0x1318   : > { %v5017_v16 = vpop.permute.xlu1 %5016 }
0x131c   : > { %v4843_v8 = vpop.xlane.xlu0 %4842  ;;  %v5094_v21 = vpop.permute.xlu1 %5093 }
0x131d   : > { %vm4848_vm2 = vcmp.eq.f32.partialorder %v4843_v8, 0.0 }
0x131e   : > { %v4851_v4 = vsel %vm4848_vm2, 1.0, %v7534_v11  ;;  %vm8760_vm2 = vmmov %vm8759_vm1 }
0x131f   : > { %v7431_v9 = vpop.eup %7430  ;;  %v4854_v1 = vadd.f32 %v4851_v4, %v4843_v8 }
0x1320   : > { %v4940_v10 = vpop.permute.xlu0 %4939  ;;  %v4857_v15 = vmul.f32 %v7431_v9, %v7425_v51  ;;  %v5252_v29 = vpop.permute.xlu1 %5251 }
0x1321   : > { %7432 = vrcp.f32 %v4854_v1  ;;  %7089 = vmatpush3.msk.msra.mxu0 %vm1073_vm8, %v4940_v10 }
0x1322   : > { %7086 = vmatmul.mubr.msk.f32.vlgmr.msra.gmra.mrb[42].mxu1 %vm1069_vm13, %v4857_v15  ;;  %7098 = vmatprep.subr.mxu0 %v7534_v11 }
0x1323   : > { %7094 = vmatpush3.msk.msra.mxu1 %vm1073_vm8, %v5017_v16  ;;  %7095 = vmatprep.mubr.msk.f32.mxu1 %vm8748_vm5, %v7534_v11 }
0x1324   : > { %7103 = vmatprep.subr.mxu1 %v7534_v11  ;;  %v5096_v27 = vpop.permute.xlu0 %5095 }
0x1328   : > { %v5174_v12 = vpop.permute.xlu0 %5173 }
0x132b   : > { %v7433_v13 = vpop.eup %7432 }
0x132c   : > { %v4859_v26 = vmul.f32 %v7433_v13, %v7427_v56  ;;  %v5172_v22 = vpop.permute.xlu0 %5171 }
0x132e   : > { %7091 = vmatmul.mubr.msk.f32.vlgmr.msra.gmra.mrb[42].mxu0 %vm1069_vm13, %v4859_v26 }
0x132f   : > { %7099 = vmatpush3.xpose.msk.msra.mxu0 %vm8753_vm14, %v5096_v27  ;;  %7100 = vmatprep.mubr.msk.f32.mxu0 %vm8748_vm5, %v7534_v11  ;;  %vm8761_vm14 = vmmov %vm8759_vm1 }
0x1330   : > { %7108 = vmatprep.subr.mxu0 %v7534_v11 }
0x1332   : > { %7101 = vmatmul.mubr.msk.f32.vlgmr.msra.gmra.mrb[44].mxu0 %vm8757_vm15, %v5094_v21 }
0x1333   : > { %7109 = vmatpush3.xpose.msk.msra.mxu0 %vm8758_vm6, %v5252_v29  ;;  %7110 = vmatprep.mubr.msk.f32.mxu0 %vm8748_vm5, %v7534_v11 }
0x1334   : > { %7118 = vmatprep.subr.mxu0 %v7534_v11 }
0x1351   : > { %v4846_v30 = vpop.xlane.xlu1 %4845 }
0x1352   : > { %vm4849_vm7 = vcmp.eq.f32.partialorder %v4846_v30, 0.0 }
0x1353   : > { %v4852_v59 = vsel %vm4849_vm7, 1.0, %v7534_v11 }
0x1354   : > { %v4855_v14 = vadd.f32 %v4852_v59, %v4846_v30 }
0x1355   : > { %v5250_v18 = vpop.permute.xlu1 %5249 }
0x1356   : > { %7434 = vrcp.f32 %v4855_v14  ;;  %7111 = vmatmul.mubr.msk.f32.vlgmr.msra.gmra.mrb[46].mxu0 %vm8759_vm1, %v5250_v18 }
0x1357   : > { %7120 = vmatprep.mubr.msk.f32.mxu0 %vm8748_vm5, %v7534_v11 }
0x1360   : > { %v7435_v32 = vpop.eup %7434 }
0x1361   : > { %v4861_v17 = vmul.f32 %v7435_v32, %v7429_v2 }
0x1363   : > { %7096 = vmatmul.mubr.msk.f32.vlgmr.msra.gmra.mrb[44].mxu1 %vm1069_vm13, %v4861_v17 }
0x1364   : > { %7104 = vmatpush3.xpose.msk.msra.mxu1 %vm8760_vm2, %v5174_v12  ;;  %7105 = vmatprep.mubr.msk.f32.mxu1 %vm8748_vm5, %v7534_v11 }
0x1365   : > { %7113 = vmatprep.subr.mxu1 %v7534_v11 }
0x1367   : > { %7106 = vmatmul.mubr.msk.f32.vlgmr.msra.gmra.mrb[46].mxu1 %vm8761_vm14, %v5172_v22 }
0x1368   : > { %7115 = vmatprep.mubr.msk.f32.mxu1 %vm8748_vm5, %v7534_v11 }
0x13f5   : > { %v8420_v24 = vpop.f32.mrb[42].mxu1 }
0x13f6   : > { %v7087_v31 = vpop.f32.mrb[43].mxu1 }
0x1401   : > { %v8422_v35 = vpop.f32.mrb[42].mxu0 }
0x1402   : > { %v7092_v37 = vpop.f32.mrb[43].mxu0 }
0x1405   : > { %v5167_v33 = vpop.f32.mrb[44].mxu0 }
0x1406   : > { %v5327_v38 = vmul.f32 0.35355338, %v5167_v33  ;;  %v7102_v39 = vpop.f32.mrb[45].mxu0 }
0x1408   : > { %v5330_v40 = vsel %vm4289_vm12, -inf, %v5327_v38 }
0x1409   : > { %v5333_v42 = vsel %vm1018_vm4, %v5330_v40, -inf }
0x140a   : > { %5334 = vmax.xlane.f32.xlu0 %v5333_v42 }
0x1429   : > { %v5323_v44 = vpop.f32.mrb[46].mxu0 }
0x142a   : > { %v5329_v45 = vmul.f32 0.35355338, %v5323_v44  ;;  %v7112_v46 = vpop.f32.mrb[47].mxu0 }
0x142c   : > { %v5332_v47 = vsel %vm4291_vm0, -inf, %v5329_v45 }
0x142d   : > { %v5339_v48 = vsel %vm1018_vm4, %v5332_v47, -inf }
0x142e   : > { %5340 = vmax.xlane.f32.xlu0 %v5339_v48 }
0x1436   : > { %v8430_v49 = vpop.f32.mrb[44].mxu1 }
0x1437   : > { %v7097_v50 = vpop.f32.mrb[45].mxu1 }
0x143a   : > { %v5245_v51 = vpop.f32.mrb[46].mxu1 }
0x143b   : > { %v5328_v52 = vmul.f32 0.35355338, %v5245_v51  ;;  %v7107_v55 = vpop.f32.mrb[47].mxu1 }
0x143d   : > { %v5331_v56 = vsel %vm4290_vm3, -inf, %v5328_v52 }
0x143e   : > { %v5336_v58 = vsel %vm1018_vm4, %v5331_v56, -inf }
0x143f   : > { %5337 = vmax.xlane.f32.xlu1 %v5336_v58 }
0x1450   : > { %5381 = vrot.lane.b32.xlu1 %v8177_v36, %s8762_s29 }
0x1454   : > { %5535 = vrot.lane.b32.xlu1 %v8175_v20, %s8762_s29 }
0x1458   : > { %5614 = vrot.lane.b32.xlu1 %v8177_v36, %s8763_s23 }
0x1497   : > { %v5335_v60 = vpop.xlane.xlu0 %5334 }
0x1498   : > { %vm5342_vm15 = vcmp.eq.f32.partialorder %v5335_v60, -inf }
0x1499   : > { %v5345_v62 = vsel %vm5342_vm15, 0.0, %v5335_v60  ;;  %vm8765_vm15 = vcmask 64512  }
0x149a   : > { %v5348_v63 = vsub.f32 %v5330_v40, %v5345_v62 }
0x149c   : > { %v5351_v0 = vmul.f32 1.442695, %v5348_v63 }
0x149e   : > { %7436 = vpow2.f32 %v5351_v0 }
0x14a8   : > { %v7437_v2 = vpop.eup %7436 }
0x14a9   : > { %v5357_v61 = vsel %vm1018_vm4, %v7437_v2, 0.0 }
0x14aa   : > { %5358 = vadd.xlane.f32.xlu0 %v5357_v61 }
0x14bb   : > { %v5341_v3 = vpop.xlane.xlu0 %5340 }
0x14bc   : > { %vm5344_vm6 = vcmp.eq.f32.partialorder %v5341_v3, -inf }
0x14bd   : > { %v5347_v5 = vsel %vm5344_vm6, 0.0, %v5341_v3  ;;  %vm8766_vm6 = vmmov %vm8765_vm15 }
0x14be   : > { %v5350_v6 = vsub.f32 %v5332_v47, %v5347_v5 }
0x14c0   : > { %5458 = vrot.lane.b32.xlu0 %v8181_v41, %s8762_s29  ;;  %v5355_v8 = vmul.f32 1.442695, %v5350_v6  ;;  %s7555_s29 = smov 32  }
0x14c2   : > { %7438 = vpow2.f32 %v5355_v8 }
0x14cc   : > { %v5338_v7 = vpop.xlane.xlu1 %5337  ;;  %v7439_v15 = vpop.eup %7438 }
0x14cd   : > { %vm5343_vm7 = vcmp.eq.f32.partialorder %v5338_v7, -inf  ;;  %v5363_v13 = vsel %vm1018_vm4, %v7439_v15, 0.0 }
0x14ce   : > { %v5346_v4 = vsel %vm5343_vm7, 0.0, %v5338_v7  ;;  %vm8767_vm7 = vmmov %vm8766_vm6 }
0x14cf   : > { %v5349_v9 = vsub.f32 %v5331_v56, %v5346_v4 }
0x14d0   : > { %v5382_v1 = vpop.permute.xlu1 %5381 }
0x14d1   : > { %v5353_v10 = vmul.f32 1.442695, %v5349_v9  ;;  %7114 = vmatpush3.msk.msra.mxu1 %vm1073_vm8, %v5382_v1 }
0x14d2   : > { %7123 = vmatprep.subr.mxu1 %v7534_v11 }
0x14d3   : > { %7440 = vpow2.f32 %v5353_v10 }
0x14d4   : > { %v5536_v18 = vpop.permute.xlu1 %5535 }
0x14d8   : > { %v5615_v32 = vpop.permute.xlu1 %5614 }
0x14dd   : > { %v7441_v16 = vpop.eup %7440 }
0x14de   : > { %v5360_v21 = vsel %vm1018_vm4, %v7441_v16, 0.0 }
0x14df   : > { %5364 = vadd.xlane.f32.xlu0 %v5363_v13  ;;  %5361 = vadd.xlane.f32.xlu1 %v5360_v21 }
0x14f0   : > { %5612 = vrot.lane.b32.xlu1 %v8177_v36, %s8764_s1 }
0x14f4   : > { %5770 = vrot.lane.b32.xlu1 %v8175_v20, %s8763_s23 }
0x14f5   : > { %5692 = vrot.lane.b32.xlu0 %v8181_v41, %s8763_s23  ;;  %s644_s23 = sand.u32 1, %s7524_s21  }
0x14f6   : > { %s8617_s13 = scalar_lea.sflag [#allocation4], %s644_s23 }
0x14f9   : > { %5690 = vrot.lane.b32.xlu0 %v8181_v41, %s8764_s1 }
0x14fd   : > { %5768 = vrot.lane.b32.xlu0 %v8175_v20, %s8764_s1  ;;  %s7268_s1 = smul.u32 12, %s644_s23 }
0x1537   : > { %v5359_v26 = vpop.xlane.xlu0 %5358 }
0x1538   : > { %vm5366_vm1 = vcmp.eq.f32.partialorder %v5359_v26, 0.0 }
0x1539   : > { %v5369_v27 = vsel %vm5366_vm1, 1.0, %v7534_v11  ;;  %vm8768_vm1 = vmmov %vm8766_vm6 }
0x153a   : > { %v5372_v29 = vadd.f32 %v5369_v27, %v5359_v26 }
0x153b   : > { %v5459_v30 = vpop.permute.xlu0 %5458 }
0x153c   : > { %7442 = vrcp.f32 %v5372_v29  ;;  %7119 = vmatpush3.msk.msra.mxu0 %vm1073_vm8, %v5459_v30 }
0x153d   : > { %7128 = vmatprep.subr.mxu0 %v7534_v11 }
0x1546   : > { %v7443_v59 = vpop.eup %7442 }
0x1547   : > { %v5376_v14 = vmul.f32 %v7443_v59, %v7437_v2 }
0x1549   : > { %7116 = vmatmul.mubr.msk.f32.vlgmr.msra.gmra.mrb[48].mxu1 %vm1069_vm13, %v5376_v14 }
0x154a   : > { %7124 = vmatpush3.msk.msra.mxu1 %vm1073_vm8, %v5536_v18  ;;  %7125 = vmatprep.mubr.msk.f32.mxu1 %vm8748_vm5, %v7534_v11 }
0x154b   : > { %7133 = vmatprep.subr.mxu1 %v7534_v11 }
0x156c   : > { %v5365_v12 = vpop.xlane.xlu0 %5364  ;;  %v5362_v17 = vpop.xlane.xlu1 %5361 }
0x156d   : > { %vm5368_vm2 = vcmp.eq.f32.partialorder %v5365_v12, 0.0  ;;  %vm5367_vm14 = vcmp.eq.f32.partialorder %v5362_v17, 0.0 }
0x156e   : > { %v5371_v22 = vsel %vm5368_vm2, 1.0, %v7534_v11  ;;  %v5370_v31 = vsel %vm5367_vm14, 1.0, %v7534_v11  ;;  %vm8769_vm2 = vmmov %vm8768_vm1 }
0x156f   : > { %v5374_v37 = vadd.f32 %v5371_v22, %v5365_v12  ;;  %v5373_v33 = vadd.f32 %v5370_v31, %v5362_v17  ;;  %vm8770_vm14 = vmmov %vm8768_vm1 }
0x1570   : > { %v5693_v38 = vpop.permute.xlu0 %5692  ;;  %v5613_v44 = vpop.permute.xlu1 %5612 }
0x1571   : > { %7444 = vrcp.f32 %v5374_v37 }
0x1572   : > { %7446 = vrcp.f32 %v5373_v33 }
0x1574   : > { %v5691_v46 = vpop.permute.xlu0 %5690  ;;  %v5771_v47 = vpop.permute.xlu1 %5770 }
0x1578   : > { %v5769_v48 = vpop.permute.xlu0 %5768 }
0x157b   : > { %v7445_v39 = vpop.eup %7444 }
0x157c   : > { %v7447_v40 = vpop.eup %7446  ;;  %v5380_v42 = vmul.f32 %v7445_v39, %v7439_v15 }
0x157d   : > { %v5378_v45 = vmul.f32 %v7447_v40, %v7441_v16 }
0x157e   : > { %7126 = vmatmul.mubr.msk.f32.vlgmr.msra.gmra.mrb[50].mxu1 %vm1069_vm13, %v5380_v42 }
0x157f   : > { %7134 = vmatpush3.xpose.msk.msra.mxu1 %vm8765_vm15, %v5693_v38  ;;  %7121 = vmatmul.mubr.msk.f32.vlgmr.msra.gmra.mrb[48].mxu0 %vm1069_vm13, %v5378_v45 }
0x1580   : > { %7129 = vmatpush3.xpose.msk.msra.mxu0 %vm8766_vm6, %v5615_v32  ;;  %7135 = vmatprep.mubr.msk.f32.mxu1 %vm8748_vm5, %v7534_v11 }
0x1581   : > { %7130 = vmatprep.mubr.msk.f32.mxu0 %vm8748_vm5, %v7534_v11  ;;  %7138 = vmatprep.subr.mxu0 %v7534_v11 }
0x1582   : > { %7136 = vmatmul.mubr.msk.f32.vlgmr.msra.gmra.mrb[52].mxu1 %vm8767_vm7, %v5691_v46  ;;  %7143 = vmatprep.subr.mxu1 %v7534_v11 }
0x1583   : > { %7131 = vmatmul.mubr.msk.f32.vlgmr.msra.gmra.mrb[50].mxu0 %vm8768_vm1, %v5613_v44  ;;  %7145 = vmatprep.mubr.msk.f32.mxu1 %vm8748_vm5, %v7534_v11 }
0x1584   : > { %7139 = vmatpush3.xpose.msk.msra.mxu0 %vm8769_vm2, %v5771_v47  ;;  %7140 = vmatprep.mubr.msk.f32.mxu0 %vm8748_vm5, %v7534_v11 }
0x1585   : > { %7148 = vmatprep.subr.mxu0 %v7534_v11 }
0x1587   : > { %7141 = vmatmul.mubr.msk.f32.vlgmr.msra.gmra.mrb[52].mxu0 %vm8770_vm14, %v5769_v48  ;;  %vm8780_vm14 = vcmask 261120  }
0x1588   : > { %7150 = vmatprep.mubr.msk.f32.mxu0 %vm8748_vm5, %v7534_v11 }
0x161c   : > { %v5454_v50 = vpop.f32.mrb[48].mxu1 }
0x161d   : > { %v7117_v51 = vpop.f32.mrb[49].mxu1 }
0x161e   : > { %v3976_v51 = vld [vmem:[%s8675_s15 + $0x8] sm:$0xff] }
0x1651   : > { %v8489_v52 = vpop.f32.mrb[50].mxu1 }
0x1652   : > { %v7127_v55 = vpop.f32.mrb[51].mxu1  ;;  %v5531_v56 = vpop.f32.mrb[48].mxu0 }
0x1653   : > { %v7122_v58 = vpop.f32.mrb[49].mxu0 }
0x1655   : > { %v5764_v60 = vpop.f32.mrb[52].mxu1 }
0x1656   : > { %v5847_v62 = vmul.f32 0.35355338, %v5764_v60  ;;  %v7137_v63 = vpop.f32.mrb[53].mxu1  ;;  %v5686_v0 = vpop.f32.mrb[50].mxu0 }
0x1657   : > { %v5846_v2 = vmul.f32 0.35355338, %v5686_v0  ;;  %v7132_v61 = vpop.f32.mrb[51].mxu0 }
0x1658   : > { %v5850_v3 = vsel %vm4290_vm3, -inf, %v5847_v62 }
0x1659   : > { %v5849_v5 = vsel %vm4289_vm12, -inf, %v5846_v2  ;;  %v5855_v6 = vsel %vm1018_vm4, %v5850_v3, -inf }
0x165a   : > { %5856 = vmax.xlane.f32.xlu0 %v5855_v6  ;;  %v5842_v7 = vpop.f32.mrb[52].mxu0  ;;  %v5852_v8 = vsel %vm1018_vm4, %v5849_v5, -inf }
0x165b   : > { %v5848_v4 = vmul.f32 0.35355338, %v5842_v7  ;;  %5853 = vmax.xlane.f32.xlu1 %v5852_v8  ;;  %v7142_v9 = vpop.f32.mrb[53].mxu0 }
0x165d   : > { %v5851_v1 = vsel %vm4291_vm0, -inf, %v5848_v4 }
0x165e   : > { %v5858_v10 = vsel %vm1018_vm4, %v5851_v1, -inf }
0x165f   : > { %5859 = vmax.xlane.f32.xlu0 %v5858_v10 }
0x16e7   : > { %v5857_v23 = vpop.xlane.xlu0 %5856 }
0x16e8   : > { %vm5862_vm3 = vcmp.eq.f32.partialorder %v5857_v23, -inf  ;;  %v5854_v15 = vpop.xlane.xlu1 %5853 }
0x16e9   : > { %v5865_v25 = vsel %vm5862_vm3, 0.0, %v5857_v23  ;;  %vm5861_vm12 = vcmp.eq.f32.partialorder %v5854_v15, -inf }
0x16ea   : > { %v5868_v16 = vsub.f32 %v5850_v3, %v5865_v25  ;;  %v5864_v13 = vsel %vm5861_vm12, 0.0, %v5854_v15 }
0x16eb   : > { %v5867_v21 = vsub.f32 %v5849_v5, %v5864_v13 }
0x16ec   : > { %v5872_v26 = vmul.f32 1.442695, %v5868_v16  ;;  %v5860_v14 = vpop.xlane.xlu0 %5859 }
0x16ed   : > { %v5870_v27 = vmul.f32 1.442695, %v5867_v21  ;;  %vm5863_vm0 = vcmp.eq.f32.partialorder %v5860_v14, -inf }
0x16ee   : > { %7448 = vpow2.f32 %v5872_v26  ;;  %v5866_v18 = vsel %vm5863_vm0, 0.0, %v5860_v14  ;;  %v6308_v14 = vld [vmem:[%s8677_s17 + $0x20] sm:$0xff] }
0x16ef   : > { %7450 = vpow2.f32 %v5870_v27  ;;  %v5869_v32 = vsub.f32 %v5851_v1, %v5866_v18  ;;  %v6304_v27 = vld [vmem:[%s8677_s17] sm:$0xff]  ;;  %v6309_v18 = vld [vmem:[%s8677_s17 + $0x28] sm:$0xff] }
0x16f1   : > { %v5874_v12 = vmul.f32 1.442695, %v5869_v32  ;;  %v7260_v32 = vpack.c.bf16 %v6309_v18, %v6308_v14 }
0x16f3   : > { %7452 = vpow2.f32 %v5874_v12  ;;  %v6664_v12 = vld [vmem:[%s8676_s16] ss:$0 sm:$0xff] }
0x16f8   : > { %v7449_v29 = vpop.eup %7448 }
0x16f9   : > { %v7451_v30 = vpop.eup %7450  ;;  %v5879_v34 = vsel %vm1018_vm4, %v7449_v29, 0.0 }
0x16fa   : > { %5880 = vadd.xlane.f32.xlu0 %v5879_v34  ;;  %v5876_v59 = vsel %vm1018_vm4, %v7451_v30, 0.0  ;;  %v6307_v34 = vld [vmem:[%s8677_s17 + $0x18] sm:$0xff] }
0x16fb   : > { %5877 = vadd.xlane.f32.xlu1 %v5876_v59 }
0x16fd   : > { %v7453_v17 = vpop.eup %7452 }
0x170c   : > { %5977 = vrot.lane.b32.xlu1 %v8181_v41, %s8771_s24  ;;  %v5882_v41 = vsel %vm1018_vm4, %v7453_v17, 0.0 }
0x1710   : > { %5900 = vrot.lane.b32.xlu0 %v8177_v36, %s8771_s24 }
0x1714   : > { %6134 = vrot.lane.b32.xlu0 %v8420_v24, %s8772_s0 }
0x1718   : > { %6146 = vrot.lane.b32.xlu0 %v5454_v50, %s8735_s4  ;;  %v3975_v50 = vld [vmem:[%s8675_s15] sm:$0xff] }
0x1719   : > { %v7244_v55 = vpack.c.bf16 %v3976_v51, %v3975_v50 }
0x171c   : > { %6138 = vrot.lane.b32.xlu0 %v8430_v49, %s8772_s0 }
0x1730   : > { %5883 = vadd.xlane.f32.xlu1 %v5882_v41 }
0x1741   : > { %6054 = vrot.lane.b32.xlu1 %v8175_v20, %s8771_s24  ;;  %s8773_s24 = smov 24  }
0x1745   : > { %6136 = vrot.lane.b32.xlu1 %v8422_v35, %s8772_s0  ;;  %s646_s0 = scalar_lea.vmem [#allocation3], %s7268_s1 }
0x1746   : > { %s6427_s25 = sshll.u32 %s646_s0, 4  ;;  %s8606_s25 = int_to_ptr.vmem [resolvable:$true] %s6427_s25 }
0x1747   : > { %s7470_s3 = scalar_lea.vmem %s8606_s25, 192 }
0x1748   : > { %p7471_p11 = scmp.ne.s32.totalorder %s8606_s25, %s7470_s3 }
0x1749   : > { %6148 = vrot.lane.b32.xlu1 %v5531_v56, %s8735_s4  ;;  %v3978_v56 = vld [vmem:[%s8675_s15 + $0x18] sm:$0xff] }
0x174a   : > { %p7472_p12 = pnand %p7471_p11, %p7699_p5 }
0x174c   : > { %p7473_p13 = pneg %p7472_p12 }
0x1787   : > { %v5881_v36 = vpop.xlane.xlu0 %5880 }
0x1788   : > { %vm5886_vm15 = vcmp.eq.f32.partialorder %v5881_v36, 0.0  ;;  %v5878_v24 = vpop.xlane.xlu1 %5877 }
0x1789   : > { %v5889_v22 = vsel %vm5886_vm15, 1.0, %v7534_v11  ;;  %vm5885_vm6 = vcmp.eq.f32.partialorder %v5878_v24, 0.0  ;;  %vm8784_vm15 = vmmov %vm8780_vm14 }
0x178a   : > { %v5892_v49 = vadd.f32 %v5889_v22, %v5881_v36  ;;  %v5888_v31 = vsel %vm5885_vm6, 1.0, %v7534_v11 }
0x178b   : > { %v5891_v37 = vadd.f32 %v5888_v31, %v5878_v24  ;;  %v5901_v33 = vpop.permute.xlu0 %5900 }
0x178c   : > { %7454 = vrcp.f32 %v5892_v49  ;;  %7144 = vmatpush3.msk.msra.mxu1 %vm1073_vm8, %v5901_v33  ;;  %v5978_v20 = vpop.permute.xlu1 %5977 }
0x178d   : > { %7456 = vrcp.f32 %v5891_v37  ;;  %7149 = vmatpush3.msk.msra.mxu0 %vm1073_vm8, %v5978_v20  ;;  %7153 = vmatprep.subr.mxu1 %v7534_v11 }
0x178e   : > { %7245 = vmatprep.subr.bf16.mxu0 %v7244_v55 }
0x178f   : > { %v6135_v3 = vpop.permute.xlu0 %6134 }
0x1793   : > { %v6147_v6 = vpop.permute.xlu0 %6146 }
0x1796   : > { %v7455_v35 = vpop.eup %7454 }
0x1797   : > { %v7457_v38 = vpop.eup %7456  ;;  %v5897_v39 = vmul.f32 %v7455_v35, %v7449_v29  ;;  %v6139_v8 = vpop.permute.xlu0 %6138  ;;  %v6305_v29 = vld [vmem:[%s8677_s17 + $0x8] sm:$0xff] }
0x1798   : > { %v5895_v40 = vmul.f32 %v7457_v38, %v7451_v30  ;;  %v6306_v30 = vld [vmem:[%s8677_s17 + $0x10] sm:$0xff] }
0x1799   : > { %7151 = vmatmul.mubr.msk.f32.vlgmr.msra.gmra.mrb[54].mxu0 %vm1069_vm13, %v5897_v39  ;;  %v7256_v59 = vpack.c.bf16 %v6307_v34, %v6306_v30 }
0x179a   : > { %7146 = vmatmul.mubr.msk.f32.vlgmr.msra.gmra.mrb[54].mxu1 %vm1069_vm13, %v5895_v40  ;;  %7247 = vmatpush3.bf16.msra.mxu0 %v7244_v55 }
0x179b   : > { %7155 = vmatprep.mubr.msk.f32.mxu1 %vm8748_vm5, %v7534_v11  ;;  %vm8776_vm5 = vcmask 130048  }
0x179c   : > { %vm8777_vm7 = vmmov %vm8776_vm5 }
0x179d   : > { %vm8782_vm12 = vmmov %vm8776_vm5 }
0x17bd   : > { %v5884_v42 = vpop.xlane.xlu1 %5883 }
0x17be   : > { %vm5887_vm4 = vcmp.eq.f32.partialorder %v5884_v42, 0.0 }
0x17bf   : > { %v5890_v44 = vsel %vm5887_vm4, 1.0, %v7534_v11  ;;  %v3977_v11 = vld [vmem:[%s8675_s15 + $0x10] sm:$0xff] }
0x17c0   : > { %v5893_v45 = vadd.f32 %v5890_v44, %v5884_v42  ;;  %v7248_v58 = vpack.c.bf16 %v3978_v56, %v3977_v11  ;;  %v6310_v42 = vld [vmem:[%s8677_s17 + $0x30] sm:$0xff]  ;;  %v6311_v44 = vld [vmem:[%s8677_s17 + $0x38] sm:$0xff] }
0x17c1   : > { %v6055_v46 = vpop.permute.xlu1 %6054 }
0x17c2   : > { %7458 = vrcp.f32 %v5893_v45  ;;  %7154 = vmatpush3.msk.msra.mxu1 %vm1073_vm8, %v6055_v46  ;;  %7249 = vmatprep.subr.bf16.mxu0 %v7248_v58  ;;  %vm8774_vm8 = vmmov %vm8768_vm1  ;;  %v7264_v45 = vpack.c.bf16 %v6311_v44, %v6310_v42 }
0x17c3   : > { %7251 = vmatpush3.bf16.msra.mxu0 %v7248_v58  ;;  %v6167_v4 = vsel %vm8774_vm8, %v8353_v43, %v6135_v3  ;;  %vm8781_vm3 = vmmov %vm8774_vm8 }
0x17c4   : > { %v6170_v10 = vsel %vm8776_vm5, %v6167_v4, %v6147_v6  ;;  %v6169_v43 = vsel %vm8781_vm3, %v8358_v19, %v6139_v8  ;;  %v7252_v19 = vpack.c.bf16 %v6305_v29, %v6304_v27  ;;  %v7469_v6 = vld [vmem:[%s7728_s2 + $0x8] sm:$0xf]  ;;  %v6670_v8 = vld [vmem:[%s8678_s18] ss:$0 sm:$0xff] }
0x17c5   : > { %v6137_v5 = vpop.permute.xlu1 %6136 }
0x17c6   : > { %7253 = vmatprep.subr.bf16.mxu1 %v7252_v19 }
0x17c9   : > { %v6149_v7 = vpop.permute.xlu1 %6148 }
0x17cc   : > { %v7459_v47 = vpop.eup %7458 }
0x17cd   : > { %v5899_v48 = vmul.f32 %v7459_v47, %v7453_v17 }
0x17cf   : > { %7156 = vmatmul.mubr.msk.f32.vlgmr.msra.gmra.mrb[56].mxu1 %vm1069_vm13, %v5899_v48  ;;  %vm8775_vm13 = vmmov %vm8768_vm1  ;;  %vm8778_vm1 = vcmask 195584  }
0x17d0   : > { %v6168_v9 = vsel %vm8775_vm13, %v8351_v28, %v6137_v5  ;;  %vm8779_vm2 = vmmov %vm8778_vm1  ;;  %7255 = vmatpush3.bf16.msra.mxu1 %v7252_v19 }
0x17d1   : > { %vm8783_vm0 = vmmov %vm8778_vm1  ;;  %7257 = vmatprep.subr.bf16.mxu1 %v7256_v59 }
0x17d2   : > { %vm8785_vm13 = vmmov %vm8780_vm14 }
0x17d3   : > { %vm8786_vm5 = vmmov %vm8785_vm13 }
0x17d4   : > { %7259 = vmatpush3.bf16.msra.mxu1 %v7256_v59 }
0x17d5   : > { %7261 = vmatprep.subr.bf16.mxu1 %v7260_v32 }
0x17d8   : > { %7263 = vmatpush3.bf16.msra.mxu1 %v7260_v32 }
0x17d9   : > { %7265 = vmatprep.subr.bf16.mxu1 %v7264_v45 }
0x17dc   : > { %7267 = vmatpush3.bf16.msra.mxu1 %v7264_v45 }
0x186c   : > { %v6050_v60 = vpop.f32.mrb[54].mxu0 }
0x186d   : > { %6160 = vrot.lane.b32.xlu1 %v6050_v60, %s8773_s24  ;;  %v7152_v62 = vpop.f32.mrb[55].mxu0  ;;  %v5973_v63 = vpop.f32.mrb[54].mxu1 }
0x186e   : > { %6158 = vrot.lane.b32.xlu0 %v5973_v63, %s8773_s24  ;;  %v7147_v0 = vpop.f32.mrb[55].mxu1  ;;  %v7467_v63 = vld [vmem:[%s7728_s2] sm:$0xf] }
0x1871   : > { %6150 = vrot.lane.b32.xlu1 %v8489_v52, %s8735_s4  ;;  %v6171_v52 = vsel %vm8777_vm7, %v6168_v9, %v6149_v7  ;;  %vm6323_vm7 = vcmask 523264  }
0x18a2   : > { %v6127_v2 = vpop.f32.mrb[56].mxu1 }
0x18a3   : > { %6162 = vrot.lane.b32.xlu0 %v6127_v2, %s8773_s24  ;;  %v7157_v61 = vpop.f32.mrb[57].mxu1  ;;  %v7468_v2 = vld [vmem:[%s7728_s2 + $0x4] sm:$0xf] }
0x18df   : > { %v6161_v1 = vpop.permute.xlu1 %6160 }
0x18e0   : > { %v6159_v23 = vpop.permute.xlu0 %6158  ;;  %v6174_v15 = vsel %vm8778_vm1, %v6171_v52, %v6161_v1  ;;  %vm8787_vm1 = vmmov %vm8786_vm5 }
0x18e1   : > { %v6173_v25 = vsel %vm8779_vm2, %v6170_v10, %v6159_v23  ;;  %vm6409_vm2 = vcmask 44032  }
0x18e2   : > { %v6185_v16 = vcombine.low %v6173_v25, %v6174_v15 }
0x18e3   : > { %v6151_v13 = vpop.permute.xlu1 %6150 }
0x18e4   : > { %7166 = vmatprep.mubr.msk.f32.mxu0 %vm8780_vm14, %v6185_v16  ;;  %v6172_v21 = vsel %vm8782_vm12, %v6169_v43, %v6151_v13 }
0x1915   : > { %v6163_v28 = vpop.permute.xlu0 %6162 }
0x1916   : > { %v6175_v26 = vsel %vm8783_vm0, %v6172_v21, %v6163_v28 }
0x1917   : > { %7167 = vmatmul.mubr.msk.f32.vlgmr.msra.gmra.mrb[56].mxu0 %vm8784_vm15, %v6175_v26 }
0x19ea   : > { %v7168_v17 = vpop.f32.mrb[56].mxu0 }
0x19eb   : > { %v6262_v41 = vadd.f32 %v7168_v17, %v6664_v12  ;;  %v6256_v36 = vpop.f32.mrb[57].mxu0 }
0x19ec   : > { %v6257_v24 = vadd.f32 %v6664_v12, %v6256_v36 }
0x19ed   : > { %v6270_v22 = vsel %vm8106_vm11, 0.0, %v6262_v41 }
0x19ee   : > { %v6276_v49 = vmin.f32 %v6270_v22, 0.0  ;;  %v6266_v31 = vcombine.high %v6257_v24, %v6257_v24  ;;  %v6268_v37 = vsel %vm8102_vm10, 0.0, %v6257_v24  ;;  %vm6273_vm8 = vcmp.gt.f32.partialorder %v6270_v22, 0.0 }
0x19ef   : > { %v6274_v33 = vmin.f32 %v6268_v37, 0.0  ;;  %vm6271_vm6 = vcmp.gt.f32.partialorder %v6268_v37, 0.0 }
0x19f0   : > { %v6281_v20 = vmul.f32 1.442695, %v6276_v49  ;;  %v6269_v35 = vsel %vm8098_vm9, 0.0, %v6266_v31 }
0x19f1   : > { %v6275_v38 = vmin.f32 %v6269_v35, 0.0  ;;  %v6277_v39 = vmul.f32 1.442695, %v6274_v33  ;;  %vm6272_vm4 = vcmp.gt.f32.partialorder %v6269_v35, 0.0 }
0x19f2   : > { %7460 = vpow2.f32 %v6281_v20 }
0x19f3   : > { %7462 = vpow2.f32 %v6277_v39  ;;  %v6279_v40 = vmul.f32 1.442695, %v6275_v38 }
0x19f5   : > { %7464 = vpow2.f32 %v6279_v40 }
0x19fc   : > { %v7461_v46 = vpop.eup %7460 }
0x19fd   : > { %v7463_v47 = vpop.eup %7462  ;;  %v6669_v55 = vadd.f32 -1.0, %v7461_v46 }
0x19fe   : > { %v6667_v48 = vadd.f32 -1.0, %v7463_v47 }
0x19ff   : > { %v7465_v50 = vpop.eup %7464  ;;  %v6288_v58 = vsel %vm6273_vm8, %v6270_v22, %v6669_v55 }
0x1a00   : > { %v6286_v51 = vsel %vm6271_vm6, %v6268_v37, %v6667_v48  ;;  %v6668_v11 = vadd.f32 -1.0, %v7465_v50 }
0x1a01   : > { %6292 = vrot.lane.b32.xlu1 %v6286_v51, %s7555_s29 }
0x1a02   : > { %v6287_v56 = vsel %vm6272_vm4, %v6269_v35, %v6668_v11 }
0x1a03   : > { %6294 = vrot.lane.b32.xlu0 %v6287_v56, %s7555_s29 }
0x1a05   : > { %6296 = vrot.lane.b32.xlu1 %v6288_v58, %s7555_s29  ;;  %s7556_s29 = smov [#allocation3]  }
0x1a06   : > { %s7474_s1 = sshll.u32 %s7556_s29, 4  ;;  %s7475_s1 = int_to_ptr.vmem [resolvable:$false] %s7474_s1 }
0x1a07   : > { %s7476_s24 = scalar_lea.vmem %s7475_s1, 384  ;;  %p7477_p0 = scmp.lt.s32.totalorder %s8606_s25, %s7475_s1 }
0x1a08   : > { %p7478_p1 = scmp.lt.s32.totalorder %s7476_s24, %s7470_s3 }
0x1a0a   : > { %p7479_p2 = por %p7478_p1, %p7477_p0 }
0x1a0c   : > { %p7480_p3 = pnand %p7479_p2, %p7473_p13 }
0x1a73   : > { %v6293_v60 = vpop.permute.xlu1 %6292 }
0x1a74   : > { %v6301_v0 = vsel %vm8785_vm13, %v7467_v63, %v6293_v60 }
0x1a75   : > { %v6295_v62 = vpop.permute.xlu0 %6294 }
0x1a76   : > { %v6302_v61 = vsel %vm8786_vm5, %v7468_v2, %v6295_v62 }
0x1a77   : > { %v6322_v3 = vcombine.low %v6301_v0, %v6302_v61  ;;  %v6297_v5 = vpop.permute.xlu1 %6296 }
0x1a78   : > { %v6303_v7 = vsel %vm8787_vm1, %v7469_v6, %v6297_v5 }
0x1a79   : > { %7185 = vmatprep.mubr.msk.f32.mxu1 %vm6323_vm7, %v6322_v3 }
0x1a7a   : > { %7186 = vmatmul.mubr.msk.f32.vlgmr.msra.gmra.mrb[58].mxu1 %vm6323_vm7, %v6303_v7 }
0x1b4d   : > { %v7187_v4 = vpop.f32.mrb[58].mxu1 }
0x1b4e   : > { %v6400_v9 = vadd.f32 %v7187_v4, %v6670_v8  ;;  %v6394_v1 = vpop.f32.mrb[59].mxu1 }
0x1b4f   : > { %v6395_v10 = vadd.f32 %v6670_v8, %v6394_v1 }
0x1b50   : > { %v6408_v52 = vsel %vm8106_vm11, 0.0, %v6400_v9 }
0x1b51   : > { %6412 = vst.msk [vmem:[%s646_s0 + $0x8] sm:$0xf] %vm6409_vm2, %v6408_v52  ;;  %v6404_v23 = vcombine.high %v6395_v10, %v6395_v10  ;;  %v6406_v15 = vsel %vm8102_vm10, 0.0, %v6395_v10 }
0x1b52   : > { %6410 = vst.msk [vmem:[%s646_s0] sm:$0xf] %vm6409_vm2, %v6406_v15 }
0x1b53   : > { %v6407_v57 = vsel %vm8098_vm9, 0.0, %v6404_v23 }
0x1b54   : > { %6411 = vst.msk [vmem:[%s646_s0 + $0x4] sm:$0xf] %vm6409_vm2, %v6407_v57 }
0x1b55   : > { %7483 = shalt.err (!%p7480_p3)
}
0x1b56   : > { %s7484_s23 = scalar_lea.hbm %s8613_s27, 192  ;;  %s7488_s30 = scalar_lea.hbm %s8679_s19, 384 }
0x1b57   : > { %p7485_p4 = scmp.ne.s32.totalorder %s8613_s27, %s7484_s23  ;;  %p7489_p9 = scmp.lt.u32.totalorder %s8613_s27, %s8679_s19 }
0x1b58   : > { %p7490_p10 = scmp.lt.u32.totalorder %s7488_s30, %s7484_s23  ;;  %p7492_p12 = scmp.lt.u32.totalorder %s7484_s23, %s8613_s27 }
0x1b59   : > { %p7486_p7 = pnand %p7485_p4, %p7699_p5 }
0x1b5a   : > { %p7491_p11 = por %p7490_p10, %p7489_p9 }
0x1b5b   : > { %p7487_p8 = pneg %p7486_p7 }
0x1b5c   : > { %p7493_p13 = por %p7492_p12, %p7491_p11 }
0x1b5e   : > { %p7494_p0 = pnand %p7493_p13, %p7487_p8 }
0x1b60   : > { %7497 = shalt.err (!%p7494_p0)
}
0x1b61   : > { %s7557_s3 = smov 4  }
0x1b62   : > { %7269 = dma.vmem_to_hbm [thread:$0]  (%p7699_p5), %s8606_s25, 192, %s8613_s27, %s8617_s13, %s8744_s28, %s8744_s28, %s7557_s3  }
0x1b63 PF: > { %p7275_p1 = scmp.ge.s32.totalorder %s7532_s22, 2  ;;  %s6442_s1 = sand.u32 1, %s7520_s20  }
0x1b64   : > { %s6443_s24 = scalar_lea.sflag [#allocation4], %s6442_s1 }
0x1b65   : > { %p7272_p2 = pnand %p7275_p1, %p7703_p6 }
0x1b67   : > { %7515 = dma.done.wait (!%p7272_p2), %s6443_s24, 192  }
0x1b68   : > { %7517 = vsyncadd (!%p7272_p2), %s6443_s24, 4294967104  ;;  %s8789_s22 = sld [smem:[#allocation7_spill]]  ;;  %s8790_s26 = sld [smem:[#allocation6_spill]] }
0x1b69   : > { %s8791_s1 = sld [smem:[#allocation8_spill]]  ;;  %s8792_s20 = smov %s7524_s21 }
0x1b6e   : > { %p31_p3 = scmp.ge.s32.totalorder %s8789_s22, 4   ;;  %s8793_s21 = smov %s8790_s26 }
0x1b70   :  { %33 = sbr.rel (!%p31_p3) target bundleno = 10 (0xa), region = 140 }
0x1b77   :  { %6448 = vsyncpa [#allocation4], 1 }
0x1b78   :  { %6450 = vsyncpa [#allocation4 + $0x1], 1 }

</bundles_post_ra>
